<compile_context>
chip_gen: v6e
topology: v6e:2x2x1
jax: 0.10.0
libtpu: 0.0.40
codegen_flags: <defaults>
</compile_context>

<pallas_src>
import functools
import math

import numpy as np
import jax
import jax.numpy as jnp
from jax.experimental import pallas as pl
from jax.experimental.pallas import tpu as pltpu

WINDOW_SIZE = 11
PAD = WINDOW_SIZE // 2
SIGMA = 1.5
MS_WEIGHTS = (0.0448, 0.2856, 0.3001, 0.2363, 0.1333)
NUM_SCALES = len(MS_WEIGHTS)
MIN_WORK = 8          # floor on per-scale working canvas (keeps every matmul dim >= 8)
C1 = 0.01 ** 2
C2 = 0.03 ** 2


def _gaussian_1d(window_size, sigma):
    g = np.array([math.exp(-((x - window_size // 2) ** 2) / (2.0 * sigma ** 2))
                  for x in range(window_size)], dtype=np.float64)
    return (g / g.sum()).astype(np.float32)


_G1D = _gaussian_1d(WINDOW_SIZE, SIGMA)
_SMOOTH3 = np.array([1.0, 2.0, 1.0], np.float32)   # Sobel smoothing factor
_DERIV3 = np.array([-1.0, 0.0, 1.0], np.float32)   # Sobel derivative factor


# ---------------------------------------------------------------------------
# Host-side operator construction (numpy, passed as kernel constant inputs)
# ---------------------------------------------------------------------------
def _band_rows(taps, active, work, pad):
    """M (work, work) s.t. (M @ x)[i,:] = sum_a taps[a]*x[i+a-pad,:] (implicit zero pad),
    for i < active; rows >= active are zero."""
    k = len(taps)
    m = np.zeros((work, work), np.float32)
    for i in range(active):
        for a in range(k):
            r = i + a - pad
            if 0 <= r < work:
                m[i, r] = taps[a]
    return m


def _band_cols(taps, active, work, pad):
    """M (work, work) s.t. (x @ M)[:,j] = sum_b taps[b]*x[:,j+b-pad], cols >= active zero."""
    return np.ascontiguousarray(_band_rows(taps, active, work, pad).T)


def _pool_rows(active_out, work_out, work_in):
    """P s.t. (P @ x)[i,:] = 0.5*(x[2i,:]+x[2i+1,:]) for i < active_out (F.avg_pool2d 2x2)."""
    p = np.zeros((work_out, work_in), np.float32)
    for i in range(active_out):
        p[i, 2 * i] = 0.5
        p[i, 2 * i + 1] = 0.5
    return p


def _blockdiag(blocks):
    rows = sum(b.shape[0] for b in blocks)
    cols = sum(b.shape[1] for b in blocks)
    out = np.zeros((rows, cols), np.float32)
    r = c = 0
    for b in blocks:
        out[r:r + b.shape[0], c:c + b.shape[1]] = b
        r += b.shape[0]
        c += b.shape[1]
    return out


def _choose_packing(N, W):
    """Planes packed per grid step (lane-width target ~256) and number of grid steps."""
    p_lane = max(1, 256 // W)
    p_grid = max(1, (N + 1) // 2)      # keep >= 2 grid steps when N >= 2 (v7x megacore)
    P = max(1, min(p_lane, p_grid, N, 128))
    G = (N + P - 1) // P
    return P, G


def _build_operator_inputs(H, W, P):
    acts_h, acts_w = [H], [W]
    for _ in range(1, NUM_SCALES):
        acts_h.append(acts_h[-1] // 2)
        acts_w.append(acts_w[-1] // 2)
    works_h = [acts_h[0]] + [max(a, MIN_WORK) for a in acts_h[1:]]
    works_w = [acts_w[0]] + [max(a, MIN_WORK) for a in acts_w[1:]]

    consts = []
    for s in range(NUM_SCALES):
        ah, aw, wh, ww = acts_h[s], acts_w[s], works_h[s], works_w[s]
        g_w = _band_cols(_G1D, aw, ww, PAD)
        dv_w = _band_cols(_DERIV3, aw, ww, 1)
        sm_w = _band_cols(_SMOOTH3, aw, ww, 1)
        g_h = _band_rows(_G1D, ah, wh, PAD)
        dv_h = _band_rows(_DERIV3, ah, wh, 1)
        sm_h = _band_rows(_SMOOTH3, ah, wh, 1)

        wg = _blockdiag([g_w] * P)                                 # (P*ww, P*ww) gaussian W
        dvw = _blockdiag([dv_w] * P)                               # Sobel derivative W
        smw = _blockdiag([sm_w] * P)                               # Sobel smoothing W
        lh = _blockdiag([g_h] * 5 + [sm_h] * 2 + [dv_h] * 2)       # fused H step (9wh, 9wh)

        # Row-weight vector: row mask * MS weight / (act_h*act_w)  (only row 0 is used).
        rvec = np.zeros((8, wh), np.float32)
        rvec[0, :ah] = MS_WEIGHTS[s] / float(ah * aw)
        # Plane-fold matrix with the column (active-width) mask baked in.
        rp = np.zeros((P * ww, 128), np.float32)
        for p in range(P):
            rp[p * ww:p * ww + aw, p] = 1.0
        consts.extend([wg, dvw, smw, lh, rvec, rp])

    for s in range(NUM_SCALES - 1):
        ph = _pool_rows(acts_h[s + 1], works_h[s + 1], works_h[s])       # (wh', wh)
        pw1 = np.ascontiguousarray(
            _pool_rows(acts_w[s + 1], works_w[s + 1], works_w[s]).T)     # (ww, ww')
        ph2 = _blockdiag([ph, ph])                                       # pools [x1;x2] rows
        pwp = _blockdiag([pw1] * P)                                      # (P*ww, P*ww')
        consts.extend([pwp, ph2])

    works = tuple((works_h[s], works_w[s]) for s in range(NUM_SCALES))
    return consts, works


# ---------------------------------------------------------------------------
# Kernel
# ---------------------------------------------------------------------------
def _ms_ssim_kernel(*refs, works):
    num_scales = len(works)
    x1_ref, x2_ref = refs[0], refs[1]
    base = 2
    scale_refs = [refs[base + 6 * s: base + 6 * (s + 1)] for s in range(num_scales)]
    base += 6 * num_scales
    pool_refs = [refs[base + 2 * s: base + 2 * (s + 1)] for s in range(num_scales - 1)]
    out_ref = refs[base + 2 * (num_scales - 1)]

    x1 = x1_ref[0]                       # (H, P*W) slab: P planes packed along lanes
    x2 = x2_ref[0]
    acc = jnp.zeros((8, 128), jnp.float32)

    for s in range(num_scales):
        wg_ref, dvw_ref, smw_ref, lh_ref, rvec_ref, rp_ref = scale_refs[s]
        wh = works[s][0]

        x12 = jnp.concatenate([x1, x2], axis=0)                               # (2wh, S)
        xg = jnp.concatenate([x1, x2, x1 * x1, x2 * x2, x1 * x2], axis=0)     # (5wh, S)

        # W-direction convolutions (block-diag over packed planes), fused over operands.
        tg = jnp.dot(xg, wg_ref[...], preferred_element_type=jnp.float32)     # gaussian
        td = jnp.dot(x12, dvw_ref[...], preferred_element_type=jnp.float32)   # Sobel deriv
        ts = jnp.dot(x12, smw_ref[...], preferred_element_type=jnp.float32)   # Sobel smooth

        # Single fused H-direction matmul: blockdiag(G x5, Sm x2, Dv x2).
        hcat = jnp.concatenate([tg, td, ts], axis=0)                          # (9wh, S)
        hout = jnp.dot(lh_ref[...], hcat, preferred_element_type=jnp.float32)

        mu1 = hout[0 * wh:1 * wh]
        mu2 = hout[1 * wh:2 * wh]
        s11 = hout[2 * wh:3 * wh]
        s22 = hout[3 * wh:4 * wh]
        s12 = hout[4 * wh:5 * wh]
        e1x = hout[5 * wh:6 * wh]
        e2x = hout[6 * wh:7 * wh]
        e1y = hout[7 * wh:8 * wh]
        e2y = hout[8 * wh:9 * wh]

        mu1_sq = mu1 * mu1
        mu2_sq = mu2 * mu2
        mu1_mu2 = mu1 * mu2
        sigma1_sq = s11 - mu1_sq
        sigma2_sq = s22 - mu2_sq
        sigma12 = s12 - mu1_mu2
        ssim_map = ((2.0 * mu1_mu2 + C1) * (2.0 * sigma12 + C2)
                    / ((mu1_sq + mu2_sq + C1) * (sigma1_sq + sigma2_sq + C2)))

        a = e1x * e1x + e1y * e1y + 1e-8
        b = e2x * e2x + e2y * e2y + 1e-8
        # (2*e1*e2 + C2)/(e1^2 + e2^2 + C2) with e1=sqrt(a), e2=sqrt(b): one sqrt total.
        edge_sim = (2.0 * jnp.sqrt(a * b) + C2) / (a + b + C2)

        combined = 0.85 * ssim_map + 0.15 * edge_sim                           # (wh, S)

        # Masked mean * MS weight, folded host-side into two tiny matmuls.
        t = jnp.dot(rvec_ref[...], combined, preferred_element_type=jnp.float32)   # (8, S)
        acc = acc + jnp.dot(t, rp_ref[...], preferred_element_type=jnp.float32)    # (8, 128)

        if s < num_scales - 1:
            pw_ref, ph2_ref = pool_refs[s]
            pooled = jnp.dot(
                ph2_ref[...],
                jnp.dot(x12, pw_ref[...], preferred_element_type=jnp.float32),
                preferred_element_type=jnp.float32)                            # (2*wh', S')
            wh_n = works[s + 1][0]
            x1 = pooled[:wh_n]
            x2 = pooled[wh_n:]

    # Per-plane values live in row 0, lanes 0..P-1; aligned (1, 8, 128) unmasked store.
    out_ref[...] = acc.reshape(out_ref.shape)


# ---------------------------------------------------------------------------
# Wrapper
# ---------------------------------------------------------------------------
@jax.jit
def ms_ssim(img1, img2):
    """Multi-scale, edge-aware SSIM matching StructuralSimilarityIndex.forward. Returns [B]."""
    B, C, H, W = img1.shape
    assert H >= 16 and W >= 16, "need >= 16 pixels per side for 5 MS-SSIM scales"
    N = B * C
    P, G = _choose_packing(N, W)
    n_pad = P * G
    S0 = P * W

    x1 = img1.reshape(N, H, W).astype(jnp.float32)
    x2 = img2.reshape(N, H, W).astype(jnp.float32)
    if n_pad > N:
        z = jnp.zeros((n_pad - N, H, W), jnp.float32)
        x1 = jnp.concatenate([x1, z], axis=0)
        x2 = jnp.concatenate([x2, z], axis=0)
    # Pack P planes per grid step along the lane axis: (G, P, H, W) -> (G, H, P*W).
    x1s = x1.reshape(G, P, H, W).transpose(0, 2, 1, 3).reshape(G, H, S0)
    x2s = x2.reshape(G, P, H, W).transpose(0, 2, 1, 3).reshape(G, H, S0)

    const_np, works = _build_operator_inputs(H, W, P)
    const_inputs = [jnp.asarray(a) for a in const_np]

    img_spec = pl.BlockSpec((1, H, S0), lambda n: (n, 0, 0))
    # TODO(synk): add pipeline_mode=pl.Buffered(1) to these constant specs (block index never
    # changes) once validated; only matters for VMEM headroom at large W (esp. v7x 64 MiB).
    const_specs = [pl.BlockSpec(a.shape, lambda n: (0, 0)) for a in const_np]
    in_specs = [img_spec, img_spec] + const_specs

    # Advisory cost estimate + size-derived VMEM limit.
    flops = 0
    trans = 0
    for s in range(NUM_SCALES):
        wh, ww = works[s]
        S = P * ww
        flops += 2 * (5 * wh) * S * S              # gaussian W-step
        flops += 2 * 2 * (2 * wh) * S * S          # Sobel W-steps
        flops += 2 * (9 * wh) * (9 * wh) * S       # fused H-step
        flops += 2 * 8 * wh * S + 2 * 8 * S * 128  # reduction matmuls
        flops += 40 * wh * S                       # elementwise SSIM/edge math
        trans += 4 * wh * S                        # sqrt + divides
        if s < NUM_SCALES - 1:
            wh2, ww2 = works[s + 1]
            S2 = P * ww2
            flops += 2 * (2 * wh) * S * S2 + 2 * (2 * wh2) * (2 * wh) * S2
    const_bytes = sum(int(a.size) * 4 for a in const_np)
    cost = pl.CostEstimate(
        flops=int(flops * G),
        transcendentals=int(trans * G),
        bytes_accessed=int(8 * G * H * S0 + const_bytes + G * 8 * 128 * 4),
    )
    slab_bytes = 4 * H * S0
    vmem_limit = int(min(64 * 2 ** 20,
                         max(32 * 2 ** 20, 8 * slab_bytes + 2 * const_bytes + (8 << 20))))

    kernel = functools.partial(_ms_ssim_kernel, works=works)
    out = pl.pallas_call(
        kernel,
        out_shape=jax.ShapeDtypeStruct((G, 8, 128), jnp.float32),
        grid=(G,),
        in_specs=in_specs,
        out_specs=pl.BlockSpec((1, 8, 128), lambda n: (n, 0, 0)),
        compiler_params=pltpu.CompilerParams(
            dimension_semantics=("parallel",),     # plane groups shard across TCs (v7x)
            vmem_limit_bytes=vmem_limit,
        ),
        cost_estimate=cost,
    )(x1s, x2s, *const_inputs)

    # per-plane value = sum_s w_s * mean_{H_s,W_s}(map_s); average over channels -> [B]
    plane_vals = out[:, 0, :P].reshape(-1)[:N].reshape(B, C)
    return plane_vals.mean(axis=1)


# ---------------------------------------------------------------------------
# Pure-JAX reference (mirrors the PyTorch module) for a sanity check
# ---------------------------------------------------------------------------
def _ref_avg_pool2(x):
    B, C, H, W = x.shape
    return x.reshape(B, C, H // 2, 2, W // 2, 2).mean(axis=(3, 5))


def _ref_ssim_single(img1, img2):
    B, C, H, W = img1.shape
    p = PAD
    x1 = jnp.pad(img1, ((0, 0), (0, 0), (p, p), (p, p)))
    x2 = jnp.pad(img2, ((0, 0), (0, 0), (p, p), (p, p)))
    g = [float(v) for v in _G1D]

    def gauss(xp):
        t = sum(g[b] * xp[:, :, :, b:b + W] for b in range(WINDOW_SIZE))
        return sum(g[a] * t[:, :, a:a + H, :] for a in range(WINDOW_SIZE))

    sobel_x = ((-1., 0., 1.), (-2., 0., 2.), (-1., 0., 1.))
    sobel_y = ((-1., -2., -1.), (0., 0., 0.), (1., 2., 1.))

    def sobel(xp, k):
        out = jnp.zeros((B, C, H, W), jnp.float32)
        for a in range(3):
            for b in range(3):
                if k[a][b] == 0.0:
                    continue
                out = out + k[a][b] * xp[:, :, p - 1 + a:p - 1 + a + H,
                                         p - 1 + b:p - 1 + b + W]
        return out

    mu1, mu2 = gauss(x1), gauss(x2)
    s11, s22, s12 = gauss(x1 * x1), gauss(x2 * x2), gauss(x1 * x2)
    mu1_sq, mu2_sq, mu1_mu2 = mu1 * mu1, mu2 * mu2, mu1 * mu2
    sigma1_sq, sigma2_sq, sigma12 = s11 - mu1_sq, s22 - mu2_sq, s12 - mu1_mu2
    ssim_map = ((2 * mu1_mu2 + C1) * (2 * sigma12 + C2)
                / ((mu1_sq + mu2_sq + C1) * (sigma1_sq + sigma2_sq + C2)))
    e1x, e1y = sobel(x1, sobel_x), sobel(x1, sobel_y)
    e2x, e2y = sobel(x2, sobel_x), sobel(x2, sobel_y)
    edges1 = jnp.sqrt(e1x ** 2 + e1y ** 2 + 1e-8)
    edges2 = jnp.sqrt(e2x ** 2 + e2y ** 2 + 1e-8)
    edge_sim = (2 * edges1 * edges2 + C2) / (edges1 ** 2 + edges2 ** 2 + C2)
    ssim_map = 0.85 * ssim_map + 0.15 * edge_sim
    return ssim_map.mean(axis=(1, 2, 3))


def ms_ssim_reference(img1, img2):
    img1 = img1.astype(jnp.float32)
    img2 = img2.astype(jnp.float32)
    sims = []
    for i in range(NUM_SCALES):
        sims.append(_ref_ssim_single(img1, img2))
        if i < NUM_SCALES - 1:
            img1 = _ref_avg_pool2(img1)
            img2 = _ref_avg_pool2(img2)
    stack = jnp.stack(sims, axis=1)
    w = jnp.asarray(MS_WEIGHTS, dtype=jnp.float32)
    return (stack * w).sum(axis=1)


if __name__ == "__main__":
    key = jax.random.PRNGKey(0)
    k1, k2 = jax.random.split(key)
    B, C, H, W = 2, 3, 16, 16  # num_channels=3 as in the module default
    img1 = jax.random.uniform(k1, (B, C, H, W), dtype=jnp.float32)
    img2 = jax.random.uniform(k2, (B, C, H, W), dtype=jnp.float32)

    out = ms_ssim(img1, img2)
    jax.block_until_ready(out)
    assert out.shape == (B,)

    ref = ms_ssim_reference(img1, img2)
    np.testing.assert_allclose(np.asarray(out), np.asarray(ref), rtol=5e-2, atol=5e-2)
    print("KERNEL_OK")
</pallas_src>

<mosaic_0001>
module attributes {stable_mosaic.version = 11 : i64} {
  func.func @_ms_ssim_kernel(%arg0: i32, %arg1: memref<1x16x48xf32, #tpu.memory_space<vmem>>, %arg2: memref<1x16x48xf32, #tpu.memory_space<vmem>>, %arg3: memref<48x48xf32, #tpu.memory_space<vmem>>, %arg4: memref<48x48xf32, #tpu.memory_space<vmem>>, %arg5: memref<48x48xf32, #tpu.memory_space<vmem>>, %arg6: memref<144x144xf32, #tpu.memory_space<vmem>>, %arg7: memref<8x16xf32, #tpu.memory_space<vmem>>, %arg8: memref<48x128xf32, #tpu.memory_space<vmem>>, %arg9: memref<24x24xf32, #tpu.memory_space<vmem>>, %arg10: memref<24x24xf32, #tpu.memory_space<vmem>>, %arg11: memref<24x24xf32, #tpu.memory_space<vmem>>, %arg12: memref<72x72xf32, #tpu.memory_space<vmem>>, %arg13: memref<8x8xf32, #tpu.memory_space<vmem>>, %arg14: memref<24x128xf32, #tpu.memory_space<vmem>>, %arg15: memref<24x24xf32, #tpu.memory_space<vmem>>, %arg16: memref<24x24xf32, #tpu.memory_space<vmem>>, %arg17: memref<24x24xf32, #tpu.memory_space<vmem>>, %arg18: memref<72x72xf32, #tpu.memory_space<vmem>>, %arg19: memref<8x8xf32, #tpu.memory_space<vmem>>, %arg20: memref<24x128xf32, #tpu.memory_space<vmem>>, %arg21: memref<24x24xf32, #tpu.memory_space<vmem>>, %arg22: memref<24x24xf32, #tpu.memory_space<vmem>>, %arg23: memref<24x24xf32, #tpu.memory_space<vmem>>, %arg24: memref<72x72xf32, #tpu.memory_space<vmem>>, %arg25: memref<8x8xf32, #tpu.memory_space<vmem>>, %arg26: memref<24x128xf32, #tpu.memory_space<vmem>>, %arg27: memref<24x24xf32, #tpu.memory_space<vmem>>, %arg28: memref<24x24xf32, #tpu.memory_space<vmem>>, %arg29: memref<24x24xf32, #tpu.memory_space<vmem>>, %arg30: memref<72x72xf32, #tpu.memory_space<vmem>>, %arg31: memref<8x8xf32, #tpu.memory_space<vmem>>, %arg32: memref<24x128xf32, #tpu.memory_space<vmem>>, %arg33: memref<48x24xf32, #tpu.memory_space<vmem>>, %arg34: memref<16x32xf32, #tpu.memory_space<vmem>>, %arg35: memref<24x24xf32, #tpu.memory_space<vmem>>, %arg36: memref<16x16xf32, #tpu.memory_space<vmem>>, %arg37: memref<24x24xf32, #tpu.memory_space<vmem>>, %arg38: memref<16x16xf32, #tpu.memory_space<vmem>>, %arg39: memref<24x24xf32, #tpu.memory_space<vmem>>, %arg40: memref<16x16xf32, #tpu.memory_space<vmem>>, %arg41: memref<1x8x128xf32, #tpu.memory_space<vmem>>) attributes {dimension_semantics = [#tpu.dimension_semantics<parallel>], iteration_bounds = array<i64: 2>, scalar_prefetch = 0 : i64, scratch_operands = 0 : i64, tpu.core_type = #tpu.core_type<tc>, window_params = [{transform_indices = @transform_0, window_bounds = array<i64: 1, 16, 48>}, {transform_indices = @transform_1, window_bounds = array<i64: 1, 16, 48>}, {pipeline_mode = #tpu.pipeline_mode<synchronous>, transform_indices = @transform_2, window_bounds = array<i64: 48, 48>}, {pipeline_mode = #tpu.pipeline_mode<synchronous>, transform_indices = @transform_3, window_bounds = array<i64: 48, 48>}, {pipeline_mode = #tpu.pipeline_mode<synchronous>, transform_indices = @transform_4, window_bounds = array<i64: 48, 48>}, {pipeline_mode = #tpu.pipeline_mode<synchronous>, transform_indices = @transform_5, window_bounds = array<i64: 144, 144>}, {pipeline_mode = #tpu.pipeline_mode<synchronous>, transform_indices = @transform_6, window_bounds = array<i64: 8, 16>}, {pipeline_mode = #tpu.pipeline_mode<synchronous>, transform_indices = @transform_7, window_bounds = array<i64: 48, 128>}, {pipeline_mode = #tpu.pipeline_mode<synchronous>, transform_indices = @transform_8, window_bounds = array<i64: 24, 24>}, {pipeline_mode = #tpu.pipeline_mode<synchronous>, transform_indices = @transform_9, window_bounds = array<i64: 24, 24>}, {pipeline_mode = #tpu.pipeline_mode<synchronous>, transform_indices = @transform_10, window_bounds = array<i64: 24, 24>}, {pipeline_mode = #tpu.pipeline_mode<synchronous>, transform_indices = @transform_11, window_bounds = array<i64: 72, 72>}, {pipeline_mode = #tpu.pipeline_mode<synchronous>, transform_indices = @transform_12, window_bounds = array<i64: 8, 8>}, {pipeline_mode = #tpu.pipeline_mode<synchronous>, transform_indices = @transform_13, window_bounds = array<i64: 24, 128>}, {pipeline_mode = #tpu.pipeline_mode<synchronous>, transform_indices = @transform_14, window_bounds = array<i64: 24, 24>}, {pipeline_mode = #tpu.pipeline_mode<synchronous>, transform_indices = @transform_15, window_bounds = array<i64: 24, 24>}, {pipeline_mode = #tpu.pipeline_mode<synchronous>, transform_indices = @transform_16, window_bounds = array<i64: 24, 24>}, {pipeline_mode = #tpu.pipeline_mode<synchronous>, transform_indices = @transform_17, window_bounds = array<i64: 72, 72>}, {pipeline_mode = #tpu.pipeline_mode<synchronous>, transform_indices = @transform_18, window_bounds = array<i64: 8, 8>}, {pipeline_mode = #tpu.pipeline_mode<synchronous>, transform_indices = @transform_19, window_bounds = array<i64: 24, 128>}, {pipeline_mode = #tpu.pipeline_mode<synchronous>, transform_indices = @transform_20, window_bounds = array<i64: 24, 24>}, {pipeline_mode = #tpu.pipeline_mode<synchronous>, transform_indices = @transform_21, window_bounds = array<i64: 24, 24>}, {pipeline_mode = #tpu.pipeline_mode<synchronous>, transform_indices = @transform_22, window_bounds = array<i64: 24, 24>}, {pipeline_mode = #tpu.pipeline_mode<synchronous>, transform_indices = @transform_23, window_bounds = array<i64: 72, 72>}, {pipeline_mode = #tpu.pipeline_mode<synchronous>, transform_indices = @transform_24, window_bounds = array<i64: 8, 8>}, {pipeline_mode = #tpu.pipeline_mode<synchronous>, transform_indices = @transform_25, window_bounds = array<i64: 24, 128>}, {pipeline_mode = #tpu.pipeline_mode<synchronous>, transform_indices = @transform_26, window_bounds = array<i64: 24, 24>}, {pipeline_mode = #tpu.pipeline_mode<synchronous>, transform_indices = @transform_27, window_bounds = array<i64: 24, 24>}, {pipeline_mode = #tpu.pipeline_mode<synchronous>, transform_indices = @transform_28, window_bounds = array<i64: 24, 24>}, {pipeline_mode = #tpu.pipeline_mode<synchronous>, transform_indices = @transform_29, window_bounds = array<i64: 72, 72>}, {pipeline_mode = #tpu.pipeline_mode<synchronous>, transform_indices = @transform_30, window_bounds = array<i64: 8, 8>}, {pipeline_mode = #tpu.pipeline_mode<synchronous>, transform_indices = @transform_31, window_bounds = array<i64: 24, 128>}, {pipeline_mode = #tpu.pipeline_mode<synchronous>, transform_indices = @transform_32, window_bounds = array<i64: 48, 24>}, {pipeline_mode = #tpu.pipeline_mode<synchronous>, transform_indices = @transform_33, window_bounds = array<i64: 16, 32>}, {pipeline_mode = #tpu.pipeline_mode<synchronous>, transform_indices = @transform_34, window_bounds = array<i64: 24, 24>}, {pipeline_mode = #tpu.pipeline_mode<synchronous>, transform_indices = @transform_35, window_bounds = array<i64: 16, 16>}, {pipeline_mode = #tpu.pipeline_mode<synchronous>, transform_indices = @transform_36, window_bounds = array<i64: 24, 24>}, {pipeline_mode = #tpu.pipeline_mode<synchronous>, transform_indices = @transform_37, window_bounds = array<i64: 16, 16>}, {pipeline_mode = #tpu.pipeline_mode<synchronous>, transform_indices = @transform_38, window_bounds = array<i64: 24, 24>}, {pipeline_mode = #tpu.pipeline_mode<synchronous>, transform_indices = @transform_39, window_bounds = array<i64: 16, 16>}, {transform_indices = @transform_40, window_bounds = array<i64: 1, 8, 128>}]} {
    %c0 = arith.constant 0 : index
    %c0_0 = arith.constant 0 : index
    %c0_1 = arith.constant 0 : index
    %0 = vector.load %arg1[%c0, %c0_0, %c0_1] : memref<1x16x48xf32, #tpu.memory_space<vmem>>, vector<1x16x48xf32>
    %1 = vector.shape_cast %0 : vector<1x16x48xf32> to vector<16x48xf32>
    %c0_2 = arith.constant 0 : index
    %c0_3 = arith.constant 0 : index
    %c0_4 = arith.constant 0 : index
    %2 = vector.load %arg2[%c0_2, %c0_3, %c0_4] : memref<1x16x48xf32, #tpu.memory_space<vmem>>, vector<1x16x48xf32>
    %3 = vector.shape_cast %2 : vector<1x16x48xf32> to vector<16x48xf32>
    %cst = arith.constant 0.000000e+00 : f32
    %4 = vector.broadcast %cst : f32 to vector<8x128xf32>
    %5 = tpu.concatenate %1, %3 in 0 : vector<16x48xf32>, vector<16x48xf32> -> vector<32x48xf32>
    %6 = arith.mulf %1, %1 : vector<16x48xf32>
    %7 = arith.mulf %3, %3 : vector<16x48xf32>
    %8 = arith.mulf %1, %3 : vector<16x48xf32>
    %9 = tpu.concatenate %1, %3, %6, %7, %8 in 0 : vector<16x48xf32>, vector<16x48xf32>, vector<16x48xf32>, vector<16x48xf32>, vector<16x48xf32> -> vector<80x48xf32>
    %c0_5 = arith.constant 0 : index
    %c0_6 = arith.constant 0 : index
    %10 = vector.load %arg3[%c0_5, %c0_6] : memref<48x48xf32, #tpu.memory_space<vmem>>, vector<48x48xf32>
    %cst_7 = arith.constant dense<0.000000e+00> : vector<80x48xf32>
    %11 = tpu.matmul %9, %10, %cst_7 {dimension_numbers = #tpu.dot_dimension_numbers<[1], [0], [0], [1], [0, 0, 1, 1], [], []>} : vector<80x48xf32>, vector<48x48xf32>, vector<80x48xf32> -> vector<80x48xf32>
    %c0_8 = arith.constant 0 : index
    %c0_9 = arith.constant 0 : index
    %12 = vector.load %arg4[%c0_8, %c0_9] : memref<48x48xf32, #tpu.memory_space<vmem>>, vector<48x48xf32>
    %cst_10 = arith.constant dense<0.000000e+00> : vector<32x48xf32>
    %13 = tpu.matmul %5, %12, %cst_10 {dimension_numbers = #tpu.dot_dimension_numbers<[1], [0], [0], [1], [0, 0, 1, 1], [], []>} : vector<32x48xf32>, vector<48x48xf32>, vector<32x48xf32> -> vector<32x48xf32>
    %c0_11 = arith.constant 0 : index
    %c0_12 = arith.constant 0 : index
    %14 = vector.load %arg5[%c0_11, %c0_12] : memref<48x48xf32, #tpu.memory_space<vmem>>, vector<48x48xf32>
    %cst_13 = arith.constant dense<0.000000e+00> : vector<32x48xf32>
    %15 = tpu.matmul %5, %14, %cst_13 {dimension_numbers = #tpu.dot_dimension_numbers<[1], [0], [0], [1], [0, 0, 1, 1], [], []>} : vector<32x48xf32>, vector<48x48xf32>, vector<32x48xf32> -> vector<32x48xf32>
    %16 = tpu.concatenate %11, %13, %15 in 0 : vector<80x48xf32>, vector<32x48xf32>, vector<32x48xf32> -> vector<144x48xf32>
    %c0_14 = arith.constant 0 : index
    %c0_15 = arith.constant 0 : index
    %17 = vector.load %arg6[%c0_14, %c0_15] : memref<144x144xf32, #tpu.memory_space<vmem>>, vector<144x144xf32>
    %cst_16 = arith.constant dense<0.000000e+00> : vector<144x48xf32>
    %18 = tpu.matmul %17, %16, %cst_16 {dimension_numbers = #tpu.dot_dimension_numbers<[1], [0], [0], [1], [0, 0, 1, 1], [], []>} : vector<144x144xf32>, vector<144x48xf32>, vector<144x48xf32> -> vector<144x48xf32>
    %19 = vector.extract_strided_slice %18 {offsets = [0, 0], sizes = [16, 48], strides = [1, 1]} : vector<144x48xf32> to vector<16x48xf32>
    %20 = vector.extract_strided_slice %18 {offsets = [16, 0], sizes = [16, 48], strides = [1, 1]} : vector<144x48xf32> to vector<16x48xf32>
    %21 = vector.extract_strided_slice %18 {offsets = [32, 0], sizes = [16, 48], strides = [1, 1]} : vector<144x48xf32> to vector<16x48xf32>
    %22 = vector.extract_strided_slice %18 {offsets = [48, 0], sizes = [16, 48], strides = [1, 1]} : vector<144x48xf32> to vector<16x48xf32>
    %23 = vector.extract_strided_slice %18 {offsets = [64, 0], sizes = [16, 48], strides = [1, 1]} : vector<144x48xf32> to vector<16x48xf32>
    %24 = vector.extract_strided_slice %18 {offsets = [80, 0], sizes = [16, 48], strides = [1, 1]} : vector<144x48xf32> to vector<16x48xf32>
    %25 = vector.extract_strided_slice %18 {offsets = [96, 0], sizes = [16, 48], strides = [1, 1]} : vector<144x48xf32> to vector<16x48xf32>
    %26 = vector.extract_strided_slice %18 {offsets = [112, 0], sizes = [16, 48], strides = [1, 1]} : vector<144x48xf32> to vector<16x48xf32>
    %27 = vector.extract_strided_slice %18 {offsets = [128, 0], sizes = [16, 48], strides = [1, 1]} : vector<144x48xf32> to vector<16x48xf32>
    %28 = arith.mulf %19, %19 : vector<16x48xf32>
    %29 = arith.mulf %20, %20 : vector<16x48xf32>
    %30 = arith.mulf %19, %20 : vector<16x48xf32>
    %31 = arith.subf %21, %28 : vector<16x48xf32>
    %32 = arith.subf %22, %29 : vector<16x48xf32>
    %33 = arith.subf %23, %30 : vector<16x48xf32>
    %cst_17 = arith.constant 2.000000e+00 : f32
    %34 = vector.broadcast %cst_17 : f32 to vector<16x48xf32>
    %35 = arith.mulf %34, %30 : vector<16x48xf32>
    %cst_18 = arith.constant 9.99999974E-5 : f32
    %36 = vector.broadcast %cst_18 : f32 to vector<16x48xf32>
    %37 = arith.addf %35, %36 : vector<16x48xf32>
    %cst_19 = arith.constant 2.000000e+00 : f32
    %38 = vector.broadcast %cst_19 : f32 to vector<16x48xf32>
    %39 = arith.mulf %38, %33 : vector<16x48xf32>
    %cst_20 = arith.constant 8.99999984E-4 : f32
    %40 = vector.broadcast %cst_20 : f32 to vector<16x48xf32>
    %41 = arith.addf %39, %40 : vector<16x48xf32>
    %42 = arith.mulf %37, %41 : vector<16x48xf32>
    %43 = arith.addf %28, %29 : vector<16x48xf32>
    %cst_21 = arith.constant 9.99999974E-5 : f32
    %44 = vector.broadcast %cst_21 : f32 to vector<16x48xf32>
    %45 = arith.addf %43, %44 : vector<16x48xf32>
    %46 = arith.addf %31, %32 : vector<16x48xf32>
    %cst_22 = arith.constant 8.99999984E-4 : f32
    %47 = vector.broadcast %cst_22 : f32 to vector<16x48xf32>
    %48 = arith.addf %46, %47 : vector<16x48xf32>
    %49 = arith.mulf %45, %48 : vector<16x48xf32>
    %50 = arith.divf %42, %49 : vector<16x48xf32>
    %51 = arith.mulf %24, %24 : vector<16x48xf32>
    %52 = arith.mulf %26, %26 : vector<16x48xf32>
    %53 = arith.addf %51, %52 : vector<16x48xf32>
    %cst_23 = arith.constant 9.99999993E-9 : f32
    %54 = vector.broadcast %cst_23 : f32 to vector<16x48xf32>
    %55 = arith.addf %53, %54 : vector<16x48xf32>
    %56 = arith.mulf %25, %25 : vector<16x48xf32>
    %57 = arith.mulf %27, %27 : vector<16x48xf32>
    %58 = arith.addf %56, %57 : vector<16x48xf32>
    %cst_24 = arith.constant 9.99999993E-9 : f32
    %59 = vector.broadcast %cst_24 : f32 to vector<16x48xf32>
    %60 = arith.addf %58, %59 : vector<16x48xf32>
    %61 = arith.mulf %55, %60 : vector<16x48xf32>
    %62 = math.sqrt %61 : vector<16x48xf32>
    %cst_25 = arith.constant 2.000000e+00 : f32
    %63 = vector.broadcast %cst_25 : f32 to vector<16x48xf32>
    %64 = arith.mulf %63, %62 : vector<16x48xf32>
    %cst_26 = arith.constant 8.99999984E-4 : f32
    %65 = vector.broadcast %cst_26 : f32 to vector<16x48xf32>
    %66 = arith.addf %64, %65 : vector<16x48xf32>
    %67 = arith.addf %55, %60 : vector<16x48xf32>
    %cst_27 = arith.constant 8.99999984E-4 : f32
    %68 = vector.broadcast %cst_27 : f32 to vector<16x48xf32>
    %69 = arith.addf %67, %68 : vector<16x48xf32>
    %70 = arith.divf %66, %69 : vector<16x48xf32>
    %cst_28 = arith.constant 8.500000e-01 : f32
    %71 = vector.broadcast %cst_28 : f32 to vector<16x48xf32>
    %72 = arith.mulf %71, %50 : vector<16x48xf32>
    %cst_29 = arith.constant 1.500000e-01 : f32
    %73 = vector.broadcast %cst_29 : f32 to vector<16x48xf32>
    %74 = arith.mulf %73, %70 : vector<16x48xf32>
    %75 = arith.addf %72, %74 : vector<16x48xf32>
    %c0_30 = arith.constant 0 : index
    %c0_31 = arith.constant 0 : index
    %76 = vector.load %arg7[%c0_30, %c0_31] : memref<8x16xf32, #tpu.memory_space<vmem>>, vector<8x16xf32>
    %cst_32 = arith.constant dense<0.000000e+00> : vector<8x48xf32>
    %77 = tpu.matmul %76, %75, %cst_32 {dimension_numbers = #tpu.dot_dimension_numbers<[1], [0], [0], [1], [0, 0, 1, 1], [], []>} : vector<8x16xf32>, vector<16x48xf32>, vector<8x48xf32> -> vector<8x48xf32>
    %c0_33 = arith.constant 0 : index
    %c0_34 = arith.constant 0 : index
    %78 = vector.load %arg8[%c0_33, %c0_34] : memref<48x128xf32, #tpu.memory_space<vmem>>, vector<48x128xf32>
    %cst_35 = arith.constant dense<0.000000e+00> : vector<8x128xf32>
    %79 = tpu.matmul %77, %78, %cst_35 {dimension_numbers = #tpu.dot_dimension_numbers<[1], [0], [0], [1], [0, 0, 1, 1], [], []>} : vector<8x48xf32>, vector<48x128xf32>, vector<8x128xf32> -> vector<8x128xf32>
    %80 = arith.addf %4, %79 : vector<8x128xf32>
    %c0_36 = arith.constant 0 : index
    %c0_37 = arith.constant 0 : index
    %81 = vector.load %arg34[%c0_36, %c0_37] : memref<16x32xf32, #tpu.memory_space<vmem>>, vector<16x32xf32>
    %c0_38 = arith.constant 0 : index
    %c0_39 = arith.constant 0 : index
    %82 = vector.load %arg33[%c0_38, %c0_39] : memref<48x24xf32, #tpu.memory_space<vmem>>, vector<48x24xf32>
    %cst_40 = arith.constant dense<0.000000e+00> : vector<32x24xf32>
    %83 = tpu.matmul %5, %82, %cst_40 {dimension_numbers = #tpu.dot_dimension_numbers<[1], [0], [0], [1], [0, 0, 1, 1], [], []>} : vector<32x48xf32>, vector<48x24xf32>, vector<32x24xf32> -> vector<32x24xf32>
    %cst_41 = arith.constant dense<0.000000e+00> : vector<16x24xf32>
    %84 = tpu.matmul %81, %83, %cst_41 {dimension_numbers = #tpu.dot_dimension_numbers<[1], [0], [0], [1], [0, 0, 1, 1], [], []>} : vector<16x32xf32>, vector<32x24xf32>, vector<16x24xf32> -> vector<16x24xf32>
    %85 = vector.extract_strided_slice %84 {offsets = [0, 0], sizes = [8, 24], strides = [1, 1]} : vector<16x24xf32> to vector<8x24xf32>
    %86 = vector.extract_strided_slice %84 {offsets = [8, 0], sizes = [8, 24], strides = [1, 1]} : vector<16x24xf32> to vector<8x24xf32>
    %87 = tpu.concatenate %85, %86 in 0 : vector<8x24xf32>, vector<8x24xf32> -> vector<16x24xf32>
    %88 = arith.mulf %85, %85 : vector<8x24xf32>
    %89 = arith.mulf %86, %86 : vector<8x24xf32>
    %90 = arith.mulf %85, %86 : vector<8x24xf32>
    %91 = tpu.concatenate %85, %86, %88, %89, %90 in 0 : vector<8x24xf32>, vector<8x24xf32>, vector<8x24xf32>, vector<8x24xf32>, vector<8x24xf32> -> vector<40x24xf32>
    %c0_42 = arith.constant 0 : index
    %c0_43 = arith.constant 0 : index
    %92 = vector.load %arg9[%c0_42, %c0_43] : memref<24x24xf32, #tpu.memory_space<vmem>>, vector<24x24xf32>
    %cst_44 = arith.constant dense<0.000000e+00> : vector<40x24xf32>
    %93 = tpu.matmul %91, %92, %cst_44 {dimension_numbers = #tpu.dot_dimension_numbers<[1], [0], [0], [1], [0, 0, 1, 1], [], []>} : vector<40x24xf32>, vector<24x24xf32>, vector<40x24xf32> -> vector<40x24xf32>
    %c0_45 = arith.constant 0 : index
    %c0_46 = arith.constant 0 : index
    %94 = vector.load %arg10[%c0_45, %c0_46] : memref<24x24xf32, #tpu.memory_space<vmem>>, vector<24x24xf32>
    %cst_47 = arith.constant dense<0.000000e+00> : vector<16x24xf32>
    %95 = tpu.matmul %87, %94, %cst_47 {dimension_numbers = #tpu.dot_dimension_numbers<[1], [0], [0], [1], [0, 0, 1, 1], [], []>} : vector<16x24xf32>, vector<24x24xf32>, vector<16x24xf32> -> vector<16x24xf32>
    %c0_48 = arith.constant 0 : index
    %c0_49 = arith.constant 0 : index
    %96 = vector.load %arg11[%c0_48, %c0_49] : memref<24x24xf32, #tpu.memory_space<vmem>>, vector<24x24xf32>
    %cst_50 = arith.constant dense<0.000000e+00> : vector<16x24xf32>
    %97 = tpu.matmul %87, %96, %cst_50 {dimension_numbers = #tpu.dot_dimension_numbers<[1], [0], [0], [1], [0, 0, 1, 1], [], []>} : vector<16x24xf32>, vector<24x24xf32>, vector<16x24xf32> -> vector<16x24xf32>
    %98 = tpu.concatenate %93, %95, %97 in 0 : vector<40x24xf32>, vector<16x24xf32>, vector<16x24xf32> -> vector<72x24xf32>
    %c0_51 = arith.constant 0 : index
    %c0_52 = arith.constant 0 : index
    %99 = vector.load %arg12[%c0_51, %c0_52] : memref<72x72xf32, #tpu.memory_space<vmem>>, vector<72x72xf32>
    %cst_53 = arith.constant dense<0.000000e+00> : vector<72x24xf32>
    %100 = tpu.matmul %99, %98, %cst_53 {dimension_numbers = #tpu.dot_dimension_numbers<[1], [0], [0], [1], [0, 0, 1, 1], [], []>} : vector<72x72xf32>, vector<72x24xf32>, vector<72x24xf32> -> vector<72x24xf32>
    %101 = vector.extract_strided_slice %100 {offsets = [0, 0], sizes = [8, 24], strides = [1, 1]} : vector<72x24xf32> to vector<8x24xf32>
    %102 = vector.extract_strided_slice %100 {offsets = [8, 0], sizes = [8, 24], strides = [1, 1]} : vector<72x24xf32> to vector<8x24xf32>
    %103 = vector.extract_strided_slice %100 {offsets = [16, 0], sizes = [8, 24], strides = [1, 1]} : vector<72x24xf32> to vector<8x24xf32>
    %104 = vector.extract_strided_slice %100 {offsets = [24, 0], sizes = [8, 24], strides = [1, 1]} : vector<72x24xf32> to vector<8x24xf32>
    %105 = vector.extract_strided_slice %100 {offsets = [32, 0], sizes = [8, 24], strides = [1, 1]} : vector<72x24xf32> to vector<8x24xf32>
    %106 = vector.extract_strided_slice %100 {offsets = [40, 0], sizes = [8, 24], strides = [1, 1]} : vector<72x24xf32> to vector<8x24xf32>
    %107 = vector.extract_strided_slice %100 {offsets = [48, 0], sizes = [8, 24], strides = [1, 1]} : vector<72x24xf32> to vector<8x24xf32>
    %108 = vector.extract_strided_slice %100 {offsets = [56, 0], sizes = [8, 24], strides = [1, 1]} : vector<72x24xf32> to vector<8x24xf32>
    %109 = vector.extract_strided_slice %100 {offsets = [64, 0], sizes = [8, 24], strides = [1, 1]} : vector<72x24xf32> to vector<8x24xf32>
    %110 = arith.mulf %101, %101 : vector<8x24xf32>
    %111 = arith.mulf %102, %102 : vector<8x24xf32>
    %112 = arith.mulf %101, %102 : vector<8x24xf32>
    %113 = arith.subf %103, %110 : vector<8x24xf32>
    %114 = arith.subf %104, %111 : vector<8x24xf32>
    %115 = arith.subf %105, %112 : vector<8x24xf32>
    %cst_54 = arith.constant 2.000000e+00 : f32
    %116 = vector.broadcast %cst_54 : f32 to vector<8x24xf32>
    %117 = arith.mulf %116, %112 : vector<8x24xf32>
    %cst_55 = arith.constant 9.99999974E-5 : f32
    %118 = vector.broadcast %cst_55 : f32 to vector<8x24xf32>
    %119 = arith.addf %117, %118 : vector<8x24xf32>
    %cst_56 = arith.constant 2.000000e+00 : f32
    %120 = vector.broadcast %cst_56 : f32 to vector<8x24xf32>
    %121 = arith.mulf %120, %115 : vector<8x24xf32>
    %cst_57 = arith.constant 8.99999984E-4 : f32
    %122 = vector.broadcast %cst_57 : f32 to vector<8x24xf32>
    %123 = arith.addf %121, %122 : vector<8x24xf32>
    %124 = arith.mulf %119, %123 : vector<8x24xf32>
    %125 = arith.addf %110, %111 : vector<8x24xf32>
    %cst_58 = arith.constant 9.99999974E-5 : f32
    %126 = vector.broadcast %cst_58 : f32 to vector<8x24xf32>
    %127 = arith.addf %125, %126 : vector<8x24xf32>
    %128 = arith.addf %113, %114 : vector<8x24xf32>
    %cst_59 = arith.constant 8.99999984E-4 : f32
    %129 = vector.broadcast %cst_59 : f32 to vector<8x24xf32>
    %130 = arith.addf %128, %129 : vector<8x24xf32>
    %131 = arith.mulf %127, %130 : vector<8x24xf32>
    %132 = arith.divf %124, %131 : vector<8x24xf32>
    %133 = arith.mulf %106, %106 : vector<8x24xf32>
    %134 = arith.mulf %108, %108 : vector<8x24xf32>
    %135 = arith.addf %133, %134 : vector<8x24xf32>
    %cst_60 = arith.constant 9.99999993E-9 : f32
    %136 = vector.broadcast %cst_60 : f32 to vector<8x24xf32>
    %137 = arith.addf %135, %136 : vector<8x24xf32>
    %138 = arith.mulf %107, %107 : vector<8x24xf32>
    %139 = arith.mulf %109, %109 : vector<8x24xf32>
    %140 = arith.addf %138, %139 : vector<8x24xf32>
    %cst_61 = arith.constant 9.99999993E-9 : f32
    %141 = vector.broadcast %cst_61 : f32 to vector<8x24xf32>
    %142 = arith.addf %140, %141 : vector<8x24xf32>
    %143 = arith.mulf %137, %142 : vector<8x24xf32>
    %144 = math.sqrt %143 : vector<8x24xf32>
    %cst_62 = arith.constant 2.000000e+00 : f32
    %145 = vector.broadcast %cst_62 : f32 to vector<8x24xf32>
    %146 = arith.mulf %145, %144 : vector<8x24xf32>
    %cst_63 = arith.constant 8.99999984E-4 : f32
    %147 = vector.broadcast %cst_63 : f32 to vector<8x24xf32>
    %148 = arith.addf %146, %147 : vector<8x24xf32>
    %149 = arith.addf %137, %142 : vector<8x24xf32>
    %cst_64 = arith.constant 8.99999984E-4 : f32
    %150 = vector.broadcast %cst_64 : f32 to vector<8x24xf32>
    %151 = arith.addf %149, %150 : vector<8x24xf32>
    %152 = arith.divf %148, %151 : vector<8x24xf32>
    %cst_65 = arith.constant 8.500000e-01 : f32
    %153 = vector.broadcast %cst_65 : f32 to vector<8x24xf32>
    %154 = arith.mulf %153, %132 : vector<8x24xf32>
    %cst_66 = arith.constant 1.500000e-01 : f32
    %155 = vector.broadcast %cst_66 : f32 to vector<8x24xf32>
    %156 = arith.mulf %155, %152 : vector<8x24xf32>
    %157 = arith.addf %154, %156 : vector<8x24xf32>
    %c0_67 = arith.constant 0 : index
    %c0_68 = arith.constant 0 : index
    %158 = vector.load %arg13[%c0_67, %c0_68] : memref<8x8xf32, #tpu.memory_space<vmem>>, vector<8x8xf32>
    %cst_69 = arith.constant dense<0.000000e+00> : vector<8x24xf32>
    %159 = tpu.matmul %158, %157, %cst_69 {dimension_numbers = #tpu.dot_dimension_numbers<[1], [0], [0], [1], [0, 0, 1, 1], [], []>} : vector<8x8xf32>, vector<8x24xf32>, vector<8x24xf32> -> vector<8x24xf32>
    %c0_70 = arith.constant 0 : index
    %c0_71 = arith.constant 0 : index
    %160 = vector.load %arg14[%c0_70, %c0_71] : memref<24x128xf32, #tpu.memory_space<vmem>>, vector<24x128xf32>
    %cst_72 = arith.constant dense<0.000000e+00> : vector<8x128xf32>
    %161 = tpu.matmul %159, %160, %cst_72 {dimension_numbers = #tpu.dot_dimension_numbers<[1], [0], [0], [1], [0, 0, 1, 1], [], []>} : vector<8x24xf32>, vector<24x128xf32>, vector<8x128xf32> -> vector<8x128xf32>
    %162 = arith.addf %80, %161 : vector<8x128xf32>
    %c0_73 = arith.constant 0 : index
    %c0_74 = arith.constant 0 : index
    %163 = vector.load %arg36[%c0_73, %c0_74] : memref<16x16xf32, #tpu.memory_space<vmem>>, vector<16x16xf32>
    %c0_75 = arith.constant 0 : index
    %c0_76 = arith.constant 0 : index
    %164 = vector.load %arg35[%c0_75, %c0_76] : memref<24x24xf32, #tpu.memory_space<vmem>>, vector<24x24xf32>
    %cst_77 = arith.constant dense<0.000000e+00> : vector<16x24xf32>
    %165 = tpu.matmul %87, %164, %cst_77 {dimension_numbers = #tpu.dot_dimension_numbers<[1], [0], [0], [1], [0, 0, 1, 1], [], []>} : vector<16x24xf32>, vector<24x24xf32>, vector<16x24xf32> -> vector<16x24xf32>
    %cst_78 = arith.constant dense<0.000000e+00> : vector<16x24xf32>
    %166 = tpu.matmul %163, %165, %cst_78 {dimension_numbers = #tpu.dot_dimension_numbers<[1], [0], [0], [1], [0, 0, 1, 1], [], []>} : vector<16x16xf32>, vector<16x24xf32>, vector<16x24xf32> -> vector<16x24xf32>
    %167 = vector.extract_strided_slice %166 {offsets = [0, 0], sizes = [8, 24], strides = [1, 1]} : vector<16x24xf32> to vector<8x24xf32>
    %168 = vector.extract_strided_slice %166 {offsets = [8, 0], sizes = [8, 24], strides = [1, 1]} : vector<16x24xf32> to vector<8x24xf32>
    %169 = tpu.concatenate %167, %168 in 0 : vector<8x24xf32>, vector<8x24xf32> -> vector<16x24xf32>
    %170 = arith.mulf %167, %167 : vector<8x24xf32>
    %171 = arith.mulf %168, %168 : vector<8x24xf32>
    %172 = arith.mulf %167, %168 : vector<8x24xf32>
    %173 = tpu.concatenate %167, %168, %170, %171, %172 in 0 : vector<8x24xf32>, vector<8x24xf32>, vector<8x24xf32>, vector<8x24xf32>, vector<8x24xf32> -> vector<40x24xf32>
    %c0_79 = arith.constant 0 : index
    %c0_80 = arith.constant 0 : index
    %174 = vector.load %arg15[%c0_79, %c0_80] : memref<24x24xf32, #tpu.memory_space<vmem>>, vector<24x24xf32>
    %cst_81 = arith.constant dense<0.000000e+00> : vector<40x24xf32>
    %175 = tpu.matmul %173, %174, %cst_81 {dimension_numbers = #tpu.dot_dimension_numbers<[1], [0], [0], [1], [0, 0, 1, 1], [], []>} : vector<40x24xf32>, vector<24x24xf32>, vector<40x24xf32> -> vector<40x24xf32>
    %c0_82 = arith.constant 0 : index
    %c0_83 = arith.constant 0 : index
    %176 = vector.load %arg16[%c0_82, %c0_83] : memref<24x24xf32, #tpu.memory_space<vmem>>, vector<24x24xf32>
    %cst_84 = arith.constant dense<0.000000e+00> : vector<16x24xf32>
    %177 = tpu.matmul %169, %176, %cst_84 {dimension_numbers = #tpu.dot_dimension_numbers<[1], [0], [0], [1], [0, 0, 1, 1], [], []>} : vector<16x24xf32>, vector<24x24xf32>, vector<16x24xf32> -> vector<16x24xf32>
    %c0_85 = arith.constant 0 : index
    %c0_86 = arith.constant 0 : index
    %178 = vector.load %arg17[%c0_85, %c0_86] : memref<24x24xf32, #tpu.memory_space<vmem>>, vector<24x24xf32>
    %cst_87 = arith.constant dense<0.000000e+00> : vector<16x24xf32>
    %179 = tpu.matmul %169, %178, %cst_87 {dimension_numbers = #tpu.dot_dimension_numbers<[1], [0], [0], [1], [0, 0, 1, 1], [], []>} : vector<16x24xf32>, vector<24x24xf32>, vector<16x24xf32> -> vector<16x24xf32>
    %180 = tpu.concatenate %175, %177, %179 in 0 : vector<40x24xf32>, vector<16x24xf32>, vector<16x24xf32> -> vector<72x24xf32>
    %c0_88 = arith.constant 0 : index
    %c0_89 = arith.constant 0 : index
    %181 = vector.load %arg18[%c0_88, %c0_89] : memref<72x72xf32, #tpu.memory_space<vmem>>, vector<72x72xf32>
    %cst_90 = arith.constant dense<0.000000e+00> : vector<72x24xf32>
    %182 = tpu.matmul %181, %180, %cst_90 {dimension_numbers = #tpu.dot_dimension_numbers<[1], [0], [0], [1], [0, 0, 1, 1], [], []>} : vector<72x72xf32>, vector<72x24xf32>, vector<72x24xf32> -> vector<72x24xf32>
    %183 = vector.extract_strided_slice %182 {offsets = [0, 0], sizes = [8, 24], strides = [1, 1]} : vector<72x24xf32> to vector<8x24xf32>
    %184 = vector.extract_strided_slice %182 {offsets = [8, 0], sizes = [8, 24], strides = [1, 1]} : vector<72x24xf32> to vector<8x24xf32>
    %185 = vector.extract_strided_slice %182 {offsets = [16, 0], sizes = [8, 24], strides = [1, 1]} : vector<72x24xf32> to vector<8x24xf32>
    %186 = vector.extract_strided_slice %182 {offsets = [24, 0], sizes = [8, 24], strides = [1, 1]} : vector<72x24xf32> to vector<8x24xf32>
    %187 = vector.extract_strided_slice %182 {offsets = [32, 0], sizes = [8, 24], strides = [1, 1]} : vector<72x24xf32> to vector<8x24xf32>
    %188 = vector.extract_strided_slice %182 {offsets = [40, 0], sizes = [8, 24], strides = [1, 1]} : vector<72x24xf32> to vector<8x24xf32>
    %189 = vector.extract_strided_slice %182 {offsets = [48, 0], sizes = [8, 24], strides = [1, 1]} : vector<72x24xf32> to vector<8x24xf32>
    %190 = vector.extract_strided_slice %182 {offsets = [56, 0], sizes = [8, 24], strides = [1, 1]} : vector<72x24xf32> to vector<8x24xf32>
    %191 = vector.extract_strided_slice %182 {offsets = [64, 0], sizes = [8, 24], strides = [1, 1]} : vector<72x24xf32> to vector<8x24xf32>
    %192 = arith.mulf %183, %183 : vector<8x24xf32>
    %193 = arith.mulf %184, %184 : vector<8x24xf32>
    %194 = arith.mulf %183, %184 : vector<8x24xf32>
    %195 = arith.subf %185, %192 : vector<8x24xf32>
    %196 = arith.subf %186, %193 : vector<8x24xf32>
    %197 = arith.subf %187, %194 : vector<8x24xf32>
    %cst_91 = arith.constant 2.000000e+00 : f32
    %198 = vector.broadcast %cst_91 : f32 to vector<8x24xf32>
    %199 = arith.mulf %198, %194 : vector<8x24xf32>
    %cst_92 = arith.constant 9.99999974E-5 : f32
    %200 = vector.broadcast %cst_92 : f32 to vector<8x24xf32>
    %201 = arith.addf %199, %200 : vector<8x24xf32>
    %cst_93 = arith.constant 2.000000e+00 : f32
    %202 = vector.broadcast %cst_93 : f32 to vector<8x24xf32>
    %203 = arith.mulf %202, %197 : vector<8x24xf32>
    %cst_94 = arith.constant 8.99999984E-4 : f32
    %204 = vector.broadcast %cst_94 : f32 to vector<8x24xf32>
    %205 = arith.addf %203, %204 : vector<8x24xf32>
    %206 = arith.mulf %201, %205 : vector<8x24xf32>
    %207 = arith.addf %192, %193 : vector<8x24xf32>
    %cst_95 = arith.constant 9.99999974E-5 : f32
    %208 = vector.broadcast %cst_95 : f32 to vector<8x24xf32>
    %209 = arith.addf %207, %208 : vector<8x24xf32>
    %210 = arith.addf %195, %196 : vector<8x24xf32>
    %cst_96 = arith.constant 8.99999984E-4 : f32
    %211 = vector.broadcast %cst_96 : f32 to vector<8x24xf32>
    %212 = arith.addf %210, %211 : vector<8x24xf32>
    %213 = arith.mulf %209, %212 : vector<8x24xf32>
    %214 = arith.divf %206, %213 : vector<8x24xf32>
    %215 = arith.mulf %188, %188 : vector<8x24xf32>
    %216 = arith.mulf %190, %190 : vector<8x24xf32>
    %217 = arith.addf %215, %216 : vector<8x24xf32>
    %cst_97 = arith.constant 9.99999993E-9 : f32
    %218 = vector.broadcast %cst_97 : f32 to vector<8x24xf32>
    %219 = arith.addf %217, %218 : vector<8x24xf32>
    %220 = arith.mulf %189, %189 : vector<8x24xf32>
    %221 = arith.mulf %191, %191 : vector<8x24xf32>
    %222 = arith.addf %220, %221 : vector<8x24xf32>
    %cst_98 = arith.constant 9.99999993E-9 : f32
    %223 = vector.broadcast %cst_98 : f32 to vector<8x24xf32>
    %224 = arith.addf %222, %223 : vector<8x24xf32>
    %225 = arith.mulf %219, %224 : vector<8x24xf32>
    %226 = math.sqrt %225 : vector<8x24xf32>
    %cst_99 = arith.constant 2.000000e+00 : f32
    %227 = vector.broadcast %cst_99 : f32 to vector<8x24xf32>
    %228 = arith.mulf %227, %226 : vector<8x24xf32>
    %cst_100 = arith.constant 8.99999984E-4 : f32
    %229 = vector.broadcast %cst_100 : f32 to vector<8x24xf32>
    %230 = arith.addf %228, %229 : vector<8x24xf32>
    %231 = arith.addf %219, %224 : vector<8x24xf32>
    %cst_101 = arith.constant 8.99999984E-4 : f32
    %232 = vector.broadcast %cst_101 : f32 to vector<8x24xf32>
    %233 = arith.addf %231, %232 : vector<8x24xf32>
    %234 = arith.divf %230, %233 : vector<8x24xf32>
    %cst_102 = arith.constant 8.500000e-01 : f32
    %235 = vector.broadcast %cst_102 : f32 to vector<8x24xf32>
    %236 = arith.mulf %235, %214 : vector<8x24xf32>
    %cst_103 = arith.constant 1.500000e-01 : f32
    %237 = vector.broadcast %cst_103 : f32 to vector<8x24xf32>
    %238 = arith.mulf %237, %234 : vector<8x24xf32>
    %239 = arith.addf %236, %238 : vector<8x24xf32>
    %c0_104 = arith.constant 0 : index
    %c0_105 = arith.constant 0 : index
    %240 = vector.load %arg19[%c0_104, %c0_105] : memref<8x8xf32, #tpu.memory_space<vmem>>, vector<8x8xf32>
    %cst_106 = arith.constant dense<0.000000e+00> : vector<8x24xf32>
    %241 = tpu.matmul %240, %239, %cst_106 {dimension_numbers = #tpu.dot_dimension_numbers<[1], [0], [0], [1], [0, 0, 1, 1], [], []>} : vector<8x8xf32>, vector<8x24xf32>, vector<8x24xf32> -> vector<8x24xf32>
    %c0_107 = arith.constant 0 : index
    %c0_108 = arith.constant 0 : index
    %242 = vector.load %arg20[%c0_107, %c0_108] : memref<24x128xf32, #tpu.memory_space<vmem>>, vector<24x128xf32>
    %cst_109 = arith.constant dense<0.000000e+00> : vector<8x128xf32>
    %243 = tpu.matmul %241, %242, %cst_109 {dimension_numbers = #tpu.dot_dimension_numbers<[1], [0], [0], [1], [0, 0, 1, 1], [], []>} : vector<8x24xf32>, vector<24x128xf32>, vector<8x128xf32> -> vector<8x128xf32>
    %244 = arith.addf %162, %243 : vector<8x128xf32>
    %c0_110 = arith.constant 0 : index
    %c0_111 = arith.constant 0 : index
    %245 = vector.load %arg38[%c0_110, %c0_111] : memref<16x16xf32, #tpu.memory_space<vmem>>, vector<16x16xf32>
    %c0_112 = arith.constant 0 : index
    %c0_113 = arith.constant 0 : index
    %246 = vector.load %arg37[%c0_112, %c0_113] : memref<24x24xf32, #tpu.memory_space<vmem>>, vector<24x24xf32>
    %cst_114 = arith.constant dense<0.000000e+00> : vector<16x24xf32>
    %247 = tpu.matmul %169, %246, %cst_114 {dimension_numbers = #tpu.dot_dimension_numbers<[1], [0], [0], [1], [0, 0, 1, 1], [], []>} : vector<16x24xf32>, vector<24x24xf32>, vector<16x24xf32> -> vector<16x24xf32>
    %cst_115 = arith.constant dense<0.000000e+00> : vector<16x24xf32>
    %248 = tpu.matmul %245, %247, %cst_115 {dimension_numbers = #tpu.dot_dimension_numbers<[1], [0], [0], [1], [0, 0, 1, 1], [], []>} : vector<16x16xf32>, vector<16x24xf32>, vector<16x24xf32> -> vector<16x24xf32>
    %249 = vector.extract_strided_slice %248 {offsets = [0, 0], sizes = [8, 24], strides = [1, 1]} : vector<16x24xf32> to vector<8x24xf32>
    %250 = vector.extract_strided_slice %248 {offsets = [8, 0], sizes = [8, 24], strides = [1, 1]} : vector<16x24xf32> to vector<8x24xf32>
    %251 = tpu.concatenate %249, %250 in 0 : vector<8x24xf32>, vector<8x24xf32> -> vector<16x24xf32>
    %252 = arith.mulf %249, %249 : vector<8x24xf32>
    %253 = arith.mulf %250, %250 : vector<8x24xf32>
    %254 = arith.mulf %249, %250 : vector<8x24xf32>
    %255 = tpu.concatenate %249, %250, %252, %253, %254 in 0 : vector<8x24xf32>, vector<8x24xf32>, vector<8x24xf32>, vector<8x24xf32>, vector<8x24xf32> -> vector<40x24xf32>
    %c0_116 = arith.constant 0 : index
    %c0_117 = arith.constant 0 : index
    %256 = vector.load %arg21[%c0_116, %c0_117] : memref<24x24xf32, #tpu.memory_space<vmem>>, vector<24x24xf32>
    %cst_118 = arith.constant dense<0.000000e+00> : vector<40x24xf32>
    %257 = tpu.matmul %255, %256, %cst_118 {dimension_numbers = #tpu.dot_dimension_numbers<[1], [0], [0], [1], [0, 0, 1, 1], [], []>} : vector<40x24xf32>, vector<24x24xf32>, vector<40x24xf32> -> vector<40x24xf32>
    %c0_119 = arith.constant 0 : index
    %c0_120 = arith.constant 0 : index
    %258 = vector.load %arg22[%c0_119, %c0_120] : memref<24x24xf32, #tpu.memory_space<vmem>>, vector<24x24xf32>
    %cst_121 = arith.constant dense<0.000000e+00> : vector<16x24xf32>
    %259 = tpu.matmul %251, %258, %cst_121 {dimension_numbers = #tpu.dot_dimension_numbers<[1], [0], [0], [1], [0, 0, 1, 1], [], []>} : vector<16x24xf32>, vector<24x24xf32>, vector<16x24xf32> -> vector<16x24xf32>
    %c0_122 = arith.constant 0 : index
    %c0_123 = arith.constant 0 : index
    %260 = vector.load %arg23[%c0_122, %c0_123] : memref<24x24xf32, #tpu.memory_space<vmem>>, vector<24x24xf32>
    %cst_124 = arith.constant dense<0.000000e+00> : vector<16x24xf32>
    %261 = tpu.matmul %251, %260, %cst_124 {dimension_numbers = #tpu.dot_dimension_numbers<[1], [0], [0], [1], [0, 0, 1, 1], [], []>} : vector<16x24xf32>, vector<24x24xf32>, vector<16x24xf32> -> vector<16x24xf32>
    %262 = tpu.concatenate %257, %259, %261 in 0 : vector<40x24xf32>, vector<16x24xf32>, vector<16x24xf32> -> vector<72x24xf32>
    %c0_125 = arith.constant 0 : index
    %c0_126 = arith.constant 0 : index
    %263 = vector.load %arg24[%c0_125, %c0_126] : memref<72x72xf32, #tpu.memory_space<vmem>>, vector<72x72xf32>
    %cst_127 = arith.constant dense<0.000000e+00> : vector<72x24xf32>
    %264 = tpu.matmul %263, %262, %cst_127 {dimension_numbers = #tpu.dot_dimension_numbers<[1], [0], [0], [1], [0, 0, 1, 1], [], []>} : vector<72x72xf32>, vector<72x24xf32>, vector<72x24xf32> -> vector<72x24xf32>
    %265 = vector.extract_strided_slice %264 {offsets = [0, 0], sizes = [8, 24], strides = [1, 1]} : vector<72x24xf32> to vector<8x24xf32>
    %266 = vector.extract_strided_slice %264 {offsets = [8, 0], sizes = [8, 24], strides = [1, 1]} : vector<72x24xf32> to vector<8x24xf32>
    %267 = vector.extract_strided_slice %264 {offsets = [16, 0], sizes = [8, 24], strides = [1, 1]} : vector<72x24xf32> to vector<8x24xf32>
    %268 = vector.extract_strided_slice %264 {offsets = [24, 0], sizes = [8, 24], strides = [1, 1]} : vector<72x24xf32> to vector<8x24xf32>
    %269 = vector.extract_strided_slice %264 {offsets = [32, 0], sizes = [8, 24], strides = [1, 1]} : vector<72x24xf32> to vector<8x24xf32>
    %270 = vector.extract_strided_slice %264 {offsets = [40, 0], sizes = [8, 24], strides = [1, 1]} : vector<72x24xf32> to vector<8x24xf32>
    %271 = vector.extract_strided_slice %264 {offsets = [48, 0], sizes = [8, 24], strides = [1, 1]} : vector<72x24xf32> to vector<8x24xf32>
    %272 = vector.extract_strided_slice %264 {offsets = [56, 0], sizes = [8, 24], strides = [1, 1]} : vector<72x24xf32> to vector<8x24xf32>
    %273 = vector.extract_strided_slice %264 {offsets = [64, 0], sizes = [8, 24], strides = [1, 1]} : vector<72x24xf32> to vector<8x24xf32>
    %274 = arith.mulf %265, %265 : vector<8x24xf32>
    %275 = arith.mulf %266, %266 : vector<8x24xf32>
    %276 = arith.mulf %265, %266 : vector<8x24xf32>
    %277 = arith.subf %267, %274 : vector<8x24xf32>
    %278 = arith.subf %268, %275 : vector<8x24xf32>
    %279 = arith.subf %269, %276 : vector<8x24xf32>
    %cst_128 = arith.constant 2.000000e+00 : f32
    %280 = vector.broadcast %cst_128 : f32 to vector<8x24xf32>
    %281 = arith.mulf %280, %276 : vector<8x24xf32>
    %cst_129 = arith.constant 9.99999974E-5 : f32
    %282 = vector.broadcast %cst_129 : f32 to vector<8x24xf32>
    %283 = arith.addf %281, %282 : vector<8x24xf32>
    %cst_130 = arith.constant 2.000000e+00 : f32
    %284 = vector.broadcast %cst_130 : f32 to vector<8x24xf32>
    %285 = arith.mulf %284, %279 : vector<8x24xf32>
    %cst_131 = arith.constant 8.99999984E-4 : f32
    %286 = vector.broadcast %cst_131 : f32 to vector<8x24xf32>
    %287 = arith.addf %285, %286 : vector<8x24xf32>
    %288 = arith.mulf %283, %287 : vector<8x24xf32>
    %289 = arith.addf %274, %275 : vector<8x24xf32>
    %cst_132 = arith.constant 9.99999974E-5 : f32
    %290 = vector.broadcast %cst_132 : f32 to vector<8x24xf32>
    %291 = arith.addf %289, %290 : vector<8x24xf32>
    %292 = arith.addf %277, %278 : vector<8x24xf32>
    %cst_133 = arith.constant 8.99999984E-4 : f32
    %293 = vector.broadcast %cst_133 : f32 to vector<8x24xf32>
    %294 = arith.addf %292, %293 : vector<8x24xf32>
    %295 = arith.mulf %291, %294 : vector<8x24xf32>
    %296 = arith.divf %288, %295 : vector<8x24xf32>
    %297 = arith.mulf %270, %270 : vector<8x24xf32>
    %298 = arith.mulf %272, %272 : vector<8x24xf32>
    %299 = arith.addf %297, %298 : vector<8x24xf32>
    %cst_134 = arith.constant 9.99999993E-9 : f32
    %300 = vector.broadcast %cst_134 : f32 to vector<8x24xf32>
    %301 = arith.addf %299, %300 : vector<8x24xf32>
    %302 = arith.mulf %271, %271 : vector<8x24xf32>
    %303 = arith.mulf %273, %273 : vector<8x24xf32>
    %304 = arith.addf %302, %303 : vector<8x24xf32>
    %cst_135 = arith.constant 9.99999993E-9 : f32
    %305 = vector.broadcast %cst_135 : f32 to vector<8x24xf32>
    %306 = arith.addf %304, %305 : vector<8x24xf32>
    %307 = arith.mulf %301, %306 : vector<8x24xf32>
    %308 = math.sqrt %307 : vector<8x24xf32>
    %cst_136 = arith.constant 2.000000e+00 : f32
    %309 = vector.broadcast %cst_136 : f32 to vector<8x24xf32>
    %310 = arith.mulf %309, %308 : vector<8x24xf32>
    %cst_137 = arith.constant 8.99999984E-4 : f32
    %311 = vector.broadcast %cst_137 : f32 to vector<8x24xf32>
    %312 = arith.addf %310, %311 : vector<8x24xf32>
    %313 = arith.addf %301, %306 : vector<8x24xf32>
    %cst_138 = arith.constant 8.99999984E-4 : f32
    %314 = vector.broadcast %cst_138 : f32 to vector<8x24xf32>
    %315 = arith.addf %313, %314 : vector<8x24xf32>
    %316 = arith.divf %312, %315 : vector<8x24xf32>
    %cst_139 = arith.constant 8.500000e-01 : f32
    %317 = vector.broadcast %cst_139 : f32 to vector<8x24xf32>
    %318 = arith.mulf %317, %296 : vector<8x24xf32>
    %cst_140 = arith.constant 1.500000e-01 : f32
    %319 = vector.broadcast %cst_140 : f32 to vector<8x24xf32>
    %320 = arith.mulf %319, %316 : vector<8x24xf32>
    %321 = arith.addf %318, %320 : vector<8x24xf32>
    %c0_141 = arith.constant 0 : index
    %c0_142 = arith.constant 0 : index
    %322 = vector.load %arg25[%c0_141, %c0_142] : memref<8x8xf32, #tpu.memory_space<vmem>>, vector<8x8xf32>
    %cst_143 = arith.constant dense<0.000000e+00> : vector<8x24xf32>
    %323 = tpu.matmul %322, %321, %cst_143 {dimension_numbers = #tpu.dot_dimension_numbers<[1], [0], [0], [1], [0, 0, 1, 1], [], []>} : vector<8x8xf32>, vector<8x24xf32>, vector<8x24xf32> -> vector<8x24xf32>
    %c0_144 = arith.constant 0 : index
    %c0_145 = arith.constant 0 : index
    %324 = vector.load %arg26[%c0_144, %c0_145] : memref<24x128xf32, #tpu.memory_space<vmem>>, vector<24x128xf32>
    %cst_146 = arith.constant dense<0.000000e+00> : vector<8x128xf32>
    %325 = tpu.matmul %323, %324, %cst_146 {dimension_numbers = #tpu.dot_dimension_numbers<[1], [0], [0], [1], [0, 0, 1, 1], [], []>} : vector<8x24xf32>, vector<24x128xf32>, vector<8x128xf32> -> vector<8x128xf32>
    %326 = arith.addf %244, %325 : vector<8x128xf32>
    %c0_147 = arith.constant 0 : index
    %c0_148 = arith.constant 0 : index
    %327 = vector.load %arg40[%c0_147, %c0_148] : memref<16x16xf32, #tpu.memory_space<vmem>>, vector<16x16xf32>
    %c0_149 = arith.constant 0 : index
    %c0_150 = arith.constant 0 : index
    %328 = vector.load %arg39[%c0_149, %c0_150] : memref<24x24xf32, #tpu.memory_space<vmem>>, vector<24x24xf32>
    %cst_151 = arith.constant dense<0.000000e+00> : vector<16x24xf32>
    %329 = tpu.matmul %251, %328, %cst_151 {dimension_numbers = #tpu.dot_dimension_numbers<[1], [0], [0], [1], [0, 0, 1, 1], [], []>} : vector<16x24xf32>, vector<24x24xf32>, vector<16x24xf32> -> vector<16x24xf32>
    %cst_152 = arith.constant dense<0.000000e+00> : vector<16x24xf32>
    %330 = tpu.matmul %327, %329, %cst_152 {dimension_numbers = #tpu.dot_dimension_numbers<[1], [0], [0], [1], [0, 0, 1, 1], [], []>} : vector<16x16xf32>, vector<16x24xf32>, vector<16x24xf32> -> vector<16x24xf32>
    %331 = vector.extract_strided_slice %330 {offsets = [0, 0], sizes = [8, 24], strides = [1, 1]} : vector<16x24xf32> to vector<8x24xf32>
    %332 = vector.extract_strided_slice %330 {offsets = [8, 0], sizes = [8, 24], strides = [1, 1]} : vector<16x24xf32> to vector<8x24xf32>
    %333 = tpu.concatenate %331, %332 in 0 : vector<8x24xf32>, vector<8x24xf32> -> vector<16x24xf32>
    %334 = arith.mulf %331, %331 : vector<8x24xf32>
    %335 = arith.mulf %332, %332 : vector<8x24xf32>
    %336 = arith.mulf %331, %332 : vector<8x24xf32>
    %337 = tpu.concatenate %331, %332, %334, %335, %336 in 0 : vector<8x24xf32>, vector<8x24xf32>, vector<8x24xf32>, vector<8x24xf32>, vector<8x24xf32> -> vector<40x24xf32>
    %c0_153 = arith.constant 0 : index
    %c0_154 = arith.constant 0 : index
    %338 = vector.load %arg27[%c0_153, %c0_154] : memref<24x24xf32, #tpu.memory_space<vmem>>, vector<24x24xf32>
    %cst_155 = arith.constant dense<0.000000e+00> : vector<40x24xf32>
    %339 = tpu.matmul %337, %338, %cst_155 {dimension_numbers = #tpu.dot_dimension_numbers<[1], [0], [0], [1], [0, 0, 1, 1], [], []>} : vector<40x24xf32>, vector<24x24xf32>, vector<40x24xf32> -> vector<40x24xf32>
    %c0_156 = arith.constant 0 : index
    %c0_157 = arith.constant 0 : index
    %340 = vector.load %arg28[%c0_156, %c0_157] : memref<24x24xf32, #tpu.memory_space<vmem>>, vector<24x24xf32>
    %cst_158 = arith.constant dense<0.000000e+00> : vector<16x24xf32>
    %341 = tpu.matmul %333, %340, %cst_158 {dimension_numbers = #tpu.dot_dimension_numbers<[1], [0], [0], [1], [0, 0, 1, 1], [], []>} : vector<16x24xf32>, vector<24x24xf32>, vector<16x24xf32> -> vector<16x24xf32>
    %c0_159 = arith.constant 0 : index
    %c0_160 = arith.constant 0 : index
    %342 = vector.load %arg29[%c0_159, %c0_160] : memref<24x24xf32, #tpu.memory_space<vmem>>, vector<24x24xf32>
    %cst_161 = arith.constant dense<0.000000e+00> : vector<16x24xf32>
    %343 = tpu.matmul %333, %342, %cst_161 {dimension_numbers = #tpu.dot_dimension_numbers<[1], [0], [0], [1], [0, 0, 1, 1], [], []>} : vector<16x24xf32>, vector<24x24xf32>, vector<16x24xf32> -> vector<16x24xf32>
    %344 = tpu.concatenate %339, %341, %343 in 0 : vector<40x24xf32>, vector<16x24xf32>, vector<16x24xf32> -> vector<72x24xf32>
    %c0_162 = arith.constant 0 : index
    %c0_163 = arith.constant 0 : index
    %345 = vector.load %arg30[%c0_162, %c0_163] : memref<72x72xf32, #tpu.memory_space<vmem>>, vector<72x72xf32>
    %cst_164 = arith.constant dense<0.000000e+00> : vector<72x24xf32>
    %346 = tpu.matmul %345, %344, %cst_164 {dimension_numbers = #tpu.dot_dimension_numbers<[1], [0], [0], [1], [0, 0, 1, 1], [], []>} : vector<72x72xf32>, vector<72x24xf32>, vector<72x24xf32> -> vector<72x24xf32>
    %347 = vector.extract_strided_slice %346 {offsets = [0, 0], sizes = [8, 24], strides = [1, 1]} : vector<72x24xf32> to vector<8x24xf32>
    %348 = vector.extract_strided_slice %346 {offsets = [8, 0], sizes = [8, 24], strides = [1, 1]} : vector<72x24xf32> to vector<8x24xf32>
    %349 = vector.extract_strided_slice %346 {offsets = [16, 0], sizes = [8, 24], strides = [1, 1]} : vector<72x24xf32> to vector<8x24xf32>
    %350 = vector.extract_strided_slice %346 {offsets = [24, 0], sizes = [8, 24], strides = [1, 1]} : vector<72x24xf32> to vector<8x24xf32>
    %351 = vector.extract_strided_slice %346 {offsets = [32, 0], sizes = [8, 24], strides = [1, 1]} : vector<72x24xf32> to vector<8x24xf32>
    %352 = vector.extract_strided_slice %346 {offsets = [40, 0], sizes = [8, 24], strides = [1, 1]} : vector<72x24xf32> to vector<8x24xf32>
    %353 = vector.extract_strided_slice %346 {offsets = [48, 0], sizes = [8, 24], strides = [1, 1]} : vector<72x24xf32> to vector<8x24xf32>
    %354 = vector.extract_strided_slice %346 {offsets = [56, 0], sizes = [8, 24], strides = [1, 1]} : vector<72x24xf32> to vector<8x24xf32>
    %355 = vector.extract_strided_slice %346 {offsets = [64, 0], sizes = [8, 24], strides = [1, 1]} : vector<72x24xf32> to vector<8x24xf32>
    %356 = arith.mulf %347, %347 : vector<8x24xf32>
    %357 = arith.mulf %348, %348 : vector<8x24xf32>
    %358 = arith.mulf %347, %348 : vector<8x24xf32>
    %359 = arith.subf %349, %356 : vector<8x24xf32>
    %360 = arith.subf %350, %357 : vector<8x24xf32>
    %361 = arith.subf %351, %358 : vector<8x24xf32>
    %cst_165 = arith.constant 2.000000e+00 : f32
    %362 = vector.broadcast %cst_165 : f32 to vector<8x24xf32>
    %363 = arith.mulf %362, %358 : vector<8x24xf32>
    %cst_166 = arith.constant 9.99999974E-5 : f32
    %364 = vector.broadcast %cst_166 : f32 to vector<8x24xf32>
    %365 = arith.addf %363, %364 : vector<8x24xf32>
    %cst_167 = arith.constant 2.000000e+00 : f32
    %366 = vector.broadcast %cst_167 : f32 to vector<8x24xf32>
    %367 = arith.mulf %366, %361 : vector<8x24xf32>
    %cst_168 = arith.constant 8.99999984E-4 : f32
    %368 = vector.broadcast %cst_168 : f32 to vector<8x24xf32>
    %369 = arith.addf %367, %368 : vector<8x24xf32>
    %370 = arith.mulf %365, %369 : vector<8x24xf32>
    %371 = arith.addf %356, %357 : vector<8x24xf32>
    %cst_169 = arith.constant 9.99999974E-5 : f32
    %372 = vector.broadcast %cst_169 : f32 to vector<8x24xf32>
    %373 = arith.addf %371, %372 : vector<8x24xf32>
    %374 = arith.addf %359, %360 : vector<8x24xf32>
    %cst_170 = arith.constant 8.99999984E-4 : f32
    %375 = vector.broadcast %cst_170 : f32 to vector<8x24xf32>
    %376 = arith.addf %374, %375 : vector<8x24xf32>
    %377 = arith.mulf %373, %376 : vector<8x24xf32>
    %378 = arith.divf %370, %377 : vector<8x24xf32>
    %379 = arith.mulf %352, %352 : vector<8x24xf32>
    %380 = arith.mulf %354, %354 : vector<8x24xf32>
    %381 = arith.addf %379, %380 : vector<8x24xf32>
    %cst_171 = arith.constant 9.99999993E-9 : f32
    %382 = vector.broadcast %cst_171 : f32 to vector<8x24xf32>
    %383 = arith.addf %381, %382 : vector<8x24xf32>
    %384 = arith.mulf %353, %353 : vector<8x24xf32>
    %385 = arith.mulf %355, %355 : vector<8x24xf32>
    %386 = arith.addf %384, %385 : vector<8x24xf32>
    %cst_172 = arith.constant 9.99999993E-9 : f32
    %387 = vector.broadcast %cst_172 : f32 to vector<8x24xf32>
    %388 = arith.addf %386, %387 : vector<8x24xf32>
    %389 = arith.mulf %383, %388 : vector<8x24xf32>
    %390 = math.sqrt %389 : vector<8x24xf32>
    %cst_173 = arith.constant 2.000000e+00 : f32
    %391 = vector.broadcast %cst_173 : f32 to vector<8x24xf32>
    %392 = arith.mulf %391, %390 : vector<8x24xf32>
    %cst_174 = arith.constant 8.99999984E-4 : f32
    %393 = vector.broadcast %cst_174 : f32 to vector<8x24xf32>
    %394 = arith.addf %392, %393 : vector<8x24xf32>
    %395 = arith.addf %383, %388 : vector<8x24xf32>
    %cst_175 = arith.constant 8.99999984E-4 : f32
    %396 = vector.broadcast %cst_175 : f32 to vector<8x24xf32>
    %397 = arith.addf %395, %396 : vector<8x24xf32>
    %398 = arith.divf %394, %397 : vector<8x24xf32>
    %cst_176 = arith.constant 8.500000e-01 : f32
    %399 = vector.broadcast %cst_176 : f32 to vector<8x24xf32>
    %400 = arith.mulf %399, %378 : vector<8x24xf32>
    %cst_177 = arith.constant 1.500000e-01 : f32
    %401 = vector.broadcast %cst_177 : f32 to vector<8x24xf32>
    %402 = arith.mulf %401, %398 : vector<8x24xf32>
    %403 = arith.addf %400, %402 : vector<8x24xf32>
    %c0_178 = arith.constant 0 : index
    %c0_179 = arith.constant 0 : index
    %404 = vector.load %arg31[%c0_178, %c0_179] : memref<8x8xf32, #tpu.memory_space<vmem>>, vector<8x8xf32>
    %cst_180 = arith.constant dense<0.000000e+00> : vector<8x24xf32>
    %405 = tpu.matmul %404, %403, %cst_180 {dimension_numbers = #tpu.dot_dimension_numbers<[1], [0], [0], [1], [0, 0, 1, 1], [], []>} : vector<8x8xf32>, vector<8x24xf32>, vector<8x24xf32> -> vector<8x24xf32>
    %c0_181 = arith.constant 0 : index
    %c0_182 = arith.constant 0 : index
    %406 = vector.load %arg32[%c0_181, %c0_182] : memref<24x128xf32, #tpu.memory_space<vmem>>, vector<24x128xf32>
    %cst_183 = arith.constant dense<0.000000e+00> : vector<8x128xf32>
    %407 = tpu.matmul %405, %406, %cst_183 {dimension_numbers = #tpu.dot_dimension_numbers<[1], [0], [0], [1], [0, 0, 1, 1], [], []>} : vector<8x24xf32>, vector<24x128xf32>, vector<8x128xf32> -> vector<8x128xf32>
    %408 = arith.addf %326, %407 : vector<8x128xf32>
    %409 = vector.shape_cast %408 : vector<8x128xf32> to vector<1x8x128xf32>
    %c0_184 = arith.constant 0 : index
    %c0_185 = arith.constant 0 : index
    %c0_186 = arith.constant 0 : index
    %410 = vector.load %arg41[%c0_184, %c0_185, %c0_186] : memref<1x8x128xf32, #tpu.memory_space<vmem>>, vector<1x8x128xf32>
    tpu.vector_store %arg41[%c0_184, %c0_185, %c0_186], %409 {strides = array<i32>} : memref<1x8x128xf32, #tpu.memory_space<vmem>>, vector<1x8x128xf32>,
    return
  }
  func.func @transform_0(%arg0: i32) -> (i32, i32, i32) {
    %c0_i32 = arith.constant 0 : i32
    %c0_i32_0 = arith.constant 0 : i32
    %c0_i32_1 = arith.constant 0 : i32
    return %arg0, %c0_i32, %c0_i32_0 : i32, i32, i32
  }
  func.func @transform_1(%arg0: i32) -> (i32, i32, i32) {
    %c0_i32 = arith.constant 0 : i32
    %c0_i32_0 = arith.constant 0 : i32
    %c0_i32_1 = arith.constant 0 : i32
    return %arg0, %c0_i32, %c0_i32_0 : i32, i32, i32
  }
  func.func @transform_2(%arg0: i32) -> (i32, i32) {
    %c0_i32 = arith.constant 0 : i32
    %c0_i32_0 = arith.constant 0 : i32
    %c0_i32_1 = arith.constant 0 : i32
    return %c0_i32, %c0_i32_0 : i32, i32
  }
  func.func @transform_3(%arg0: i32) -> (i32, i32) {
    %c0_i32 = arith.constant 0 : i32
    %c0_i32_0 = arith.constant 0 : i32
    %c0_i32_1 = arith.constant 0 : i32
    return %c0_i32, %c0_i32_0 : i32, i32
  }
  func.func @transform_4(%arg0: i32) -> (i32, i32) {
    %c0_i32 = arith.constant 0 : i32
    %c0_i32_0 = arith.constant 0 : i32
    %c0_i32_1 = arith.constant 0 : i32
    return %c0_i32, %c0_i32_0 : i32, i32
  }
  func.func @transform_5(%arg0: i32) -> (i32, i32) {
    %c0_i32 = arith.constant 0 : i32
    %c0_i32_0 = arith.constant 0 : i32
    %c0_i32_1 = arith.constant 0 : i32
    return %c0_i32, %c0_i32_0 : i32, i32
  }
  func.func @transform_6(%arg0: i32) -> (i32, i32) {
    %c0_i32 = arith.constant 0 : i32
    %c0_i32_0 = arith.constant 0 : i32
    %c0_i32_1 = arith.constant 0 : i32
    return %c0_i32, %c0_i32_0 : i32, i32
  }
  func.func @transform_7(%arg0: i32) -> (i32, i32) {
    %c0_i32 = arith.constant 0 : i32
    %c0_i32_0 = arith.constant 0 : i32
    %c0_i32_1 = arith.constant 0 : i32
    return %c0_i32, %c0_i32_0 : i32, i32
  }
  func.func @transform_8(%arg0: i32) -> (i32, i32) {
    %c0_i32 = arith.constant 0 : i32
    %c0_i32_0 = arith.constant 0 : i32
    %c0_i32_1 = arith.constant 0 : i32
    return %c0_i32, %c0_i32_0 : i32, i32
  }
  func.func @transform_9(%arg0: i32) -> (i32, i32) {
    %c0_i32 = arith.constant 0 : i32
    %c0_i32_0 = arith.constant 0 : i32
    %c0_i32_1 = arith.constant 0 : i32
    return %c0_i32, %c0_i32_0 : i32, i32
  }
  func.func @transform_10(%arg0: i32) -> (i32, i32) {
    %c0_i32 = arith.constant 0 : i32
    %c0_i32_0 = arith.constant 0 : i32
    %c0_i32_1 = arith.constant 0 : i32
    return %c0_i32, %c0_i32_0 : i32, i32
  }
  func.func @transform_11(%arg0: i32) -> (i32, i32) {
    %c0_i32 = arith.constant 0 : i32
    %c0_i32_0 = arith.constant 0 : i32
    %c0_i32_1 = arith.constant 0 : i32
    return %c0_i32, %c0_i32_0 : i32, i32
  }
  func.func @transform_12(%arg0: i32) -> (i32, i32) {
    %c0_i32 = arith.constant 0 : i32
    %c0_i32_0 = arith.constant 0 : i32
    %c0_i32_1 = arith.constant 0 : i32
    return %c0_i32, %c0_i32_0 : i32, i32
  }
  func.func @transform_13(%arg0: i32) -> (i32, i32) {
    %c0_i32 = arith.constant 0 : i32
    %c0_i32_0 = arith.constant 0 : i32
    %c0_i32_1 = arith.constant 0 : i32
    return %c0_i32, %c0_i32_0 : i32, i32
  }
  func.func @transform_14(%arg0: i32) -> (i32, i32) {
    %c0_i32 = arith.constant 0 : i32
    %c0_i32_0 = arith.constant 0 : i32
    %c0_i32_1 = arith.constant 0 : i32
    return %c0_i32, %c0_i32_0 : i32, i32
  }
  func.func @transform_15(%arg0: i32) -> (i32, i32) {
    %c0_i32 = arith.constant 0 : i32
    %c0_i32_0 = arith.constant 0 : i32
    %c0_i32_1 = arith.constant 0 : i32
    return %c0_i32, %c0_i32_0 : i32, i32
  }
  func.func @transform_16(%arg0: i32) -> (i32, i32) {
    %c0_i32 = arith.constant 0 : i32
    %c0_i32_0 = arith.constant 0 : i32
    %c0_i32_1 = arith.constant 0 : i32
    return %c0_i32, %c0_i32_0 : i32, i32
  }
  func.func @transform_17(%arg0: i32) -> (i32, i32) {
    %c0_i32 = arith.constant 0 : i32
    %c0_i32_0 = arith.constant 0 : i32
    %c0_i32_1 = arith.constant 0 : i32
    return %c0_i32, %c0_i32_0 : i32, i32
  }
  func.func @transform_18(%arg0: i32) -> (i32, i32) {
    %c0_i32 = arith.constant 0 : i32
    %c0_i32_0 = arith.constant 0 : i32
    %c0_i32_1 = arith.constant 0 : i32
    return %c0_i32, %c0_i32_0 : i32, i32
  }
  func.func @transform_19(%arg0: i32) -> (i32, i32) {
    %c0_i32 = arith.constant 0 : i32
    %c0_i32_0 = arith.constant 0 : i32
    %c0_i32_1 = arith.constant 0 : i32
    return %c0_i32, %c0_i32_0 : i32, i32
  }
  func.func @transform_20(%arg0: i32) -> (i32, i32) {
    %c0_i32 = arith.constant 0 : i32
    %c0_i32_0 = arith.constant 0 : i32
    %c0_i32_1 = arith.constant 0 : i32
    return %c0_i32, %c0_i32_0 : i32, i32
  }
  func.func @transform_21(%arg0: i32) -> (i32, i32) {
    %c0_i32 = arith.constant 0 : i32
    %c0_i32_0 = arith.constant 0 : i32
    %c0_i32_1 = arith.constant 0 : i32
    return %c0_i32, %c0_i32_0 : i32, i32
  }
  func.func @transform_22(%arg0: i32) -> (i32, i32) {
    %c0_i32 = arith.constant 0 : i32
    %c0_i32_0 = arith.constant 0 : i32
    %c0_i32_1 = arith.constant 0 : i32
    return %c0_i32, %c0_i32_0 : i32, i32
  }
  func.func @transform_23(%arg0: i32) -> (i32, i32) {
    %c0_i32 = arith.constant 0 : i32
    %c0_i32_0 = arith.constant 0 : i32
    %c0_i32_1 = arith.constant 0 : i32
    return %c0_i32, %c0_i32_0 : i32, i32
  }
  func.func @transform_24(%arg0: i32) -> (i32, i32) {
    %c0_i32 = arith.constant 0 : i32
    %c0_i32_0 = arith.constant 0 : i32
    %c0_i32_1 = arith.constant 0 : i32
    return %c0_i32, %c0_i32_0 : i32, i32
  }
  func.func @transform_25(%arg0: i32) -> (i32, i32) {
    %c0_i32 = arith.constant 0 : i32
    %c0_i32_0 = arith.constant 0 : i32
    %c0_i32_1 = arith.constant 0 : i32
    return %c0_i32, %c0_i32_0 : i32, i32
  }
  func.func @transform_26(%arg0: i32) -> (i32, i32) {
    %c0_i32 = arith.constant 0 : i32
    %c0_i32_0 = arith.constant 0 : i32
    %c0_i32_1 = arith.constant 0 : i32
    return %c0_i32, %c0_i32_0 : i32, i32
  }
  func.func @transform_27(%arg0: i32) -> (i32, i32) {
    %c0_i32 = arith.constant 0 : i32
    %c0_i32_0 = arith.constant 0 : i32
    %c0_i32_1 = arith.constant 0 : i32
    return %c0_i32, %c0_i32_0 : i32, i32
  }
  func.func @transform_28(%arg0: i32) -> (i32, i32) {
    %c0_i32 = arith.constant 0 : i32
    %c0_i32_0 = arith.constant 0 : i32
    %c0_i32_1 = arith.constant 0 : i32
    return %c0_i32, %c0_i32_0 : i32, i32
  }
  func.func @transform_29(%arg0: i32) -> (i32, i32) {
    %c0_i32 = arith.constant 0 : i32
    %c0_i32_0 = arith.constant 0 : i32
    %c0_i32_1 = arith.constant 0 : i32
    return %c0_i32, %c0_i32_0 : i32, i32
  }
  func.func @transform_30(%arg0: i32) -> (i32, i32) {
    %c0_i32 = arith.constant 0 : i32
    %c0_i32_0 = arith.constant 0 : i32
    %c0_i32_1 = arith.constant 0 : i32
    return %c0_i32, %c0_i32_0 : i32, i32
  }
  func.func @transform_31(%arg0: i32) -> (i32, i32) {
    %c0_i32 = arith.constant 0 : i32
    %c0_i32_0 = arith.constant 0 : i32
    %c0_i32_1 = arith.constant 0 : i32
    return %c0_i32, %c0_i32_0 : i32, i32
  }
  func.func @transform_32(%arg0: i32) -> (i32, i32) {
    %c0_i32 = arith.constant 0 : i32
    %c0_i32_0 = arith.constant 0 : i32
    %c0_i32_1 = arith.constant 0 : i32
    return %c0_i32, %c0_i32_0 : i32, i32
  }
  func.func @transform_33(%arg0: i32) -> (i32, i32) {
    %c0_i32 = arith.constant 0 : i32
    %c0_i32_0 = arith.constant 0 : i32
    %c0_i32_1 = arith.constant 0 : i32
    return %c0_i32, %c0_i32_0 : i32, i32
  }
  func.func @transform_34(%arg0: i32) -> (i32, i32) {
    %c0_i32 = arith.constant 0 : i32
    %c0_i32_0 = arith.constant 0 : i32
    %c0_i32_1 = arith.constant 0 : i32
    return %c0_i32, %c0_i32_0 : i32, i32
  }
  func.func @transform_35(%arg0: i32) -> (i32, i32) {
    %c0_i32 = arith.constant 0 : i32
    %c0_i32_0 = arith.constant 0 : i32
    %c0_i32_1 = arith.constant 0 : i32
    return %c0_i32, %c0_i32_0 : i32, i32
  }
  func.func @transform_36(%arg0: i32) -> (i32, i32) {
    %c0_i32 = arith.constant 0 : i32
    %c0_i32_0 = arith.constant 0 : i32
    %c0_i32_1 = arith.constant 0 : i32
    return %c0_i32, %c0_i32_0 : i32, i32
  }
  func.func @transform_37(%arg0: i32) -> (i32, i32) {
    %c0_i32 = arith.constant 0 : i32
    %c0_i32_0 = arith.constant 0 : i32
    %c0_i32_1 = arith.constant 0 : i32
    return %c0_i32, %c0_i32_0 : i32, i32
  }
  func.func @transform_38(%arg0: i32) -> (i32, i32) {
    %c0_i32 = arith.constant 0 : i32
    %c0_i32_0 = arith.constant 0 : i32
    %c0_i32_1 = arith.constant 0 : i32
    return %c0_i32, %c0_i32_0 : i32, i32
  }
  func.func @transform_39(%arg0: i32) -> (i32, i32) {
    %c0_i32 = arith.constant 0 : i32
    %c0_i32_0 = arith.constant 0 : i32
    %c0_i32_1 = arith.constant 0 : i32
    return %c0_i32, %c0_i32_0 : i32, i32
  }
  func.func @transform_40(%arg0: i32) -> (i32, i32, i32) {
    %c0_i32 = arith.constant 0 : i32
    %c0_i32_0 = arith.constant 0 : i32
    %c0_i32_1 = arith.constant 0 : i32
    return %arg0, %c0_i32, %c0_i32_0 : i32, i32, i32
  }
}

</mosaic_0001>

<bundles_post_ra>
// kernel: ms_ssim.1
= control target key start
LH: loop header
LB: loop body
LE: loop exit
PB: predicated region body
PF: predicated region fallthrough
CT: control target
= control target key end

     0   :  { %s8100_s6 = smov 1   ;;  %s8101_s10 = smov 2   ;;  %s9270_s0 = inlined_call_operand.smem [shape: u32[41], index: -1, kind: input, shape index: {}] }
   0x1   :  { %s8180_s5 = sld [smem:[%s9270_s0]]   ;;  %s8102_s14 = smov 3  }
   0x2   :  { %s8185_s9 = sld [smem:[%s9270_s0 + %s8100_s6]]   ;;  %s8103_s18 = smov 4  }
   0x3   :  { %s8190_s13 = sld [smem:[%s9270_s0 + %s8101_s10]]   ;;  %s8104_s22 = smov 5  }
   0x4   :  { %s8195_s17 = sld [smem:[%s9270_s0 + %s8102_s14]]   ;;  %s8105_s26 = smov 6  }
   0x5   :  { %s8200_s21 = sld [smem:[%s9270_s0 + %s8103_s18]]   ;;  %s8106_s30 = smov 7  }
   0x6   :  { %s8205_s25 = sld [smem:[%s9270_s0 + %s8104_s22]]   ;;  %s8107_s4 = smov 8  }
   0x7   :  { %9283 = sst [smem:[#allocation60_spill]] %s8180_s5  ;;  %s8108_s10 = smov 9  }
   0x8   :  { %9284 = sst [smem:[#allocation61_spill]] %s8185_s9  ;;  %s8109_s15 = smov 10  }
   0x9   :  { %s8210_s29 = sld [smem:[%s9270_s0 + %s8105_s26]]   ;;  %s8110_s20 = smov 11  }
   0xa   :  { %s8215_s3 = sld [smem:[%s9270_s0 + %s8106_s30]]   ;;  %s8111_s26 = smov 12  }
   0xb   :  { %9285 = sst [smem:[#allocation62_spill]] %s8200_s21  ;;  %s8112_s1 = smov 13  }
   0xc   :  { %9286 = sst [smem:[#allocation63_spill]] %s8205_s25  ;;  %s8113_s7 = smov 14  }
   0xd   :  { %s8220_s8 = sld [smem:[%s9270_s0 + %s8107_s4]]   ;;  %s8115_s22 = smov 16  }
   0xe   :  { %s8225_s14 = sld [smem:[%s9270_s0 + %s8108_s10]]   ;;  %s8116_s28 = smov 17  }
   0xf   :  { %s8230_s19 = sld [smem:[%s9270_s0 + %s8109_s15]]   ;;  %s8114_s15 = smov 15  }
  0x10   :  { %9287 = sst [smem:[#allocation64_spill]] %s8215_s3 }
  0x11   :  { %s8235_s24 = sld [smem:[%s9270_s0 + %s8110_s20]]  }
  0x12   :  { %s8240_s30 = sld [smem:[%s9270_s0 + %s8111_s26]]  }
  0x13   :  { %9288 = sst [smem:[#allocation65_spill]] %s8220_s8 }
  0x14   :  { %s8245_s6 = sld [smem:[%s9270_s0 + %s8112_s1]]  }
  0x15   :  { %9289 = sst [smem:[#allocation66_spill]] %s8230_s19 }
  0x16   :  { %s8250_s12 = sld [smem:[%s9270_s0 + %s8113_s7]]   ;;  %s8117_s7 = smov 18  }
  0x17   :  { %9290 = sst [smem:[#allocation67_spill]] %s8235_s24 }
  0x18   :  { %s8255_s20 = sld [smem:[%s9270_s0 + %s8114_s15]]   ;;  %s8118_s15 = smov 19  }
  0x19   :  { %s8260_s27 = sld [smem:[%s9270_s0 + %s8115_s22]]   ;;  %s8119_s22 = smov 20  }
  0x1a   :  { %9291 = sst [smem:[#allocation68_spill]] %s8245_s6 }
  0x1b   :  { %s8265_s4 = sld [smem:[%s9270_s0 + %s8116_s28]]   ;;  %s8120_s28 = smov 21  }
  0x1c   :  { %9292 = sst [smem:[#allocation69_spill]] %s8250_s12 }
  0x1d   :  { %s8270_s3 = sld [smem:[%s9270_s0 + %s8117_s7]]   ;;  %s8121_s7 = smov 22  }
  0x1e   :  { %9293 = sst [smem:[#allocation70_spill]] %s8255_s20 }
  0x1f   :  { %s8275_s24 = sld [smem:[%s9270_s0 + %s8118_s15]]   ;;  %s8122_s15 = smov 23  }
  0x20   :  { %s8280_s25 = sld [smem:[%s9270_s0 + %s8119_s22]]   ;;  %s8123_s22 = smov 24  }
  0x21   :  { %9294 = sst [smem:[#allocation71_spill]] %s8265_s4 }
  0x22   :  { %s8285_s4 = sld [smem:[%s9270_s0 + %s8120_s28]]   ;;  %s8124_s28 = smov 25  }
  0x23   :  { %9295 = sst [smem:[#allocation72_spill]] %s8270_s3 }
  0x24   :  { %s8290_s9 = sld [smem:[%s9270_s0 + %s8121_s7]]   ;;  %s8125_s7 = smov 26  }
  0x25   :  { %s8295_s5 = sld [smem:[%s9270_s0 + %s8122_s15]]   ;;  %s8126_s15 = smov 27  }
  0x26   :  { %9296 = sst [smem:[#allocation73_spill]] %s8280_s25 }
  0x27   :  { %s8300_s25 = sld [smem:[%s9270_s0 + %s8123_s22]]   ;;  %s8127_s22 = smov 28  }
  0x28   :  { %9297 = sst [smem:[#allocation74_spill]] %s8285_s4 }
  0x29   :  { %s8305_s3 = sld [smem:[%s9270_s0 + %s8124_s28]]   ;;  %s8128_s28 = smov 29  }
  0x2a   :  { %9298 = sst [smem:[#allocation75_spill]] %s8290_s9 }
  0x2b   :  { %9299 = sst [smem:[#allocation76_spill]] %s8295_s5 }
  0x2c   :  { %s8310_s9 = sld [smem:[%s9270_s0 + %s8125_s7]]   ;;  %s8129_s7 = smov 30  }
  0x2d   :  { %s8315_s5 = sld [smem:[%s9270_s0 + %s8126_s15]]   ;;  %s8130_s15 = smov 31  }
  0x2e   :  { %s8320_s20 = sld [smem:[%s9270_s0 + %s8127_s22]]   ;;  %s8131_s22 = smov 32  }
  0x2f   :  { %9300 = sst [smem:[#allocation77_spill]] %s8305_s3 }
  0x30   :  { %s8325_s3 = sld [smem:[%s9270_s0 + %s8128_s28]]   ;;  %s8132_s28 = smov 33  }
  0x31   :  { %s8330_s6 = sld [smem:[%s9270_s0 + %s8129_s7]]   ;;  %s8133_s7 = smov 34  }
  0x32   :  { %s8340_s19 = sld [smem:[%s9270_s0 + %s8131_s22]]   ;;  %s8135_s22 = smov 36  }
  0x33   :  { %9301 = sst [smem:[#allocation78_spill]] %s8315_s5 }
  0x34   :  { %s8335_s5 = sld [smem:[%s9270_s0 + %s8130_s15]]   ;;  %s8134_s15 = smov 35  }
  0x35   :  { %s8355_s8 = sld [smem:[%s9270_s0 + %s8134_s15]]   ;;  %s8138_s15 = smov 39  }
  0x36   :  { %9302 = sst [smem:[#allocation79_spill]] %s8325_s3 }
  0x37   :  { %9303 = sst [smem:[#allocation80_spill]] %s8330_s6 }
  0x38   :  { %9304 = sst [smem:[#allocation81_spill]] %s8340_s19 }
  0x39   :  { %s8345_s3 = sld [smem:[%s9270_s0 + %s8132_s28]]   ;;  %s8136_s28 = smov 37  }
  0x3a   :  { %s8350_s6 = sld [smem:[%s9270_s0 + %s8133_s7]]   ;;  %s8137_s7 = smov 38  }
  0x3b   :  { %9306 = sst [smem:[#allocation83_spill]] %s8355_s8 }
  0x3c   :  { %s8360_s19 = sld [smem:[%s9270_s0 + %s8135_s22]]   ;;  %s8139_s22 = smov 40  }
  0x3d   :  { %s8370_s21 = sld [smem:[%s9270_s0 + %s8137_s7]]  }
  0x3e   :  { %s8375_s8 = sld [smem:[%s9270_s0 + %s8138_s15]]  }
  0x3f   :  { %9305 = sst [smem:[#allocation82_spill]] %s8345_s3 }
  0x40   :  { %s8365_s3 = sld [smem:[%s9270_s0 + %s8136_s28]]  }
  0x42   :  { %9307 = sst [smem:[#allocation84_spill]] %s8360_s19 }
  0x43   :  { %s8380_s19 = sld [smem:[%s9270_s0 + %s8139_s22]]  }
  0x44   :  { %86 = vsyncpa [#allocation3], 0 }
  0x45   :  { %87 = vsyncpa [#allocation5], 0 }
  0x46   :  { %88 = vsyncpa [#allocation8], 0 }
  0x47   :  { %89 = vsyncpa [#allocation11], 0 }
  0x48   :  { %90 = vsyncpa [#allocation14], 0 }
  0x49   :  { %91 = vsyncpa [#allocation17], 0 }
  0x4a   :  { %92 = vsyncpa [#allocation20], 0 }
  0x4b   :  { %93 = vsyncpa [#allocation23], 0 }
  0x4c   :  { %94 = vsyncpa [#allocation26], 0 }
  0x4d   :  { %95 = vsyncpa [#allocation29], 0 }
  0x4e   :  { %96 = vsyncpa [#allocation32], 0 }
  0x4f   :  { %97 = vsyncpa [#allocation35], 0 }
  0x50   :  { %98 = vsyncpa [#allocation38], 0 }
  0x51   :  { %99 = vsyncpa [#allocation41], 0 }
  0x52   :  { %100 = vsyncpa [#allocation44], 0  ;;  %s8382_s28 = smov 0  }
  0x53 LB: > { %s8388_s0 = sadd.s32 4294967295, %s8098_s28   ;;  %p5920_p0 = scmp.ge.s32.totalorder %s8098_s28, 1  ;;  %s8098_s28 = sphi %s8382_s28, %s106_s28  }
  0x54   : > { %p987_p1 = scmp.lt.s32.totalorder %s8098_s28, 3  ;;  %p9281_p2 = scmp.eq.s32.totalorder %s8388_s0, 0 }
  0x55   : > { %s8140_s2 = smov [#allocation4]   ;;  %s8141_s10 = smov [#allocation7]  }
  0x56   : > { %p8393_p3 = pnand %p5920_p0, %p987_p1  ;;  %s1012_s7 = sshll.u32 %s8140_s2, 4  ;;  %s1013_s7 = int_to_ptr.vmem [resolvable:$true] %s1012_s7 }
  0x57   : > { %s1042_s11 = sshll.u32 %s8141_s10, 4  ;;  %s8142_s16 = smov [#allocation10]   ;;  %s8399_s11 = int_to_ptr.vmem [resolvable:$true] %s1042_s11 }
  0x58   : > { %s9308_s1 = scalar_select %p8393_p3, 1, 0 }
  0x59   : > { %p7047_p4 = pneg %p8393_p3  ;;  %s1068_s18 = sshll.u32 %s8142_s16, 4  ;;  %s8407_s18 = int_to_ptr.vmem [resolvable:$true] %s1068_s18 }
  0x5a   : > { %s8143_s22 = smov [#allocation13]   ;;  %s7315_s2 = scalar_lea.vmem %s1013_s7, 768 }
  0x5b   : > { %p8403_p5 = pnand %p9281_p2, %p7047_p4  ;;  %s8409_s23 = sshll.u32 %s8143_s22, 4  ;;  %s1099_s23 = int_to_ptr.vmem [resolvable:$true] %s8409_s23 }
  0x5c   : > { %p7316_p7 = scmp.ne.s32.totalorder %s1013_s7, %s7315_s2  ;;  %p7323_p10 = scmp.lt.s32.totalorder %s1013_s7, %s1013_s7 }
  0x5d   : > { %p8413_p6 = pneg %p8403_p5  ;;  %p7324_p11 = scmp.lt.s32.totalorder %s7315_s2, %s7315_s2 }
  0x5f   : > { %p7318_p8 = pnand %p7316_p7, %p8413_p6  ;;  %p7325_p12 = por %p7324_p11, %p7323_p10 }
  0x61   : > { %p7319_p9 = pneg %p7318_p8 }
  0x63   : > { %p7326_p13 = pnand %p7325_p12, %p7319_p9 }
  0x65   : > { %7329 = shalt.err (!%p7326_p13)
}
  0x66   : > { %s9279_s10 = smov 128   ;;  %s8145_s16 = smov 8  }
  0x67   : > { %7053 = dma.hbm_to_vmem [thread:$0]  (!%p8403_p5), %s8195_s17, 768, %s1013_s7, [#allocation5], %s9279_s10, %s9279_s10, %s8145_s16  }
  0x68   : > { %s7341_s22 = scalar_lea.vmem %s8399_s11, 128  ;;  %p7349_p7 = scmp.lt.s32.totalorder %s8399_s11, %s8399_s11 }
  0x69   : > { %p7342_p0 = scmp.ne.s32.totalorder %s8399_s11, %s7341_s22  ;;  %p7350_p8 = scmp.lt.s32.totalorder %s7341_s22, %s7341_s22 }
  0x6b   : > { %p7344_p1 = pnand %p7342_p0, %p8413_p6  ;;  %p7351_p9 = por %p7350_p8, %p7349_p7 }
  0x6d   : > { %p7345_p4 = pneg %p7344_p1 }
  0x6f   : > { %p7352_p10 = pnand %p7351_p9, %p7345_p4 }
  0x71   : > { %7355 = shalt.err (!%p7352_p10)
}
  0x72   : > { %7059 = dma.hbm_to_vmem [thread:$0]  (!%p8403_p5), %s8210_s29, 128, %s8399_s11, [#allocation8]  }
  0x73   : > { %s7367_s7 = scalar_lea.vmem %s8407_s18, 384  ;;  %p7375_p0 = scmp.lt.s32.totalorder %s8407_s18, %s8407_s18 }
  0x74   : > { %p7368_p11 = scmp.ne.s32.totalorder %s8407_s18, %s7367_s7  ;;  %p7376_p1 = scmp.lt.s32.totalorder %s7367_s7, %s7367_s7 }
  0x76   : > { %p7370_p12 = pnand %p7368_p11, %p8413_p6  ;;  %p7377_p7 = por %p7376_p1, %p7375_p0 }
  0x78   : > { %p7371_p13 = pneg %p7370_p12 }
  0x7a   : > { %p7378_p4 = pnand %p7377_p7, %p7371_p13 }
  0x7c   : > { %7381 = shalt.err (!%p7378_p4)
}
  0x7d   : > { %7065 = dma.hbm_to_vmem [thread:$0]  (!%p8403_p5), %s8225_s14, 384, %s8407_s18, [#allocation11], %s9279_s10, %s9279_s10, %s8145_s16  }
  0x7e   : > { %s7393_s11 = scalar_lea.vmem %s1099_s23, 128  ;;  %p7401_p11 = scmp.lt.s32.totalorder %s1099_s23, %s1099_s23 }
  0x7f   : > { %p7394_p8 = scmp.ne.s32.totalorder %s1099_s23, %s7393_s11  ;;  %p7402_p12 = scmp.lt.s32.totalorder %s7393_s11, %s7393_s11 }
  0x81   : > { %p7396_p9 = pnand %p7394_p8, %p8413_p6  ;;  %p7403_p13 = por %p7402_p12, %p7401_p11 }
  0x83   : > { %p7397_p10 = pneg %p7396_p9 }
  0x85   : > { %p7404_p0 = pnand %p7403_p13, %p7397_p10 }
  0x87   : > { %7407 = shalt.err (!%p7404_p0)
}
  0x88   : > { %7071 = dma.hbm_to_vmem [thread:$0]  (!%p8403_p5), %s8240_s30, 128, %s1099_s23, [#allocation14]  }
  0x89   : > { %s8146_s2 = smov [#allocation16]   ;;  %s8147_s18 = smov [#allocation19]  }
  0x8a   : > { %s1121_s22 = sshll.u32 %s8146_s2, 4  ;;  %s1147_s7 = sshll.u32 %s8147_s18, 4  ;;  %s1122_s22 = int_to_ptr.vmem [resolvable:$true] %s1121_s22  ;;  %s1148_s7 = int_to_ptr.vmem [resolvable:$true] %s1147_s7 }
  0x8b   : > { %s7419_s10 = scalar_lea.vmem %s1122_s22, 384  ;;  %p7427_p8 = scmp.lt.s32.totalorder %s1122_s22, %s1122_s22 }
  0x8c   : > { %p7420_p1 = scmp.ne.s32.totalorder %s1122_s22, %s7419_s10  ;;  %p7428_p9 = scmp.lt.s32.totalorder %s7419_s10, %s7419_s10 }
  0x8e   : > { %p7422_p7 = pnand %p7420_p1, %p8413_p6  ;;  %p7429_p11 = por %p7428_p9, %p7427_p8 }
  0x90   : > { %p7423_p4 = pneg %p7422_p7 }
  0x92   : > { %p7430_p10 = pnand %p7429_p11, %p7423_p4 }
  0x94   : > { %7433 = shalt.err (!%p7430_p10)
}
  0x95   : > { %s9311_s11 = smov 128   ;;  %s9312_s12 = sld [smem:[#allocation69_spill]] }
  0x96   : > { %s7445_s23 = scalar_lea.vmem %s1148_s7, 384  ;;  %p7453_p1 = scmp.lt.s32.totalorder %s1148_s7, %s1148_s7 }
  0x97   : > { %p7446_p12 = scmp.ne.s32.totalorder %s1148_s7, %s7445_s23  ;;  %p7454_p7 = scmp.lt.s32.totalorder %s7445_s23, %s7445_s23 }
  0x99   : > { %p7448_p13 = pnand %p7446_p12, %p8413_p6  ;;  %p7455_p2 = por %p7454_p7, %p7453_p1 }
  0x9b   : > { %7077 = dma.hbm_to_vmem [thread:$0]  (!%p8403_p5), %s9312_s12, 384, %s1122_s22, [#allocation17], %s9311_s11, %s9311_s11, %s8145_s16  }
  0x9c   : > { %p7449_p0 = pneg %p7448_p13 }
  0x9e   : > { %p7456_p8 = pnand %p7455_p2, %p7449_p0 }
  0xa0   : > { %7459 = shalt.err (!%p7456_p8)
}
  0xa1   : > { %7083 = dma.hbm_to_vmem [thread:$0]  (!%p8403_p5), %s8260_s27, 384, %s1148_s7, [#allocation20], %s9311_s11, %s9311_s11, %s8145_s16  }
  0xa2   : > { %s8148_s10 = smov [#allocation22]   ;;  %s8149_s22 = smov [#allocation25]  }
  0xa3   : > { %s1174_s2 = sshll.u32 %s8148_s10, 4  ;;  %s1200_s18 = sshll.u32 %s8149_s22, 4  ;;  %s1175_s2 = int_to_ptr.vmem [resolvable:$true] %s1174_s2  ;;  %s1201_s18 = int_to_ptr.vmem [resolvable:$true] %s1200_s18 }
  0xa4   : > { %s7471_s12 = scalar_lea.vmem %s1175_s2, 384  ;;  %p7479_p2 = scmp.lt.s32.totalorder %s1175_s2, %s1175_s2 }
  0xa5   : > { %p7472_p4 = scmp.ne.s32.totalorder %s1175_s2, %s7471_s12  ;;  %p7480_p10 = scmp.lt.s32.totalorder %s7471_s12, %s7471_s12 }
  0xa7   : > { %p7474_p9 = pnand %p7472_p4, %p8413_p6  ;;  %p7481_p12 = por %p7480_p10, %p7479_p2 }
  0xa9   : > { %p7475_p11 = pneg %p7474_p9 }
  0xab   : > { %p7482_p13 = pnand %p7481_p12, %p7475_p11 }
  0xad   : > { %7485 = shalt.err (!%p7482_p13)
}
  0xae   : > { %7089 = dma.hbm_to_vmem [thread:$0]  (!%p8403_p5), %s8275_s24, 384, %s1175_s2, [#allocation23], %s9311_s11, %s9311_s11, %s8145_s16  }
  0xaf   : > { %s7497_s7 = scalar_lea.vmem %s1201_s18, 384  ;;  %p7505_p8 = scmp.lt.s32.totalorder %s1201_s18, %s1201_s18 }
  0xb0   : > { %p7498_p0 = scmp.ne.s32.totalorder %s1201_s18, %s7497_s7  ;;  %p7506_p4 = scmp.lt.s32.totalorder %s7497_s7, %s7497_s7 }
  0xb2   : > { %p7500_p1 = pnand %p7498_p0, %p8413_p6  ;;  %p7507_p9 = por %p7506_p4, %p7505_p8 }
  0xb4   : > { %p7501_p7 = pneg %p7500_p1 }
  0xb6   : > { %p7508_p2 = pnand %p7507_p9, %p7501_p7 }
  0xb8   : > { %7511 = shalt.err (!%p7508_p2)
}
  0xb9   : > { %s9313_s4 = sld [smem:[#allocation74_spill]]  ;;  %s8150_s12 = smov [#allocation28]  }
  0xba   : > { %s1230_s23 = sshll.u32 %s8150_s12, 4  ;;  %s8151_s10 = smov [#allocation31]   ;;  %s1231_s23 = int_to_ptr.vmem [resolvable:$true] %s1230_s23 }
  0xbb   : > { %s1253_s2 = sshll.u32 %s8151_s10, 4  ;;  %s7523_s22 = scalar_lea.vmem %s1231_s23, 128  ;;  %s1254_s2 = int_to_ptr.vmem [resolvable:$true] %s1253_s2 }
  0xbc   : > { %p7524_p11 = scmp.ne.s32.totalorder %s1231_s23, %s7523_s22  ;;  %p7531_p13 = scmp.lt.s32.totalorder %s1231_s23, %s1231_s23 }
  0xbd   : > { %p7532_p0 = scmp.lt.s32.totalorder %s7523_s22, %s7523_s22 }
  0xbe   : > { %p7526_p10 = pnand %p7524_p11, %p8413_p6 }
  0xbf   : > { %7095 = dma.hbm_to_vmem [thread:$0]  (!%p8403_p5), %s9313_s4, 384, %s1201_s18, [#allocation26], %s9311_s11, %s9311_s11, %s8145_s16  }
  0xc0   : > { %p7527_p12 = pneg %p7526_p10  ;;  %p7533_p1 = por %p7532_p0, %p7531_p13 }
  0xc2   : > { %p7534_p7 = pnand %p7533_p1, %p7527_p12 }
  0xc4   : > { %7537 = shalt.err (!%p7534_p7)
}
  0xc5   : > { %7101 = dma.hbm_to_vmem [thread:$0]  (!%p8403_p5), %s8300_s25, 128, %s1231_s23, [#allocation29]  }
  0xc6   : > { %s7549_s18 = scalar_lea.vmem %s1254_s2, 384  ;;  %p7557_p2 = scmp.lt.s32.totalorder %s1254_s2, %s1254_s2 }
  0xc7   : > { %p7550_p8 = scmp.ne.s32.totalorder %s1254_s2, %s7549_s18  ;;  %p7558_p3 = scmp.lt.s32.totalorder %s7549_s18, %s7549_s18 }
  0xc9   : > { %p7552_p4 = pnand %p7550_p8, %p8413_p6  ;;  %p7559_p11 = por %p7558_p3, %p7557_p2 }
  0xcb   : > { %p7553_p9 = pneg %p7552_p4 }
  0xcd   : > { %p7560_p10 = pnand %p7559_p11, %p7553_p9 }
  0xcf   : > { %7563 = shalt.err (!%p7560_p10)
}
  0xd0   : > { %7107 = dma.hbm_to_vmem [thread:$0]  (!%p8403_p5), %s8310_s9, 384, %s1254_s2, [#allocation32], %s9311_s11, %s9311_s11, %s8145_s16  }
  0xd1   : > { %s8152_s7 = smov [#allocation34]   ;;  %s8153_s23 = smov [#allocation37]  }
  0xd2   : > { %s1279_s12 = sshll.u32 %s8152_s7, 4  ;;  %s1306_s10 = sshll.u32 %s8153_s23, 4  ;;  %s1280_s12 = int_to_ptr.vmem [resolvable:$true] %s1279_s12  ;;  %s1307_s10 = int_to_ptr.vmem [resolvable:$true] %s1306_s10 }
  0xd3   : > { %s7575_s22 = scalar_lea.vmem %s1280_s12, 384  ;;  %p7583_p0 = scmp.lt.s32.totalorder %s1280_s12, %s1280_s12 }
  0xd4   : > { %p7576_p12 = scmp.ne.s32.totalorder %s1280_s12, %s7575_s22  ;;  %p7584_p1 = scmp.lt.s32.totalorder %s7575_s22, %s7575_s22 }
  0xd6   : > { %p7578_p13 = pnand %p7576_p12, %p8413_p6  ;;  %p7585_p7 = por %p7584_p1, %p7583_p0 }
  0xd8   : > { %p7579_p3 = pneg %p7578_p13 }
  0xda   : > { %p7586_p8 = pnand %p7585_p7, %p7579_p3 }
  0xdc   : > { %7589 = shalt.err (!%p7586_p8)
}
  0xdd   : > { %7113 = dma.hbm_to_vmem [thread:$0]  (!%p8403_p5), %s8320_s20, 384, %s1280_s12, [#allocation35], %s9311_s11, %s9311_s11, %s8145_s16  }
  0xde   : > { %s7601_s2 = scalar_lea.vmem %s1307_s10, 384  ;;  %p7609_p11 = scmp.lt.s32.totalorder %s1307_s10, %s1307_s10 }
  0xdf   : > { %p7602_p4 = scmp.ne.s32.totalorder %s1307_s10, %s7601_s2  ;;  %p7610_p10 = scmp.lt.s32.totalorder %s7601_s2, %s7601_s2 }
  0xe1   : > { %p7604_p9 = pnand %p7602_p4, %p8413_p6  ;;  %p7611_p12 = por %p7610_p10, %p7609_p11 }
  0xe3   : > { %p7605_p2 = pneg %p7604_p9 }
  0xe5   : > { %p7612_p13 = pnand %p7611_p12, %p7605_p2 }
  0xe7   : > { %7615 = shalt.err (!%p7612_p13)
}
  0xe8   : > { %7119 = dma.hbm_to_vmem [thread:$0]  (!%p8403_p5), %s8335_s5, 384, %s1307_s10, [#allocation38], %s9311_s11, %s9311_s11, %s8145_s16  }
  0xe9   : > { %s8154_s18 = smov [#allocation40]   ;;  %s8155_s12 = smov [#allocation2]  }
  0xea   : > { %s1335_s7 = sshll.u32 %s8154_s18, 4  ;;  %s999_s23 = sshll.u32 %s8155_s12, 4  ;;  %s1336_s7 = int_to_ptr.vmem [resolvable:$true] %s1335_s7  ;;  %s1000_s23 = int_to_ptr.vmem [resolvable:$true] %s999_s23 }
  0xeb   : > { %s7627_s22 = scalar_lea.vmem %s1336_s7, 384  ;;  %p7635_p7 = scmp.lt.s32.totalorder %s1336_s7, %s1336_s7 }
  0xec   : > { %p7628_p3 = scmp.ne.s32.totalorder %s1336_s7, %s7627_s22  ;;  %p7636_p8 = scmp.lt.s32.totalorder %s7627_s22, %s7627_s22 }
  0xee   : > { %p7630_p0 = pnand %p7628_p3, %p8413_p6  ;;  %p7637_p4 = por %p7636_p8, %p7635_p7 }
  0xf0   : > { %p7631_p1 = pneg %p7630_p0 }
  0xf2   : > { %p7638_p9 = pnand %p7637_p4, %p7631_p1 }
  0xf4   : > { %7641 = shalt.err (!%p7638_p9)
}
  0xf5   : > { %7125 = dma.hbm_to_vmem [thread:$0]  (!%p8403_p5), %s8350_s6, 384, %s1336_s7, [#allocation41], %s9311_s11, %s9311_s11, %s8145_s16  }
  0xf6   : > { %s7653_s10 = scalar_lea.vmem %s1000_s23, 768  ;;  %p7661_p12 = scmp.lt.s32.totalorder %s1000_s23, %s1000_s23 }
  0xf7   : > { %p7654_p2 = scmp.ne.s32.totalorder %s1000_s23, %s7653_s10  ;;  %p7662_p13 = scmp.lt.s32.totalorder %s7653_s10, %s7653_s10 }
  0xf9   : > { %p7656_p11 = pnand %p7654_p2, %p8413_p6  ;;  %p7663_p3 = por %p7662_p13, %p7661_p12 }
  0xfb   : > { %p7657_p10 = pneg %p7656_p11 }
  0xfd   : > { %p7664_p0 = pnand %p7663_p3, %p7657_p10 }
  0xff   : > { %7667 = shalt.err (!%p7664_p0)
}
 0x100   : > { %7050 = dma.hbm_to_vmem [thread:$0]  (!%p8403_p5), %s8190_s13, 768, %s1000_s23, [#allocation3], %s9311_s11, %s9311_s11, %s8145_s16  }
 0x101   : > { %s8156_s2 = smov [#allocation6]   ;;  %s8157_s7 = smov [#allocation9]  }
 0x102   : > { %s1025_s18 = sshll.u32 %s8156_s2, 4  ;;  %s1055_s12 = sshll.u32 %s8157_s7, 4  ;;  %s1026_s18 = int_to_ptr.vmem [resolvable:$true] %s1025_s18  ;;  %s1056_s12 = int_to_ptr.vmem [resolvable:$true] %s1055_s12 }
 0x103   : > { %s7679_s22 = scalar_lea.vmem %s1026_s18, 768  ;;  %p7687_p4 = scmp.lt.s32.totalorder %s1026_s18, %s1026_s18 }
 0x104   : > { %p7680_p1 = scmp.ne.s32.totalorder %s1026_s18, %s7679_s22  ;;  %p7688_p9 = scmp.lt.s32.totalorder %s7679_s22, %s7679_s22 }
 0x106   : > { %p7682_p7 = pnand %p7680_p1, %p8413_p6  ;;  %p7689_p2 = por %p7688_p9, %p7687_p4 }
 0x108   : > { %p7683_p8 = pneg %p7682_p7 }
 0x10a   : > { %p7690_p11 = pnand %p7689_p2, %p7683_p8 }
 0x10c   : > { %7693 = shalt.err (!%p7690_p11)
}
 0x10d   : > { %s9314_s23 = sld [smem:[#allocation62_spill]]  ;;  %s7705_s10 = scalar_lea.vmem %s1056_s12, 384 }
 0x10e   : > { %p7706_p10 = scmp.ne.s32.totalorder %s1056_s12, %s7705_s10  ;;  %p7713_p3 = scmp.lt.s32.totalorder %s1056_s12, %s1056_s12 }
 0x10f   : > { %p7714_p0 = scmp.lt.s32.totalorder %s7705_s10, %s7705_s10 }
 0x110   : > { %p7708_p12 = pnand %p7706_p10, %p8413_p6 }
 0x111   : > { %p7715_p1 = por %p7714_p0, %p7713_p3 }
 0x112   : > { %p7709_p13 = pneg %p7708_p12 }
 0x113   : > { %7056 = dma.hbm_to_vmem [thread:$0]  (!%p8403_p5), %s9314_s23, 768, %s1026_s18, [#allocation5], %s9311_s11, %s9311_s11, %s8145_s16  }
 0x114   : > { %p7716_p7 = pnand %p7715_p1, %p7709_p13 }
 0x116   : > { %7719 = shalt.err (!%p7716_p7)
}
 0x117   : > { %s9315_s2 = sld [smem:[#allocation65_spill]]  ;;  %s8158_s18 = smov [#allocation12]  }
 0x118   : > { %s1081_s7 = sshll.u32 %s8158_s18, 4  ;;  %s8159_s22 = smov [#allocation15]   ;;  %s1082_s7 = int_to_ptr.vmem [resolvable:$true] %s1081_s7 }
 0x119   : > { %s1108_s23 = sshll.u32 %s8159_s22, 4  ;;  %s7731_s4 = scalar_lea.vmem %s1082_s7, 384  ;;  %s1109_s23 = int_to_ptr.vmem [resolvable:$true] %s1108_s23 }
 0x11a   : > { %p7732_p8 = scmp.ne.s32.totalorder %s1082_s7, %s7731_s4  ;;  %p7739_p2 = scmp.lt.s32.totalorder %s1082_s7, %s1082_s7 }
 0x11b   : > { %p7740_p11 = scmp.lt.s32.totalorder %s7731_s4, %s7731_s4 }
 0x11c   : > { %p7734_p4 = pnand %p7732_p8, %p8413_p6 }
 0x11d   : > { %7062 = dma.hbm_to_vmem [thread:$0]  (!%p8403_p5), %s9315_s2, 384, %s1056_s12, [#allocation8], %s9311_s11, %s9311_s11, %s8145_s16  }
 0x11e   : > { %p7735_p9 = pneg %p7734_p4  ;;  %p7741_p10 = por %p7740_p11, %p7739_p2 }
 0x120   : > { %p7742_p12 = pnand %p7741_p10, %p7735_p9 }
 0x122   : > { %7745 = shalt.err (!%p7742_p12)
}
 0x123   : > { %s9316_s12 = sld [smem:[#allocation66_spill]]  ;;  %s7757_s10 = scalar_lea.vmem %s1109_s23, 384 }
 0x124   : > { %p7758_p13 = scmp.ne.s32.totalorder %s1109_s23, %s7757_s10  ;;  %p7765_p1 = scmp.lt.s32.totalorder %s1109_s23, %s1109_s23 }
 0x125   : > { %p7766_p7 = scmp.lt.s32.totalorder %s7757_s10, %s7757_s10 }
 0x126   : > { %p7760_p3 = pnand %p7758_p13, %p8413_p6 }
 0x127   : > { %p7767_p8 = por %p7766_p7, %p7765_p1 }
 0x128   : > { %p7761_p0 = pneg %p7760_p3 }
 0x129   : > { %7068 = dma.hbm_to_vmem [thread:$0]  (!%p8403_p5), %s9316_s12, 384, %s1082_s7, [#allocation11], %s9311_s11, %s9311_s11, %s8145_s16  }
 0x12a   : > { %p7768_p4 = pnand %p7767_p8, %p7761_p0 }
 0x12c   : > { %7771 = shalt.err (!%p7768_p4)
}
 0x12d   : > { %s9317_s4 = sld [smem:[#allocation68_spill]]  ;;  %s8160_s2 = smov [#allocation18]  }
 0x12e   : > { %s1134_s18 = sshll.u32 %s8160_s2, 4  ;;  %s8161_s7 = smov [#allocation21]   ;;  %s1135_s18 = int_to_ptr.vmem [resolvable:$true] %s1134_s18 }
 0x12f   : > { %s1164_s22 = sshll.u32 %s8161_s7, 4  ;;  %s7783_s12 = scalar_lea.vmem %s1135_s18, 384  ;;  %s1165_s22 = int_to_ptr.vmem [resolvable:$true] %s1164_s22 }
 0x130   : > { %p7784_p9 = scmp.ne.s32.totalorder %s1135_s18, %s7783_s12  ;;  %p7791_p10 = scmp.lt.s32.totalorder %s1135_s18, %s1135_s18 }
 0x131   : > { %p7792_p12 = scmp.lt.s32.totalorder %s7783_s12, %s7783_s12 }
 0x132   : > { %p7786_p2 = pnand %p7784_p9, %p8413_p6 }
 0x133   : > { %7074 = dma.hbm_to_vmem [thread:$0]  (!%p8403_p5), %s9317_s4, 384, %s1109_s23, [#allocation14], %s9311_s11, %s9311_s11, %s8145_s16  }
 0x134   : > { %p7787_p11 = pneg %p7786_p2  ;;  %p7793_p13 = por %p7792_p12, %p7791_p10 }
 0x136   : > { %p7794_p3 = pnand %p7793_p13, %p7787_p11 }
 0x138   : > { %7797 = shalt.err (!%p7794_p3)
}
 0x139   : > { %s9318_s23 = sld [smem:[#allocation70_spill]]  ;;  %s7809_s10 = scalar_lea.vmem %s1165_s22, 128 }
 0x13a   : > { %p7810_p0 = scmp.ne.s32.totalorder %s1165_s22, %s7809_s10  ;;  %p7817_p8 = scmp.lt.s32.totalorder %s1165_s22, %s1165_s22 }
 0x13b   : > { %p7818_p4 = scmp.lt.s32.totalorder %s7809_s10, %s7809_s10 }
 0x13c   : > { %p7812_p1 = pnand %p7810_p0, %p8413_p6 }
 0x13d   : > { %p7819_p9 = por %p7818_p4, %p7817_p8 }
 0x13e   : > { %p7813_p7 = pneg %p7812_p1 }
 0x13f   : > { %7080 = dma.hbm_to_vmem [thread:$0]  (!%p8403_p5), %s9318_s23, 384, %s1135_s18, [#allocation17], %s9311_s11, %s9311_s11, %s8145_s16  }
 0x140   : > { %p7820_p2 = pnand %p7819_p9, %p7813_p7 }
 0x142   : > { %7823 = shalt.err (!%p7820_p2)
}
 0x143   : > { %s9319_s4 = sld [smem:[#allocation72_spill]]  ;;  %s8162_s2 = smov [#allocation24]  }
 0x144   : > { %s1187_s7 = sshll.u32 %s8162_s2, 4  ;;  %s8163_s18 = smov [#allocation27]   ;;  %s1188_s7 = int_to_ptr.vmem [resolvable:$true] %s1187_s7 }
 0x145   : > { %s1213_s12 = sshll.u32 %s8163_s18, 4  ;;  %s7835_s23 = scalar_lea.vmem %s1188_s7, 384  ;;  %s1214_s12 = int_to_ptr.vmem [resolvable:$true] %s1213_s12 }
 0x146   : > { %p7836_p11 = scmp.ne.s32.totalorder %s1188_s7, %s7835_s23  ;;  %p7843_p13 = scmp.lt.s32.totalorder %s1188_s7, %s1188_s7 }
 0x147   : > { %p7844_p3 = scmp.lt.s32.totalorder %s7835_s23, %s7835_s23 }
 0x148   : > { %p7838_p10 = pnand %p7836_p11, %p8413_p6 }
 0x149   : > { %7086 = dma.hbm_to_vmem [thread:$0]  (!%p8403_p5), %s9319_s4, 128, %s1165_s22, [#allocation20]  }
 0x14a   : > { %p7839_p12 = pneg %p7838_p10  ;;  %p7845_p0 = por %p7844_p3, %p7843_p13 }
 0x14c   : > { %p7846_p1 = pnand %p7845_p0, %p7839_p12 }
 0x14e   : > { %7849 = shalt.err (!%p7846_p1)
}
 0x14f   : > { %s9320_s22 = sld [smem:[#allocation73_spill]]  ;;  %s7861_s10 = scalar_lea.vmem %s1214_s12, 384 }
 0x150   : > { %p7862_p7 = scmp.ne.s32.totalorder %s1214_s12, %s7861_s10  ;;  %p7869_p9 = scmp.lt.s32.totalorder %s1214_s12, %s1214_s12 }
 0x151   : > { %p7870_p2 = scmp.lt.s32.totalorder %s7861_s10, %s7861_s10 }
 0x152   : > { %p7864_p8 = pnand %p7862_p7, %p8413_p6 }
 0x153   : > { %p7871_p11 = por %p7870_p2, %p7869_p9 }
 0x154   : > { %p7865_p4 = pneg %p7864_p8 }
 0x155   : > { %7092 = dma.hbm_to_vmem [thread:$0]  (!%p8403_p5), %s9320_s22, 384, %s1188_s7, [#allocation23], %s9311_s11, %s9311_s11, %s8145_s16  }
 0x156   : > { %p7872_p10 = pnand %p7871_p11, %p7865_p4 }
 0x158   : > { %7875 = shalt.err (!%p7872_p10)
}
 0x159   : > { %s9321_s4 = sld [smem:[#allocation75_spill]]  ;;  %s8164_s2 = smov [#allocation30]  }
 0x15a   : > { %s1240_s7 = sshll.u32 %s8164_s2, 4  ;;  %s8165_s18 = smov [#allocation33]   ;;  %s1241_s7 = int_to_ptr.vmem [resolvable:$true] %s1240_s7 }
 0x15b   : > { %s1266_s23 = sshll.u32 %s8165_s18, 4  ;;  %s7887_s22 = scalar_lea.vmem %s1241_s7, 384  ;;  %s1267_s23 = int_to_ptr.vmem [resolvable:$true] %s1266_s23 }
 0x15c   : > { %p7888_p12 = scmp.ne.s32.totalorder %s1241_s7, %s7887_s22  ;;  %p7895_p0 = scmp.lt.s32.totalorder %s1241_s7, %s1241_s7 }
 0x15d   : > { %p7896_p1 = scmp.lt.s32.totalorder %s7887_s22, %s7887_s22 }
 0x15e   : > { %p7890_p13 = pnand %p7888_p12, %p8413_p6 }
 0x15f   : > { %7098 = dma.hbm_to_vmem [thread:$0]  (!%p8403_p5), %s9321_s4, 384, %s1214_s12, [#allocation26], %s9311_s11, %s9311_s11, %s8145_s16  }
 0x160   : > { %p7891_p3 = pneg %p7890_p13  ;;  %p7897_p7 = por %p7896_p1, %p7895_p0 }
 0x162   : > { %p7898_p8 = pnand %p7897_p7, %p7891_p3 }
 0x164   : > { %7901 = shalt.err (!%p7898_p8)
}
 0x165   : > { %s9322_s12 = sld [smem:[#allocation77_spill]]  ;;  %s7913_s10 = scalar_lea.vmem %s1267_s23, 384 }
 0x166   : > { %p7914_p4 = scmp.ne.s32.totalorder %s1267_s23, %s7913_s10  ;;  %p7921_p11 = scmp.lt.s32.totalorder %s1267_s23, %s1267_s23 }
 0x167   : > { %p7922_p10 = scmp.lt.s32.totalorder %s7913_s10, %s7913_s10 }
 0x168   : > { %p7916_p9 = pnand %p7914_p4, %p8413_p6 }
 0x169   : > { %p7923_p12 = por %p7922_p10, %p7921_p11 }
 0x16a   : > { %p7917_p2 = pneg %p7916_p9 }
 0x16b   : > { %7104 = dma.hbm_to_vmem [thread:$0]  (!%p8403_p5), %s9322_s12, 384, %s1241_s7, [#allocation29], %s9311_s11, %s9311_s11, %s8145_s16  }
 0x16c   : > { %p7924_p13 = pnand %p7923_p12, %p7917_p2 }
 0x16e   : > { %7927 = shalt.err (!%p7924_p13)
}
 0x16f   : > { %s9323_s4 = sld [smem:[#allocation78_spill]]  ;;  %s8166_s2 = smov [#allocation36]  }
 0x170   : > { %s1296_s7 = sshll.u32 %s8166_s2, 4  ;;  %s8167_s18 = smov [#allocation39]   ;;  %s1297_s7 = int_to_ptr.vmem [resolvable:$true] %s1296_s7 }
 0x171   : > { %s1322_s22 = sshll.u32 %s8167_s18, 4  ;;  %s7939_s12 = scalar_lea.vmem %s1297_s7, 128  ;;  %s1323_s22 = int_to_ptr.vmem [resolvable:$true] %s1322_s22 }
 0x172   : > { %p7940_p3 = scmp.ne.s32.totalorder %s1297_s7, %s7939_s12  ;;  %p7947_p7 = scmp.lt.s32.totalorder %s1297_s7, %s1297_s7 }
 0x173   : > { %p7948_p8 = scmp.lt.s32.totalorder %s7939_s12, %s7939_s12 }
 0x174   : > { %p7942_p0 = pnand %p7940_p3, %p8413_p6 }
 0x175   : > { %7110 = dma.hbm_to_vmem [thread:$0]  (!%p8403_p5), %s9323_s4, 384, %s1267_s23, [#allocation32], %s9311_s11, %s9311_s11, %s8145_s16  }
 0x176   : > { %p7943_p1 = pneg %p7942_p0  ;;  %p7949_p4 = por %p7948_p8, %p7947_p7 }
 0x178   : > { %p7950_p9 = pnand %p7949_p4, %p7943_p1 }
 0x17a   : > { %7953 = shalt.err (!%p7950_p9)
}
 0x17b   : > { %s9324_s10 = sld [smem:[#allocation80_spill]]  ;;  %s7965_s23 = scalar_lea.vmem %s1323_s22, 256 }
 0x17c   : > { %p7966_p2 = scmp.ne.s32.totalorder %s1323_s22, %s7965_s23  ;;  %p7973_p12 = scmp.lt.s32.totalorder %s1323_s22, %s1323_s22 }
 0x17d   : > { %p7974_p13 = scmp.lt.s32.totalorder %s7965_s23, %s7965_s23 }
 0x17e   : > { %p7968_p11 = pnand %p7966_p2, %p8413_p6 }
 0x17f   : > { %p7975_p3 = por %p7974_p13, %p7973_p12 }
 0x180   : > { %p7969_p10 = pneg %p7968_p11 }
 0x181   : > { %7116 = dma.hbm_to_vmem [thread:$0]  (!%p8403_p5), %s9324_s10, 128, %s1297_s7, [#allocation35]  }
 0x182   : > { %p7976_p0 = pnand %p7975_p3, %p7969_p10 }
 0x184   : > { %7979 = shalt.err (!%p7976_p0)
}
 0x185   : > { %s9325_s4 = sld [smem:[#allocation82_spill]]  ;;  %s8168_s2 = smov [#allocation42]  }
 0x186   : > { %s1348_s7 = sshll.u32 %s8168_s2, 4  ;;  %s8169_s18 = smov [#allocation43]   ;;  %s1349_s7 = int_to_ptr.vmem [resolvable:$true] %s1348_s7 }
 0x187   : > { %s1364_s12 = sshll.u32 %s8169_s18, 4  ;;  %s7991_s10 = scalar_lea.vmem %s1349_s7, 256  ;;  %s1365_s12 = int_to_ptr.vmem [resolvable:$true] %s1364_s12 }
 0x188   : > { %p7992_p1 = scmp.ne.s32.totalorder %s1349_s7, %s7991_s10  ;;  %p7999_p4 = scmp.lt.s32.totalorder %s1349_s7, %s1349_s7 }
 0x189   : > { %p8000_p9 = scmp.lt.s32.totalorder %s7991_s10, %s7991_s10 }
 0x18a   : > { %p7994_p7 = pnand %p7992_p1, %p8413_p6 }
 0x18b   : > { %7122 = dma.hbm_to_vmem [thread:$0]  (!%p8403_p5), %s9325_s4, 256, %s1323_s22, [#allocation38], %s9311_s11, %s9311_s11, %s8145_s16  }
 0x18c   : > { %p7995_p8 = pneg %p7994_p7  ;;  %p8001_p2 = por %p8000_p9, %p7999_p4 }
 0x18e   : > { %p8002_p11 = pnand %p8001_p2, %p7995_p8 }
 0x190   : > { %8005 = shalt.err (!%p8002_p11)
}
 0x191   : > { %s9326_s22 = sld [smem:[#allocation83_spill]]  ;;  %s8017_s23 = scalar_lea.vmem %s1365_s12, 256 }
 0x192   : > { %p8018_p10 = scmp.ne.s32.totalorder %s1365_s12, %s8017_s23  ;;  %p8025_p3 = scmp.lt.s32.totalorder %s1365_s12, %s1365_s12 }
 0x193   : > { %p8026_p0 = scmp.lt.s32.totalorder %s8017_s23, %s8017_s23 }
 0x194   : > { %p8020_p12 = pnand %p8018_p10, %p8413_p6 }
 0x195   : > { %p8027_p1 = por %p8026_p0, %p8025_p3 }
 0x196   : > { %p8021_p13 = pneg %p8020_p12 }
 0x197   : > { %7128 = dma.hbm_to_vmem [thread:$0]  (!%p8403_p5), %s9326_s22, 256, %s1349_s7, [#allocation41], %s9311_s11, %s9311_s11, %s8145_s16  }
 0x198   : > { %p8028_p7 = pnand %p8027_p1, %p8021_p13 }
 0x19a   : > { %8031 = shalt.err (!%p8028_p7)
}
 0x19b   : > { %7131 = dma.hbm_to_vmem [thread:$0]  (!%p8403_p5), %s8365_s3, 256, %s1365_s12, [#allocation44], %s9311_s11, %s9311_s11, %s8145_s16  }
 0x19c   : > { %p9327_p8 = scmp.ne.s32.totalorder %s9308_s1, 0 }
 0x19d   : > { %p9328_p4 = scmp.eq.s32.totalorder (!%p9327_p8), %s8388_s0, 0 }
 0x19e   : > { %1402 = sbr.rel (%p9327_p8) target bundleno = 5359 (0x14ef), region = 180 }
 0x1a3   : > { %8037 = dma.done.wait (%p9328_p4), [#allocation3], 768   ;;  %p9329_p6 = pmov %p9328_p4 }
 0x1a4   : > { %p9330_p9 = pmov %p9328_p4 }
 0x1a5   : > { %8039 = vsyncadd (%p9329_p6), [#allocation3], 4294966528 }
 0x1a6   : > { %8041 = dma.done.wait (%p9330_p9), [#allocation5], 1536   ;;  %p9331_p2 = pmov %p9328_p4 }
 0x1a8   : > { %8043 = vsyncadd (%p9331_p2), [#allocation5], 4294965760  ;;  %p9332_p11 = pmov %p9331_p2 }
 0x1a9   : > { %p9333_p5 = pmov %p9331_p2 }
 0x1aa   : > { %8045 = dma.done.wait (%p9332_p11), [#allocation8], 512  }
 0x1ab   : > { %8047 = vsyncadd (%p9333_p5), [#allocation8], 4294966784  ;;  %p9334_p10 = pmov %p9331_p2 }
 0x1ac   : > { %p9335_p12 = pmov %p9331_p2 }
 0x1ad   : > { %8049 = dma.done.wait (%p9334_p10), [#allocation11], 768  }
 0x1ae   : > { %8051 = vsyncadd (%p9335_p12), [#allocation11], 4294966528  ;;  %p9336_p13 = pmov %p9331_p2 }
 0x1af   : > { %p9337_p3 = pmov %p9331_p2 }
 0x1b0   : > { %8053 = dma.done.wait (%p9336_p13), [#allocation14], 512  }
 0x1b1   : > { %8055 = vsyncadd (%p9337_p3), [#allocation14], 4294966784  ;;  %p9338_p0 = pmov %p9331_p2 }
 0x1b3   : > { %8057 = dma.done.wait (%p9338_p0), [#allocation17], 768   ;;  %p9339_p1 = pmov %p9338_p0 }
 0x1b4   : > { %p9340_p7 = pmov %p9338_p0 }
 0x1b5   : > { %8059 = vsyncadd (%p9339_p1), [#allocation17], 4294966528 }
 0x1b6   : > { %8061 = dma.done.wait (%p9340_p7), [#allocation20], 512   ;;  %p9341_p8 = pmov %p9338_p0 }
 0x1b7   : > { %p9342_p4 = pmov %p9338_p0 }
 0x1b8   : > { %8063 = vsyncadd (%p9341_p8), [#allocation20], 4294966784 }
 0x1b9   : > { %8065 = dma.done.wait (%p9342_p4), [#allocation23], 768   ;;  %p9343_p6 = pmov %p9338_p0 }
 0x1ba   : > { %p9344_p9 = pmov %p9338_p0 }
 0x1bb   : > { %8067 = vsyncadd (%p9343_p6), [#allocation23], 4294966528 }
 0x1bc   : > { %8069 = dma.done.wait (%p9344_p9), [#allocation26], 768   ;;  %p9345_p2 = pmov %p9338_p0 }
 0x1bd   : > { %p9346_p11 = pmov %p9338_p0 }
 0x1be   : > { %8071 = vsyncadd (%p9345_p2), [#allocation26], 4294966528 }
 0x1bf   : > { %8073 = dma.done.wait (%p9346_p11), [#allocation29], 512   ;;  %p9347_p5 = pmov %p9338_p0 }
 0x1c0   : > { %p9348_p10 = pmov %p9338_p0 }
 0x1c1   : > { %8075 = vsyncadd (%p9347_p5), [#allocation29], 4294966784 }
 0x1c2   : > { %8077 = dma.done.wait (%p9348_p10), [#allocation32], 768   ;;  %p9349_p12 = pmov %p9338_p0 }
 0x1c3   : > { %p9350_p13 = pmov %p9338_p0 }
 0x1c4   : > { %8079 = vsyncadd (%p9349_p12), [#allocation32], 4294966528 }
 0x1c5   : > { %8081 = dma.done.wait (%p9350_p13), [#allocation35], 512   ;;  %p9351_p3 = pmov %p9338_p0 }
 0x1c7   : > { %8083 = vsyncadd (%p9351_p3), [#allocation35], 4294966784 }
 0x1c8   : > { %8085 = dma.done.wait (%p9338_p0), [#allocation38], 640   ;;  %p9352_p1 = pmov %p9338_p0 }
 0x1c9   : > { %p9353_p7 = pmov %p9338_p0 }
 0x1ca   : > { %8087 = vsyncadd (%p9352_p1), [#allocation38], 4294966656 }
 0x1cb   : > { %8089 = dma.done.wait (%p9353_p7), [#allocation41], 640   ;;  %p9354_p8 = pmov %p9338_p0 }
 0x1cc   : > { %p9355_p4 = pmov %p9338_p0 }
 0x1cd   : > { %8091 = vsyncadd (%p9354_p8), [#allocation41], 4294966656 }
 0x1ce   : > { %8093 = dma.done.wait (%p9355_p4), [#allocation44], 256   ;;  %p9356_p6 = pmov %p9338_p0 }
 0x1cf   : > { %s9357_s1 = sld [smem:[#allocation60_spill]]  ;;  %p1612_p9 = scmp.lt.s32.totalorder %s8388_s0, 1  ;;  %v1793_v0 = vld [vmem:[#allocation4 + $0x28] sm:$0xff]  ;;  %v1792_v1 = vld [vmem:[#allocation4 + $0x20] sm:$0xff]  ;;  %v1641_v2 = vld [vmem:[#allocation2 + $0x28] sm:$0xff]  ;;  %vm1642_vm0 = vcmask 392192  }
 0x1d0   : > { %8095 = vsyncadd (%p9356_p6), [#allocation44], 4294967040  ;;  %6408 = vmatprep.subr.mxu1 %v1793_v0  ;;  %v1640_v3 = vld [vmem:[#allocation2 + $0x20] sm:$0xff]  ;;  %v1791_v4 = vld [vmem:[#allocation4 + $0x18] sm:$0xff]  ;;  %6381 = vmatprep.subr.mxu0 %v1641_v2  ;;  %s9358_s16 = sld [smem:[#allocation61_spill]]  ;;  %v8170_v28 = vmov 0.0  }
 0x1d1   : > { %s9368_s0 = smov (!%p1612_p9, %s8388_s0), 1  ;;  %6409 = vmatpush3.msra.mxu1 %v1793_v0  ;;  %6382 = vmatpush3.msra.mxu0 %v1641_v2  ;;  %v1639_v5 = vld [vmem:[#allocation2 + $0x18] sm:$0xff]  ;;  %v1790_v6 = vld [vmem:[#allocation4 + $0x10] sm:$0xff]  ;;  %v1638_v9 = vld [vmem:[#allocation2 + $0x10] sm:$0xff]  ;;  %s9359_s4 = sld [smem:[#allocation63_spill]]  ;;  %vm2006_vm1 = vcmask 130048  }
 0x1d2   : > { %s6122_s15 = sshll.u32 %s9368_s0, 4  ;;  %6410 = vmatprep.subr.mxu1 %v1792_v1  ;;  %6383 = vmatprep.subr.mxu0 %v1640_v3  ;;  %v1789_v8 = vld [vmem:[#allocation4 + $0x8] sm:$0xff]  ;;  %v1788_v10 = vld [vmem:[#allocation4] sm:$0xff]  ;;  %v1637_v11 = vld [vmem:[#allocation2 + $0x8] sm:$0xff]  ;;  %vm8171_vm2 = vmmov 0   ;;  %s9360_s2 = sld [smem:[#allocation81_spill]] }
 0x1d3   : > { %6411 = vmatpush3.msra.mxu1 %v1792_v1  ;;  %6384 = vmatpush3.msra.mxu0 %v1640_v3  ;;  %v1884_v13 = vld [vmem:[#allocation6 + $0x28] sm:$0xff]  ;;  %v1636_v14 = vld [vmem:[#allocation2] sm:$0xff]  ;;  %v1882_v16 = vld [vmem:[#allocation6 + $0x18] sm:$0xff]  ;;  %vm2475_vm7 = vcmask 261120   ;;  %vm2563_vm8 = vcmask 195584   ;;  %s9361_s7 = sld [smem:[#allocation67_spill]] }
 0x1d4   : > { %6412 = vmatprep.subr.mxu1 %v1791_v4  ;;  %6385 = vmatprep.subr.mxu0 %v1639_v5  ;;  %v1883_v15 = vld [vmem:[#allocation6 + $0x20] sm:$0xff]  ;;  %v1881_v19 = vld [vmem:[#allocation6 + $0x10] sm:$0xff]  ;;  %v1880_v20 = vld [vmem:[#allocation6 + $0x8] sm:$0xff]  ;;  %vm2834_vm9 = vcmask 588800   ;;  %s9362_s18 = sld [smem:[#allocation64_spill]]  ;;  %vm3016_vm12 = vcmask 64512  }
 0x1d5   : > { %s1616_s26 = scalar_lea.vmem %s9357_s1, %s6122_s15  ;;  %6413 = vmatpush3.msra.mxu1 %v1791_v4  ;;  %6386 = vmatpush3.msra.mxu0 %v1639_v5  ;;  %v1879_v22 = vld [vmem:[#allocation6] sm:$0xff]  ;;  %s9363_s12 = sld [smem:[#allocation71_spill]] }
 0x1d6   : > { %v8707_v7 = vld [vmem:[%s1616_s26] sm:$0xff]  ;;  %6414 = vmatprep.subr.mxu1 %v1790_v6  ;;  %6387 = vmatprep.subr.mxu0 %v1638_v9  ;;  %v8711_v12 = vld [vmem:[%s1616_s26 + $0x8] sm:$0xff]  ;;  %s1621_s11 = scalar_lea.vmem %s9358_s16, %s6122_s15  ;;  %s9364_s10 = sld [smem:[#allocation84_spill]] }
 0x1d7   : > { %6415 = vmatpush3.msra.mxu1 %v1790_v6  ;;  %6420 = vmatprep.mubr.msk.f32.mxu1 %vm1642_vm0, %v8707_v7  ;;  %v8718_v17 = vld [vmem:[%s1621_s11] sm:$0xff]  ;;  %v8722_v18 = vld [vmem:[%s1621_s11 + $0x8] sm:$0xff]  ;;  %v1630_v21 = vmul.f32 %v8707_v7, %v8707_v7  ;;  %v1631_v23 = vmul.f32 %v8711_v12, %v8711_v12  ;;  %v1973_v49 = vld [vmem:[%s9359_s4 + $0x18] sm:$0xff]  ;;  %s9365_s22 = sld [smem:[#allocation76_spill]]  ;;  %s5983_s1 = sshll.u32 %s9368_s0, 3 }
 0x1d8   : > { %6416 = vmatprep.subr.mxu1 %v1789_v8  ;;  %6388 = vmatpush3.msra.mxu0 %v1638_v9  ;;  %v1632_v24 = vmul.f32 %v8718_v17, %v8718_v17  ;;  %v1633_v25 = vmul.f32 %v8722_v18, %v8722_v18  ;;  %v1634_v26 = vmul.f32 %v8718_v17, %v8707_v7  ;;  %v1971_v29 = vld [vmem:[%s9359_s4 + $0x8] sm:$0xff]  ;;  %v1970_v47 = vld [vmem:[%s9359_s4] sm:$0xff]  ;;  %v1972_v50 = vld [vmem:[%s9359_s4 + $0x10] sm:$0xff]  ;;  %s9366_s23 = sld [smem:[#allocation79_spill]]  ;;  %s1625_s15 = scalar_lea.vmem %s8380_s19, %s5983_s1 }
 0x1d9   : > { %6417 = vmatpush3.msra.mxu1 %v1789_v8  ;;  %6389 = vmatprep.subr.mxu0 %v1637_v11  ;;  %v1635_v27 = vmul.f32 %v8722_v18, %v8711_v12  ;;  %v1975_v51 = vld [vmem:[%s9359_s4 + $0x28] sm:$0xff]  ;;  %v1974_v52 = vld [vmem:[%s9359_s4 + $0x20] sm:$0xff]  ;;  %v1977_v53 = vld [vmem:[%s9359_s4 + $0x38] sm:$0xff] }
 0x1da   : > { %6418 = vmatprep.subr.mxu1 %v1788_v10  ;;  %6390 = vmatpush3.msra.mxu0 %v1637_v11  ;;  %v1976_v54 = vld [vmem:[%s9359_s4 + $0x30] sm:$0xff]  ;;  %v1979_v55 = vld [vmem:[%s9359_s4 + $0x48] sm:$0xff]  ;;  %v1978_v56 = vld [vmem:[%s9359_s4 + $0x40] sm:$0xff] }
 0x1db   : > { %6419 = vmatpush3.msra.mxu1 %v1788_v10  ;;  %6391 = vmatprep.subr.mxu0 %v1636_v14  ;;  %v1981_v57 = vld [vmem:[%s9359_s4 + $0x58] sm:$0xff]  ;;  %v1980_v58 = vld [vmem:[%s9359_s4 + $0x50] sm:$0xff]  ;;  %v1983_v59 = vld [vmem:[%s9359_s4 + $0x68] sm:$0xff] }
 0x1dc   : > { %6421 = vmatmul.mubr.msk.f32.vlgmr.msra.gmra.mxu1 %vm1642_vm0, %v8711_v12  ;;  %6426 = vmatprep.subr.mxu1 %v1884_v13  ;;  %v1982_v60 = vld [vmem:[%s9359_s4 + $0x60] sm:$0xff]  ;;  %v1985_v61 = vld [vmem:[%s9359_s4 + $0x78] sm:$0xff]  ;;  %v1984_v62 = vld [vmem:[%s9359_s4 + $0x70] sm:$0xff] }
 0x1dd   : > { %6427 = vmatpush3.msra.mxu1 %v1884_v13  ;;  %6392 = vmatpush3.msra.mxu0 %v1636_v14  ;;  %v1987_v63 = vld [vmem:[%s9359_s4 + $0x88] sm:$0xff]  ;;  %v1986_v0 = vld [vmem:[%s9359_s4 + $0x80] sm:$0xff]  ;;  %v1989_v1 = vld [vmem:[%s9359_s4 + $0x98] sm:$0xff] }
 0x1de   : > { %6428 = vmatprep.subr.mxu1 %v1883_v15  ;;  %6393 = vmatprep.mubr.msk.f32.mxu0 %vm1642_vm0, %v8707_v7  ;;  %v1988_v2 = vld [vmem:[%s9359_s4 + $0x90] sm:$0xff]  ;;  %v1991_v3 = vld [vmem:[%s9359_s4 + $0xa8] sm:$0xff]  ;;  %v1990_v4 = vld [vmem:[%s9359_s4 + $0xa0] sm:$0xff] }
 0x1df   : > { %6429 = vmatpush3.msra.mxu1 %v1883_v15  ;;  %6423 = vmatprep.mubr.msk.f32.mxu1 %vm1642_vm0, %v8718_v17  ;;  %v1993_v5 = vld [vmem:[%s9359_s4 + $0xb8] sm:$0xff]  ;;  %v1992_v6 = vld [vmem:[%s9359_s4 + $0xb0] sm:$0xff]  ;;  %v1995_v8 = vld [vmem:[%s9359_s4 + $0xc8] sm:$0xff] }
 0x1e0   : > { %6430 = vmatprep.subr.mxu1 %v1882_v16  ;;  %6394 = vmatmul.mubr.msk.f32.vlgmr.msra.gmra.mxu0 %vm1642_vm0, %v8711_v12  ;;  %v1994_v9 = vld [vmem:[%s9359_s4 + $0xc0] sm:$0xff]  ;;  %v1997_v10 = vld [vmem:[%s9359_s4 + $0xd8] sm:$0xff]  ;;  %v1996_v11 = vld [vmem:[%s9359_s4 + $0xd0] sm:$0xff] }
 0x1e1   : > { %6431 = vmatpush3.msra.mxu1 %v1882_v16  ;;  %6396 = vmatprep.mubr.msk.f32.mxu0 %vm1642_vm0, %v8718_v17  ;;  %v1999_v13 = vld [vmem:[%s9359_s4 + $0xe8] sm:$0xff]  ;;  %v1998_v14 = vld [vmem:[%s9359_s4 + $0xe0] sm:$0xff]  ;;  %v2001_v15 = vld [vmem:[%s9359_s4 + $0xf8] sm:$0xff] }
 0x1e2   : > { %6424 = vmatmul.mubr.msk.f32.gmra.mxu1 %vm1642_vm0, %v8722_v18  ;;  %6432 = vmatprep.subr.mxu1 %v1881_v19  ;;  %v2000_v16 = vld [vmem:[%s9359_s4 + $0xf0] sm:$0xff] }
 0x1e3   : > { %6433 = vmatpush3.msra.mxu1 %v1881_v19  ;;  %6438 = vmatprep.mubr.msk.f32.mxu1 %vm1642_vm0, %v8707_v7  ;;  %v2003_v19 = vld [vmem:[%s9359_s4 + $0x108] sm:$0xff] }
 0x1e4   : > { %6434 = vmatprep.subr.mxu1 %v1880_v20  ;;  %6397 = vmatmul.mubr.msk.f32.gmra.mxu0 %vm1642_vm0, %v8722_v18 }
 0x1e5   : > { %6435 = vmatpush3.msra.mxu1 %v1880_v20  ;;  %6399 = vmatprep.mubr.msk.f32.mxu0 %vm1642_vm0, %v1630_v21  ;;  %v2002_v20 = vld [vmem:[%s9359_s4 + $0x100] sm:$0xff]  ;;  %v2005_v21 = vld [vmem:[%s9359_s4 + $0x118] sm:$0xff] }
 0x1e6   : > { %6436 = vmatprep.subr.mxu1 %v1879_v22  ;;  %2061 = vmatprep.subr.mxu0 %v8170_v28 }
 0x1e7   : > { %6437 = vmatpush3.msra.mxu1 %v1879_v22  ;;  %v2004_v22 = vld [vmem:[%s9359_s4 + $0x110] sm:$0xff] }
 0x1e8   : > { %6439 = vmatmul.mubr.msk.f32.vlgmr.msra.gmra.mxu1 %vm1642_vm0, %v8711_v12  ;;  %6400 = vmatmul.mubr.msk.f32.gmra.mxu0 %vm1642_vm0, %v1631_v23 }
 0x1e9   : > { %6441 = vmatprep.mubr.msk.f32.mxu1 %vm1642_vm0, %v8718_v17  ;;  %6402 = vmatprep.mubr.msk.f32.mxu0 %vm1642_vm0, %v1632_v24 }
 0x1ea   : > { %6444 = vmatprep.subr.mxu1 %v8170_v28 }
 0x1ec   : > { %6442 = vmatmul.mubr.msk.f32.gmra.mxu1 %vm1642_vm0, %v8722_v18  ;;  %6403 = vmatmul.mubr.msk.f32.gmra.mxu0 %vm1642_vm0, %v1633_v25 }
 0x1ed   : > { %6405 = vmatprep.mubr.msk.f32.mxu0 %vm1642_vm0, %v1634_v26  ;;  %6448 = vmatprep.mubr.msk.f32.mxu1 %vm8171_vm2, %v8170_v28 }
 0x1f0   : > { %6406 = vmatmul.mubr.msk.f32.gmra.mxu0 %vm1642_vm0, %v1635_v27 }
 0x1f1   : > { %6002 = vmatprep.mubr.msk.f32.mxu0 %vm2006_vm1, %v1971_v29 }
 0x29c   : > { %v6422_v30 = vpop.f32.mrf.mxu1 }
 0x29e   : > { %v1860_v31 = vpop.f32.mrf.mxu1 }
 0x2a0   : > { %v6395_v32 = vpop.f32.mrf.mxu0 }
 0x2a2   : > { %v6425_v33 = vpop.f32.mrf.mxu1  ;;  %v1739_v34 = vpop.f32.mrf.mxu0 }
 0x2a4   : > { %v6398_v35 = vpop.f32.mrf.mxu0  ;;  %v1870_v36 = vpop.f32.mrf.mxu1 }
 0x2a6   : > { %v1749_v37 = vpop.f32.mrf.mxu0 }
 0x2a8   : > { %v6440_v38 = vpop.f32.mrf.mxu1  ;;  %v6401_v39 = vpop.f32.mrf.mxu0 }
 0x2a9   : > { %2062 = vmatpush1.msra.mxu0 %v6440_v38 }
 0x2aa   : > { %v1951_v40 = vpop.f32.mrf.mxu1  ;;  %2063 = vmatprep.subr.mxu0 %v8170_v28  ;;  %v1759_v41 = vpop.f32.mrf.mxu0 }
 0x2ab   : > { %2064 = vmatpush1.msra.mxu0 %v1951_v40 }
 0x2ac   : > { %2065 = vmatprep.subr.mxu0 %v8170_v28  ;;  %v6404_v42 = vpop.f32.mrf.mxu0  ;;  %v6443_v46 = vpop.f32.mrf.mxu1 }
 0x2ad   : > { %2066 = vmatpush1.msra.mxu0 %v6425_v33 }
 0x2ae   : > { %2067 = vmatprep.subr.mxu0 %v8170_v28  ;;  %v1769_v43 = vpop.f32.mrf.mxu0  ;;  %v1961_v48 = vpop.f32.mrf.mxu1 }
 0x2af   : > { %2068 = vmatpush1.msra.mxu0 %v1870_v36 }
 0x2b0   : > { %2069 = vmatprep.subr.mxu0 %v8170_v28  ;;  %v6407_v44 = vpop.f32.mrf.mxu0 }
 0x2b1   : > { %2070 = vmatpush1.msra.mxu0 %v6422_v30 }
 0x2b2   : > { %2071 = vmatprep.subr.mxu0 %v8170_v28  ;;  %v1779_v45 = vpop.f32.mrf.mxu0 }
 0x2b3   : > { %2072 = vmatpush1.msra.mxu0 %v1860_v31 }
 0x2b4   : > { %2073 = vmatprep.subr.mxu0 %v8170_v28 }
 0x2b5   : > { %2074 = vmatpush1.msra.mxu0 %v6407_v44 }
 0x2b6   : > { %2075 = vmatprep.subr.mxu0 %v8170_v28 }
 0x2b7   : > { %2076 = vmatpush1.msra.mxu0 %v1779_v45 }
 0x2b8   : > { %2077 = vmatprep.subr.mxu0 %v8170_v28 }
 0x2b9   : > { %2078 = vmatpush1.msra.mxu0 %v6404_v42 }
 0x2ba   : > { %2079 = vmatprep.subr.mxu0 %v8170_v28 }
 0x2bb   : > { %2080 = vmatpush1.msra.mxu0 %v1769_v43 }
 0x2bc   : > { %2081 = vmatprep.subr.mxu0 %v8170_v28 }
 0x2bd   : > { %2082 = vmatpush1.msra.mxu0 %v6401_v39 }
 0x2be   : > { %2083 = vmatprep.subr.mxu0 %v8170_v28 }
 0x2bf   : > { %2084 = vmatpush1.msra.mxu0 %v1759_v41 }
 0x2c0   : > { %2085 = vmatprep.subr.mxu0 %v8170_v28 }
 0x2c1   : > { %2086 = vmatpush1.msra.mxu0 %v6398_v35 }
 0x2c2   : > { %2087 = vmatprep.subr.mxu0 %v8170_v28 }
 0x2c3   : > { %2088 = vmatpush1.msra.mxu0 %v1749_v37 }
 0x2c4   : > { %2089 = vmatprep.subr.mxu0 %v8170_v28 }
 0x2c5   : > { %2090 = vmatpush1.msra.mxu0 %v6395_v32 }
 0x2c6   : > { %2091 = vmatprep.subr.mxu0 %v8170_v28 }
 0x2c7   : > { %2092 = vmatpush1.msra.mxu0 %v1739_v34 }
 0x2c8   : > { %2121 = vmatprep.subr.mxu0 %v8170_v28 }
 0x2c9   : > { %2122 = vmatpush2.msra.mxu0 %v6443_v46 }
 0x2ca   : > { %2123 = vmatprep.subr.mxu0 %v8170_v28 }
 0x2cb   : > { %2124 = vmatpush2.msra.mxu0 %v1961_v48 }
 0x2cc   : > { %2126 = vmatmul.mubr.f32.vlgmr.msra.gmra.mxu0 %v1970_v47  ;;  %6564 = vmatprep.subr.mxu0 %v8170_v28 }
 0x2cd   : > { %6003 = vmatprep.mubr.msk.f32.mxu0 %vm2006_vm1, %v1973_v49 }
 0x2d0   : > { %2131 = vmatmul.mubr.f32.gmra.mxu0 %v1972_v50 }
 0x2d1   : > { %6004 = vmatprep.mubr.msk.f32.mxu0 %vm2006_vm1, %v1975_v51 }
 0x2d4   : > { %2136 = vmatmul.mubr.f32.gmra.mxu0 %v1974_v52 }
 0x2d5   : > { %6005 = vmatprep.mubr.msk.f32.mxu0 %vm2006_vm1, %v1977_v53 }
 0x2d8   : > { %2141 = vmatmul.mubr.f32.gmra.mxu0 %v1976_v54 }
 0x2d9   : > { %6006 = vmatprep.mubr.msk.f32.mxu0 %vm2006_vm1, %v1979_v55 }
 0x2dc   : > { %2146 = vmatmul.mubr.f32.gmra.mxu0 %v1978_v56 }
 0x2dd   : > { %6007 = vmatprep.mubr.msk.f32.mxu0 %vm2006_vm1, %v1981_v57 }
 0x2e0   : > { %2151 = vmatmul.mubr.f32.gmra.mxu0 %v1980_v58 }
 0x2e1   : > { %6008 = vmatprep.mubr.msk.f32.mxu0 %vm2006_vm1, %v1983_v59 }
 0x2e4   : > { %2156 = vmatmul.mubr.f32.gmra.mxu0 %v1982_v60 }
 0x2e5   : > { %6009 = vmatprep.mubr.msk.f32.mxu0 %vm2006_vm1, %v1985_v61 }
 0x2e8   : > { %2161 = vmatmul.mubr.f32.gmra.mxu0 %v1984_v62 }
 0x2e9   : > { %6010 = vmatprep.mubr.msk.f32.mxu0 %vm2006_vm1, %v1987_v63 }
 0x2ec   : > { %2166 = vmatmul.mubr.f32.gmra.mxu0 %v1986_v0 }
 0x2ed   : > { %6011 = vmatprep.mubr.msk.f32.mxu0 %vm2006_vm1, %v1989_v1 }
 0x2f0   : > { %2171 = vmatmul.mubr.f32.gmra.mxu0 %v1988_v2 }
 0x2f1   : > { %6012 = vmatprep.mubr.msk.f32.mxu0 %vm2006_vm1, %v1991_v3 }
 0x2f4   : > { %2176 = vmatmul.mubr.f32.gmra.mxu0 %v1990_v4 }
 0x2f5   : > { %6013 = vmatprep.mubr.msk.f32.mxu0 %vm2006_vm1, %v1993_v5 }
 0x2f8   : > { %2181 = vmatmul.mubr.f32.gmra.mxu0 %v1992_v6 }
 0x2f9   : > { %6014 = vmatprep.mubr.msk.f32.mxu0 %vm2006_vm1, %v1995_v8 }
 0x2fc   : > { %2186 = vmatmul.mubr.f32.gmra.mxu0 %v1994_v9 }
 0x2fd   : > { %6015 = vmatprep.mubr.msk.f32.mxu0 %vm2006_vm1, %v1997_v10 }
 0x300   : > { %2191 = vmatmul.mubr.f32.gmra.mxu0 %v1996_v11 }
 0x301   : > { %6016 = vmatprep.mubr.msk.f32.mxu0 %vm2006_vm1, %v1999_v13 }
 0x304   : > { %2196 = vmatmul.mubr.f32.gmra.mxu0 %v1998_v14 }
 0x305   : > { %6017 = vmatprep.mubr.msk.f32.mxu0 %vm2006_vm1, %v2001_v15 }
 0x308   : > { %2201 = vmatmul.mubr.f32.gmra.mxu0 %v2000_v16 }
 0x309   : > { %6018 = vmatprep.mubr.msk.f32.mxu0 %vm2006_vm1, %v2003_v19 }
 0x30c   : > { %2206 = vmatmul.mubr.f32.gmra.mxu0 %v2002_v20 }
 0x30d   : > { %6019 = vmatprep.mubr.msk.f32.mxu0 %vm2006_vm1, %v2005_v21 }
 0x310   : > { %2211 = vmatmul.mubr.f32.gmra.mxu0 %v2004_v22 }
 0x311   : > { %6566 = vmatprep.mubr.msk.f32.mxu0 %vm8171_vm2, %v8170_v28 }
 0x38c   : > { %v2127_v23 = vpop.f32.mrf.mxu0 }
 0x38d   : > { %v2216_v29 = vmul.f32 %v2127_v23, %v2127_v23 }
 0x38e   : > { %v2129_v24 = vpop.f32.mrf.mxu0 }
 0x390   : > { %v2132_v25 = vpop.f32.mrf.mxu0 }
 0x391   : > { %v2217_v46 = vmul.f32 %v2132_v25, %v2132_v25 }
 0x392   : > { %v2134_v26 = vpop.f32.mrf.mxu0 }
 0x394   : > { %v2137_v27 = vpop.f32.mrf.mxu0 }
 0x395   : > { %v2218_v30 = vmul.f32 %v2137_v27, %v2137_v27  ;;  %v2220_v31 = vmul.f32 %v2137_v27, %v2127_v23 }
 0x396   : > { %v2139_v32 = vpop.f32.mrf.mxu0 }
 0x397   : > { %v2238_v33 = vadd.f32 %v2218_v30, %v2216_v29  ;;  %v2228_v3 = vmul.f32 2.0, %v2220_v31 }
 0x398   : > { %v2142_v34 = vpop.f32.mrf.mxu0 }
 0x399   : > { %v2221_v35 = vmul.f32 %v2142_v34, %v2132_v25  ;;  %v2219_v42 = vmul.f32 %v2142_v34, %v2142_v34  ;;  %v2240_v48 = vadd.f32 0.0001, %v2238_v33  ;;  %v2230_v9 = vadd.f32 0.0001, %v2228_v3 }
 0x39a   : > { %v2144_v36 = vpop.f32.mrf.mxu0 }
 0x39b   : > { %v2239_v50 = vadd.f32 %v2219_v42, %v2217_v46  ;;  %v2229_v10 = vmul.f32 2.0, %v2221_v35 }
 0x39c   : > { %v2147_v37 = vpop.f32.mrf.mxu0 }
 0x39d   : > { %v2222_v43 = vsub.f32 %v2147_v37, %v2216_v29  ;;  %v2241_v58 = vadd.f32 0.0001, %v2239_v50  ;;  %v2231_v19 = vadd.f32 0.0001, %v2229_v10 }
 0x39e   : > { %v2149_v38 = vpop.f32.mrf.mxu0 }
 0x3a0   : > { %v2152_v39 = vpop.f32.mrf.mxu0 }
 0x3a1   : > { %v2223_v51 = vsub.f32 %v2152_v39, %v2217_v46 }
 0x3a2   : > { %v2154_v40 = vpop.f32.mrf.mxu0 }
 0x3a4   : > { %v2157_v41 = vpop.f32.mrf.mxu0 }
 0x3a5   : > { %v2224_v44 = vsub.f32 %v2157_v41, %v2218_v30 }
 0x3a6   : > { %v2159_v45 = vpop.f32.mrf.mxu0 }
 0x3a7   : > { %v2242_v47 = vadd.f32 %v2224_v44, %v2222_v43 }
 0x3a8   : > { %v2162_v49 = vpop.f32.mrf.mxu0 }
 0x3a9   : > { %v2244_v52 = vadd.f32 0.0009, %v2242_v47  ;;  %v2225_v53 = vsub.f32 %v2162_v49, %v2219_v42 }
 0x3aa   : > { %v2164_v54 = vpop.f32.mrf.mxu0 }
 0x3ab   : > { %v2246_v55 = vmul.f32 %v2244_v52, %v2240_v48  ;;  %v2243_v56 = vadd.f32 %v2225_v53, %v2223_v51 }
 0x3ac   : > { %v2167_v57 = vpop.f32.mrf.mxu0 }
 0x3ad   : > { %7268 = vrcp.f32 %v2246_v55  ;;  %v2245_v59 = vadd.f32 0.0009, %v2243_v56  ;;  %v2226_v60 = vsub.f32 %v2167_v57, %v2220_v31 }
 0x3ae   : > { %v2169_v61 = vpop.f32.mrf.mxu0 }
 0x3af   : > { %v2247_v62 = vmul.f32 %v2245_v59, %v2241_v58  ;;  %v2232_v0 = vmul.f32 2.0, %v2226_v60 }
 0x3b0   : > { %v2172_v63 = vpop.f32.mrf.mxu0 }
 0x3b1   : > { %7270 = vrcp.f32 %v2247_v62  ;;  %v2227_v1 = vsub.f32 %v2172_v63, %v2221_v35  ;;  %v2234_v5 = vadd.f32 0.0009, %v2232_v0 }
 0x3b2   : > { %v2174_v2 = vpop.f32.mrf.mxu0 }
 0x3b3   : > { %v2233_v6 = vmul.f32 2.0, %v2227_v1  ;;  %v2236_v13 = vmul.f32 %v2234_v5, %v2230_v9 }
 0x3b4   : > { %v2177_v4 = vpop.f32.mrf.mxu0 }
 0x3b5   : > { %v2235_v14 = vadd.f32 0.0009, %v2233_v6  ;;  %v2252_v34 = vmul.f32 %v2177_v4, %v2177_v4 }
 0x3b6   : > { %v2179_v8 = vpop.f32.mrf.mxu0 }
 0x3b7   : > { %v2237_v22 = vmul.f32 %v2235_v14, %v2231_v19 }
 0x3b8   : > { %v2182_v11 = vpop.f32.mrf.mxu0 }
 0x3b9   : > { %v2253_v41 = vmul.f32 %v2182_v11, %v2182_v11 }
 0x3ba   : > { %v7269_v15 = vpop.eup %7268  ;;  %v2184_v16 = vpop.f32.mrf.mxu0 }
 0x3bb   : > { %v8838_v20 = vmul.f32 %v7269_v15, %v2236_v13 }
 0x3bc   : > { %v2187_v21 = vpop.f32.mrf.mxu0 }
 0x3bd   : > { %v2260_v36 = vmul.f32 %v2187_v21, %v2187_v21  ;;  %v2296_v21 = vmul.f32 0.85, %v8838_v20  ;;  %v2386_v20 = vld [vmem:[%s9360_s2 + $0x10] sm:$0xff] }
 0x3be   : > { %v7271_v23 = vpop.eup %7270  ;;  %v2189_v24 = vpop.f32.mrf.mxu0 }
 0x3bf   : > { %v2251_v25 = vmul.f32 %v7271_v23, %v2237_v22  ;;  %v2302_v24 = vld [vmem:[#allocation7] sm:$0xff] }
 0x3c0   : > { %v2192_v26 = vpop.f32.mrf.mxu0 }
 0x3c1   : > { %v2261_v43 = vmul.f32 %v2192_v26, %v2192_v26  ;;  %v2297_v15 = vmul.f32 0.85, %v2251_v25  ;;  %v2389_v26 = vld [vmem:[%s9360_s2 + $0x28] sm:$0xff]  ;;  %v2387_v25 = vld [vmem:[%s9360_s2 + $0x18] sm:$0xff] }
 0x3c2   : > { %v2194_v27 = vpop.f32.mrf.mxu0 }
 0x3c3   : > { %v2388_v27 = vld [vmem:[%s9360_s2 + $0x20] sm:$0xff] }
 0x3c4   : > { %v2197_v29 = vpop.f32.mrf.mxu0 }
 0x3c5   : > { %v2254_v32 = vmul.f32 %v2197_v29, %v2197_v29  ;;  %v2385_v29 = vld [vmem:[%s9360_s2 + $0x8] sm:$0xff] }
 0x3c6   : > { %v2199_v30 = vpop.f32.mrf.mxu0 }
 0x3c7   : > { %v2256_v37 = vadd.f32 %v2254_v32, %v2252_v34  ;;  %v2384_v30 = vld [vmem:[%s9360_s2] sm:$0xff] }
 0x3c8   : > { %v2202_v31 = vpop.f32.mrf.mxu0 }
 0x3c9   : > { %v2255_v38 = vmul.f32 %v2202_v31, %v2202_v31  ;;  %v2258_v45 = vadd.f32 1e-08, %v2256_v37  ;;  %v2560_v37 = vld [vmem:[#allocation9] sm:$0xff] }
 0x3ca   : > { %v2204_v33 = vpop.f32.mrf.mxu0 }
 0x3cb   : > { %v2257_v46 = vadd.f32 %v2255_v38, %v2253_v41  ;;  %v2671_v38 = vld [vmem:[#allocation10 + $0x10] sm:$0xff]  ;;  %v2670_v41 = vld [vmem:[#allocation10 + $0x8] sm:$0xff] }
 0x3cc   : > { %v2207_v35 = vpop.f32.mrf.mxu0 }
 0x3cd   : > { %v2262_v39 = vmul.f32 %v2207_v35, %v2207_v35  ;;  %v2259_v52 = vadd.f32 1e-08, %v2257_v46 }
 0x3ce   : > { %v2209_v40 = vpop.f32.mrf.mxu0 }
 0x3cf   : > { %v2264_v42 = vadd.f32 %v2262_v39, %v2260_v36 }
 0x3d0   : > { %v2212_v44 = vpop.f32.mrf.mxu0 }
 0x3d1   : > { %v2266_v47 = vadd.f32 1e-08, %v2264_v42  ;;  %v2263_v48 = vmul.f32 %v2212_v44, %v2212_v44  ;;  %v2669_v42 = vld [vmem:[#allocation10] sm:$0xff] }
 0x3d2   : > { %v2214_v49 = vpop.f32.mrf.mxu0 }
 0x3d3   : > { %v2268_v50 = vmul.f32 %v2266_v47, %v2258_v45  ;;  %v2265_v51 = vadd.f32 %v2263_v48, %v2261_v43  ;;  %v2288_v54 = vadd.f32 %v2266_v47, %v2258_v45  ;;  %v2749_v43 = vld [vmem:[#allocation12 + $0x10] sm:$0xff]  ;;  %v2748_v47 = vld [vmem:[#allocation12 + $0x8] sm:$0xff]  ;;  %v2747_v48 = vld [vmem:[#allocation12] sm:$0xff] }
 0x3d5   : > { %7272 = vrsqrt.f32 %v2268_v50  ;;  %v2267_v53 = vadd.f32 1e-08, %v2265_v51  ;;  %v2290_v57 = vadd.f32 0.0009, %v2288_v54  ;;  %vm2272_vm3 = vcmp.eq.f32.partialorder %v2268_v50, inf }
 0x3d6   : > { %v2275_v61 = vand.u32 2147483648, %v2268_v50  ;;  %vm2274_vm4 = vcmp.eq.f32.partialorder %v2268_v50, 0.0 }
 0x3d7   : > { %v2269_v55 = vmul.f32 %v2267_v53, %v2259_v52  ;;  %v2289_v56 = vadd.f32 %v2267_v53, %v2259_v52 }
 0x3d9   : > { %7274 = vrsqrt.f32 %v2269_v55  ;;  %v2291_v58 = vadd.f32 0.0009, %v2289_v56  ;;  %vm2279_vm5 = vcmp.eq.f32.partialorder %v2269_v55, inf  ;;  %v2282_v3 = vand.u32 2147483648, %v2269_v55 }
 0x3da   : > { %7276 = vrcp.f32 %v2290_v57  ;;  %vm2281_vm6 = vcmp.eq.f32.partialorder %v2269_v55, 0.0 }
 0x3db   : > { %7278 = vrcp.f32 %v2291_v58 }
 0x3e2   : > { %v7273_v59 = vpop.eup %7272 }
 0x3e3   : > { %v2271_v60 = vmul.f32 %v7273_v59, %v2268_v50 }
 0x3e5   : > { %v2273_v62 = vsel %vm2272_vm3, %v2268_v50, %v2271_v60 }
 0x3e6   : > { %v7275_v63 = vpop.eup %7274  ;;  %v2276_v0 = vsel %vm2274_vm4, %v2275_v61, %v2273_v62 }
 0x3e7   : > { %v2278_v1 = vmul.f32 %v7275_v63, %v2269_v55  ;;  %v2284_v2 = vmul.f32 2.0, %v2276_v0  ;;  %v7277_v9 = vpop.eup %7276  ;;  %v2825_v63 = vld [vmem:[%s9361_s7] sm:$0xff]  ;;  %v3243_v0 = vld [vmem:[#allocation40 + $0x10] sm:$0xff] }
 0x3e8   : > { %v7279_v13 = vpop.eup %7278 }
 0x3e9   : > { %v2280_v4 = vsel %vm2279_vm5, %v2269_v55, %v2278_v1  ;;  %v2286_v5 = vadd.f32 0.0009, %v2284_v2  ;;  %v3242_v1 = vld [vmem:[#allocation40 + $0x8] sm:$0xff]  ;;  %v2826_v2 = vld [vmem:[%s9361_s7 + $0x8] sm:$0xff] }
 0x3ea   : > { %v2283_v6 = vsel %vm2281_vm6, %v2282_v3, %v2280_v4  ;;  %v3241_v3 = vld [vmem:[#allocation40] sm:$0xff]  ;;  %v2827_v4 = vld [vmem:[%s9361_s7 + $0x10] sm:$0xff] }
 0x3eb   : > { %v2285_v8 = vmul.f32 2.0, %v2283_v6  ;;  %v2293_v11 = vmul.f32 %v7277_v9, %v2286_v5  ;;  %v2828_v5 = vld [vmem:[%s9361_s7 + $0x18] sm:$0xff]  ;;  %v2829_v6 = vld [vmem:[%s9361_s7 + $0x20] sm:$0xff]  ;;  %v2831_v9 = vld [vmem:[%s9361_s7 + $0x30] sm:$0xff] }
 0x3ed   : > { %v2287_v10 = vadd.f32 0.0009, %v2285_v8  ;;  %v2298_v19 = vmul.f32 0.15, %v2293_v11  ;;  %v2830_v8 = vld [vmem:[%s9361_s7 + $0x28] sm:$0xff]  ;;  %v2833_v11 = vld [vmem:[%s9361_s7 + $0x40] sm:$0xff] }
 0x3ef   : > { %v2295_v14 = vmul.f32 %v7279_v13, %v2287_v10  ;;  %v2300_v23 = vadd.f32 %v2298_v19, %v2296_v21  ;;  %v2832_v10 = vld [vmem:[%s9361_s7 + $0x38] sm:$0xff] }
 0x3f1   : > { %v2299_v16 = vmul.f32 0.15, %v2295_v14 }
 0x3f3   : > { %v2301_v22 = vadd.f32 %v2299_v16, %v2297_v15 }
 0x3f5   : > { %6445 = vmatpush3.msra.mxu1 %v2301_v22 }
 0x3f6   : > { %6446 = vmatprep.subr.mxu1 %v8170_v28 }
 0x3f7   : > { %6447 = vmatpush3.msra.mxu1 %v2300_v23 }
 0x3f8   : > { %6449 = vmatmul.mubr.msk.f32.vlgmr.msra.gmra.mxu1 %vm2006_vm1, %v2302_v24  ;;  %6451 = vmatprep.subr.mxu1 %v2389_v26 }
 0x3f9   : > { %6452 = vmatpush3.msra.mxu1 %v2389_v26  ;;  %6463 = vmatprep.mubr.msk.f32.mxu1 %vm1642_vm0, %v8707_v7  ;;  %v2382_v7 = vld [vmem:[#allocation39] sm:$0xff] }
 0x3fa   : > { %6453 = vmatprep.subr.mxu1 %v2388_v27 }
 0x3fb   : > { %6454 = vmatpush3.msra.mxu1 %v2388_v27 }
 0x3fc   : > { %6455 = vmatprep.subr.mxu1 %v2387_v25 }
 0x3fd   : > { %6456 = vmatpush3.msra.mxu1 %v2387_v25 }
 0x3fe   : > { %6457 = vmatprep.subr.mxu1 %v2386_v20 }
 0x3ff   : > { %6458 = vmatpush3.msra.mxu1 %v2386_v20 }
 0x400   : > { %6459 = vmatprep.subr.mxu1 %v2385_v29 }
 0x401   : > { %6460 = vmatpush3.msra.mxu1 %v2385_v29 }
 0x402   : > { %6461 = vmatprep.subr.mxu1 %v2384_v30 }
 0x403   : > { %6462 = vmatpush3.msra.mxu1 %v2384_v30 }
 0x404   : > { %6464 = vmatmul.mubr.msk.f32.vlgmr.msra.gmra.mxu1 %vm1642_vm0, %v8711_v12  ;;  %v2383_v12 = vld [vmem:[#allocation39 + $0x8] sm:$0xff] }
 0x405   : > { %6466 = vmatprep.mubr.msk.f32.mxu1 %vm1642_vm0, %v8718_v17  ;;  %v2562_v17 = vld [vmem:[#allocation9 + $0x10] sm:$0xff] }
 0x408   : > { %6467 = vmatmul.mubr.msk.f32.gmra.mxu1 %vm1642_vm0, %v8722_v18  ;;  %v2561_v18 = vld [vmem:[#allocation9 + $0x8] sm:$0xff] }
 0x409   : > { %6477 = vmatprep.mubr.msk.f32.mxu1 %vm2475_vm7, %v2382_v7 }
 0x4b8   : > { %v8858_v31 = vpop.f32.mrf.mxu1 }
 0x4ba   : > { %v6450_v32 = vpop.f32.mrf.mxu1 }
 0x4c4   : > { %v6465_v33 = vpop.f32.mrf.mxu1 }
 0x4c6   : > { %v2456_v34 = vpop.f32.mrf.mxu1 }
 0x4c8   : > { %v6468_v35 = vpop.f32.mrf.mxu1 }
 0x4c9   : > { %6469 = vmatprep.subr.mxu1 %v6468_v35 }
 0x4ca   : > { %v2466_v36 = vpop.f32.mrf.mxu1  ;;  %6470 = vmatpush3.msra.mxu1 %v6468_v35 }
 0x4cb   : > { %6471 = vmatprep.subr.mxu1 %v2466_v36 }
 0x4cc   : > { %6472 = vmatpush3.msra.mxu1 %v2466_v36 }
 0x4cd   : > { %6473 = vmatprep.subr.mxu1 %v6465_v33 }
 0x4ce   : > { %6474 = vmatpush3.msra.mxu1 %v6465_v33 }
 0x4cf   : > { %6475 = vmatprep.subr.mxu1 %v2456_v34 }
 0x4d0   : > { %6476 = vmatpush3.msra.mxu1 %v2456_v34 }
 0x4d1   : > { %6478 = vmatmul.mubr.msk.f32.vlgmr.msra.gmra.mxu1 %vm2475_vm7, %v2383_v12  ;;  %6480 = vmatprep.subr.mxu1 %v8170_v28 }
 0x4d2   : > { %6481 = vmatpush3.msra.mxu1 %v2562_v17  ;;  %6486 = vmatprep.mubr.msk.f32.mxu1 %vm8171_vm2, %v8170_v28 }
 0x4d3   : > { %6482 = vmatprep.subr.mxu1 %v8170_v28 }
 0x4d4   : > { %6483 = vmatpush3.msra.mxu1 %v2561_v18 }
 0x4d5   : > { %6484 = vmatprep.subr.mxu1 %v8170_v28 }
 0x4d6   : > { %6485 = vmatpush3.msra.mxu1 %v2560_v37 }
 0x4d7   : > { %6501 = vmatprep.subr.mxu1 %v2671_v38 }
 0x591   : > { %v8866_v39 = vpop.f32.mrf.mxu1 }
 0x592   : > { %v2558_v45 = vmul.f32 %v8866_v39, %v8866_v39 }
 0x593   : > { %v8868_v40 = vpop.f32.mrf.mxu1 }
 0x594   : > { %6487 = vmatmul.mubr.msk.f32.vlgmr.msra.gmra.mxu1 %vm2563_vm8, %v8868_v40  ;;  %v2557_v44 = vmul.f32 %v8868_v40, %v8868_v40  ;;  %v2559_v46 = vmul.f32 %v8866_v39, %v8868_v40 }
 0x595   : > { %6489 = vmatprep.mubr.msk.f32.mxu1 %vm8171_vm2, %v8170_v28  ;;  %6502 = vmatpush3.msra.mxu1 %v2671_v38 }
 0x596   : > { %6503 = vmatprep.subr.mxu1 %v2670_v41 }
 0x597   : > { %6504 = vmatpush3.msra.mxu1 %v2670_v41 }
 0x598   : > { %6490 = vmatmul.mubr.msk.f32.gmra.mxu1 %vm2563_vm8, %v8866_v39  ;;  %6505 = vmatprep.subr.mxu1 %v2669_v42 }
 0x599   : > { %6492 = vmatprep.mubr.msk.f32.mxu1 %vm8171_vm2, %v8170_v28  ;;  %6506 = vmatpush3.msra.mxu1 %v2669_v42 }
 0x59a   : > { %6510 = vmatprep.subr.mxu1 %v2749_v43 }
 0x59c   : > { %6493 = vmatmul.mubr.msk.f32.gmra.mxu1 %vm2563_vm8, %v2557_v44 }
 0x59d   : > { %6495 = vmatprep.mubr.msk.f32.mxu1 %vm8171_vm2, %v8170_v28 }
 0x5a0   : > { %6496 = vmatmul.mubr.msk.f32.gmra.mxu1 %vm2563_vm8, %v2558_v45 }
 0x5a1   : > { %6498 = vmatprep.mubr.msk.f32.mxu1 %vm8171_vm2, %v8170_v28 }
 0x5a4   : > { %6499 = vmatmul.mubr.msk.f32.gmra.mxu1 %vm2563_vm8, %v2559_v46 }
 0x5a5   : > { %6507 = vmatprep.mubr.msk.f32.mxu1 %vm2563_vm8, %v8868_v40 }
 0x5a8   : > { %6508 = vmatmul.mubr.msk.f32.vlgmr.msra.gmra.mxu1 %vm2563_vm8, %v8866_v39 }
 0x5a9   : > { %6511 = vmatpush3.msra.mxu1 %v2749_v43  ;;  %6516 = vmatprep.mubr.msk.f32.mxu1 %vm2563_vm8, %v8868_v40 }
 0x5aa   : > { %6512 = vmatprep.subr.mxu1 %v2748_v47 }
 0x5ab   : > { %6513 = vmatpush3.msra.mxu1 %v2748_v47 }
 0x5ac   : > { %6514 = vmatprep.subr.mxu1 %v2747_v48 }
 0x5ad   : > { %6515 = vmatpush3.msra.mxu1 %v2747_v48 }
 0x5ae   : > { %6517 = vmatmul.mubr.msk.f32.vlgmr.msra.gmra.mxu1 %vm2563_vm8, %v8866_v39  ;;  %6519 = vmatprep.subr.mxu1 %v8170_v28 }
 0x5af   : > { %6537 = vmatprep.mubr.msk.f32.mxu1 %vm8171_vm2, %v8170_v28 }
 0x654   : > { %v2645_v49 = vpop.f32.mrf.mxu1 }
 0x656   : > { %v6488_v50 = vpop.f32.mrf.mxu1 }
 0x658   : > { %v2650_v51 = vpop.f32.mrf.mxu1 }
 0x65a   : > { %v6491_v52 = vpop.f32.mrf.mxu1 }
 0x65c   : > { %v2655_v53 = vpop.f32.mrf.mxu1 }
 0x65e   : > { %v6494_v54 = vpop.f32.mrf.mxu1 }
 0x660   : > { %v2660_v55 = vpop.f32.mrf.mxu1 }
 0x662   : > { %v6497_v56 = vpop.f32.mrf.mxu1 }
 0x664   : > { %v2665_v57 = vpop.f32.mrf.mxu1 }
 0x666   : > { %v6500_v58 = vpop.f32.mrf.mxu1 }
 0x668   : > { %v6509_v59 = vpop.f32.mrf.mxu1 }
 0x66a   : > { %v2738_v60 = vpop.f32.mrf.mxu1 }
 0x66e   : > { %v6518_v61 = vpop.f32.mrf.mxu1 }
 0x66f   : > { %6520 = vmatpush3.msra.mxu1 %v6518_v61 }
 0x670   : > { %v2816_v62 = vpop.f32.mrf.mxu1  ;;  %6521 = vmatprep.subr.mxu1 %v8170_v28 }
 0x671   : > { %6522 = vmatpush3.msra.mxu1 %v2816_v62 }
 0x672   : > { %6523 = vmatprep.subr.mxu1 %v8170_v28 }
 0x673   : > { %6524 = vmatpush3.msra.mxu1 %v6509_v59 }
 0x674   : > { %6525 = vmatprep.subr.mxu1 %v8170_v28 }
 0x675   : > { %6526 = vmatpush3.msra.mxu1 %v2738_v60 }
 0x676   : > { %6527 = vmatprep.subr.mxu1 %v8170_v28 }
 0x677   : > { %6528 = vmatpush3.msra.mxu1 %v2665_v57 }
 0x678   : > { %6529 = vmatprep.subr.mxu1 %v8170_v28 }
 0x679   : > { %6530 = vmatpush3.msra.mxu1 %v2660_v55 }
 0x67a   : > { %6531 = vmatprep.subr.mxu1 %v8170_v28 }
 0x67b   : > { %6532 = vmatpush3.msra.mxu1 %v2655_v53 }
 0x67c   : > { %6533 = vmatprep.subr.mxu1 %v8170_v28 }
 0x67d   : > { %6534 = vmatpush3.msra.mxu1 %v2650_v51 }
 0x67e   : > { %6535 = vmatprep.subr.mxu1 %v8170_v28 }
 0x67f   : > { %6536 = vmatpush3.msra.mxu1 %v2645_v49 }
 0x680   : > { %6538 = vmatmul.mubr.msk.f32.vlgmr.msra.gmra.mxu1 %vm2834_vm9, %v2825_v63  ;;  %6593 = vmatprep.subr.mxu1 %v3243_v0 }
 0x681   : > { %6540 = vmatprep.mubr.msk.f32.mxu1 %vm8171_vm2, %v8170_v28  ;;  %6594 = vmatpush3.msra.mxu1 %v3243_v0 }
 0x682   : > { %6595 = vmatprep.subr.mxu1 %v3242_v1 }
 0x683   : > { %6596 = vmatpush3.msra.mxu1 %v3242_v1 }
 0x684   : > { %6541 = vmatmul.mubr.msk.f32.gmra.mxu1 %vm2834_vm9, %v2826_v2  ;;  %6597 = vmatprep.subr.mxu1 %v3241_v3 }
 0x685   : > { %6543 = vmatprep.mubr.msk.f32.mxu1 %vm8171_vm2, %v8170_v28  ;;  %6598 = vmatpush3.msra.mxu1 %v3241_v3 }
 0x686   : > { %6609 = vmatprep.subr.mxu1 %v8170_v28 }
 0x688   : > { %6544 = vmatmul.mubr.msk.f32.gmra.mxu1 %vm2834_vm9, %v2827_v4 }
 0x689   : > { %6546 = vmatprep.mubr.msk.f32.mxu1 %vm8171_vm2, %v8170_v28 }
 0x68c   : > { %6547 = vmatmul.mubr.msk.f32.gmra.mxu1 %vm2834_vm9, %v2828_v5 }
 0x68d   : > { %6549 = vmatprep.mubr.msk.f32.mxu1 %vm8171_vm2, %v8170_v28 }
 0x690   : > { %6550 = vmatmul.mubr.msk.f32.gmra.mxu1 %vm2834_vm9, %v2829_v6 }
 0x691   : > { %6552 = vmatprep.mubr.msk.f32.mxu1 %vm8171_vm2, %v8170_v28 }
 0x694   : > { %6553 = vmatmul.mubr.msk.f32.gmra.mxu1 %vm2834_vm9, %v2830_v8 }
 0x695   : > { %6555 = vmatprep.mubr.msk.f32.mxu1 %vm8171_vm2, %v8170_v28 }
 0x698   : > { %6556 = vmatmul.mubr.msk.f32.gmra.mxu1 %vm2834_vm9, %v2831_v9  ;;  %v3015_v9 = vld [vmem:[#allocation13] sm:$0xff] }
 0x699   : > { %6558 = vmatprep.mubr.msk.f32.mxu1 %vm8171_vm2, %v8170_v28 }
 0x69c   : > { %6559 = vmatmul.mubr.msk.f32.gmra.mxu1 %vm2834_vm9, %v2832_v10  ;;  %v3092_v10 = vld [vmem:[#allocation15 + $0x10] sm:$0xff] }
 0x69d   : > { %6561 = vmatprep.mubr.msk.f32.mxu1 %vm8171_vm2, %v8170_v28 }
 0x6a0   : > { %6562 = vmatmul.mubr.msk.f32.gmra.mxu1 %vm2834_vm9, %v2833_v11  ;;  %v3091_v11 = vld [vmem:[#allocation15 + $0x8] sm:$0xff] }
 0x6a1   : > { %6599 = vmatprep.mubr.msk.f32.mxu1 %vm2563_vm8, %v8868_v40 }
 0x6a4   : > { %6600 = vmatmul.mubr.msk.f32.vlgmr.msra.gmra.mxu1 %vm2563_vm8, %v8866_v39 }
 0x6a5   : > { %6615 = vmatprep.mubr.msk.f32.mxu1 %vm8171_vm2, %v8170_v28 }
 0x740   : > { %v2928_v13 = vpop.f32.mrf.mxu1 }
 0x741   : > { %v2972_v32 = vmul.f32 %v2928_v13, %v2928_v13 }
 0x742   : > { %v6539_v14 = vpop.f32.mrf.mxu1 }
 0x743   : > { %v2381_v14 = vld [vmem:[%s9362_s18 + $0x28] sm:$0xff] }
 0x744   : > { %v2933_v15 = vpop.f32.mrf.mxu1 }
 0x745   : > { %v2973_v30 = vmul.f32 %v2933_v15, %v2933_v15  ;;  %v2974_v50 = vmul.f32 %v2933_v15, %v2928_v13  ;;  %v3090_v13 = vld [vmem:[#allocation15] sm:$0xff] }
 0x746   : > { %v6542_v16 = vpop.f32.mrf.mxu1 }
 0x747   : > { %v2983_v41 = vadd.f32 %v2973_v30, %v2972_v32  ;;  %v2978_v54 = vmul.f32 2.0, %v2974_v50  ;;  %v2380_v16 = vld [vmem:[%s9362_s18 + $0x20] sm:$0xff] }
 0x748   : > { %v2938_v19 = vpop.f32.mrf.mxu1 }
 0x749   : > { %v2975_v36 = vsub.f32 %v2938_v19, %v2972_v32  ;;  %v2984_v46 = vadd.f32 0.0001, %v2983_v41  ;;  %v2979_v59 = vadd.f32 0.0001, %v2978_v54  ;;  %v3404_v32 = vld [vmem:[#allocation16 + $0x8] sm:$0xff] }
 0x74a   : > { %v6545_v21 = vpop.f32.mrf.mxu1 }
 0x74b   : > { %v2379_v21 = vld [vmem:[%s9362_s18 + $0x18] sm:$0xff] }
 0x74c   : > { %v2943_v22 = vpop.f32.mrf.mxu1 }
 0x74d   : > { %v2976_v33 = vsub.f32 %v2943_v22, %v2973_v30  ;;  %v2378_v22 = vld [vmem:[%s9362_s18 + $0x10] sm:$0xff] }
 0x74e   : > { %v6548_v23 = vpop.f32.mrf.mxu1  ;;  %v3405_v30 = vld [vmem:[#allocation16 + $0x10] sm:$0xff] }
 0x74f   : > { %v2985_v18 = vadd.f32 %v2976_v33, %v2975_v36  ;;  %v2377_v23 = vld [vmem:[%s9362_s18 + $0x8] sm:$0xff]  ;;  %6610 = vmatpush3.msra.mxu1 %v3405_v30  ;;  %v3403_v33 = vld [vmem:[#allocation16] sm:$0xff] }
 0x750   : > { %v2948_v24 = vpop.f32.mrf.mxu1  ;;  %6611 = vmatprep.subr.mxu1 %v8170_v28 }
 0x751   : > { %v2986_v43 = vadd.f32 0.0009, %v2985_v18  ;;  %v2977_v52 = vsub.f32 %v2948_v24, %v2974_v50  ;;  %v2376_v24 = vld [vmem:[%s9362_s18] sm:$0xff]  ;;  %6612 = vmatpush3.msra.mxu1 %v3404_v32 }
 0x752   : > { %v6551_v26 = vpop.f32.mrf.mxu1  ;;  %6613 = vmatprep.subr.mxu1 %v8170_v28 }
 0x753   : > { %v2987_v48 = vmul.f32 %v2986_v43, %v2984_v46  ;;  %v2980_v53 = vmul.f32 2.0, %v2977_v52  ;;  %6614 = vmatpush3.msra.mxu1 %v3403_v33 }
 0x754   : > { %v2953_v27 = vpop.f32.mrf.mxu1  ;;  %6648 = vmatprep.subr.mxu1 %v8170_v28 }
 0x755   : > { %v2990_v12 = vmul.f32 %v2953_v27, %v2953_v27  ;;  %v2981_v56 = vadd.f32 0.0009, %v2980_v53  ;;  %v3239_v27 = vld [vmem:[#allocation42] sm:$0xff] }
 0x756   : > { %v6554_v25 = vpop.f32.mrf.mxu1 }
 0x757   : > { %v2982_v63 = vmul.f32 %v2981_v56, %v2979_v59  ;;  %v3668_v59 = vld [vmem:[%s9363_s12 + $0x8] sm:$0xff] }
 0x758   : > { %v2958_v20 = vpop.f32.mrf.mxu1 }
 0x759   : > { %v2994_v37 = vmul.f32 %v2958_v20, %v2958_v20  ;;  %v3240_v20 = vld [vmem:[#allocation42 + $0x8] sm:$0xff] }
 0x75a   : > { %v6557_v29 = vpop.f32.mrf.mxu1 }
 0x75b   : > { %v3513_v29 = vld [vmem:[#allocation18 + $0x10] sm:$0xff] }
 0x75c   : > { %v2963_v7 = vpop.f32.mrf.mxu1 }
 0x75d   : > { %v2991_v34 = vmul.f32 %v2963_v7, %v2963_v7  ;;  %v3512_v7 = vld [vmem:[#allocation18 + $0x8] sm:$0xff] }
 0x75e   : > { %v6560_v35 = vpop.f32.mrf.mxu1 }
 0x75f   : > { %v2992_v38 = vadd.f32 %v2991_v34, %v2990_v12  ;;  %v3591_v34 = vld [vmem:[#allocation19 + $0x10] sm:$0xff] }
 0x760   : > { %v2968_v17 = vpop.f32.mrf.mxu1 }
 0x761   : > { %v2995_v39 = vmul.f32 %v2968_v17, %v2968_v17  ;;  %v2993_v44 = vadd.f32 1e-08, %v2992_v38 }
 0x762   : > { %v6563_v40 = vpop.f32.mrf.mxu1 }
 0x763   : > { %v2996_v42 = vadd.f32 %v2995_v39, %v2994_v37  ;;  %v3590_v39 = vld [vmem:[#allocation19 + $0x8] sm:$0xff]  ;;  %v3589_v40 = vld [vmem:[#allocation19] sm:$0xff] }
 0x764   : > { %v6601_v26 = vpop.f32.mrf.mxu1 }
 0x765   : > { %v2997_v45 = vadd.f32 1e-08, %v2996_v42 }
 0x766   : > { %v3310_v25 = vpop.f32.mrf.mxu1 }
 0x767   : > { %v2998_v47 = vmul.f32 %v2997_v45, %v2993_v44  ;;  %v3008_v49 = vadd.f32 %v2997_v45, %v2993_v44 }
 0x769   : > { %7280 = vrsqrt.f32 %v2998_v47  ;;  %v3009_v51 = vadd.f32 0.0009, %v3008_v49  ;;  %vm3001_vm10 = vcmp.eq.f32.partialorder %v2998_v47, inf  ;;  %v3004_v58 = vand.u32 2147483648, %v2998_v47 }
 0x76a   : > { %7282 = vrcp.f32 %v2987_v48  ;;  %vm3003_vm11 = vcmp.eq.f32.partialorder %v2998_v47, 0.0 }
 0x76b   : > { %7284 = vrcp.f32 %v3009_v51 }
 0x776   : > { %v7281_v55 = vpop.eup %7280 }
 0x777   : > { %v3000_v57 = vmul.f32 %v7281_v55, %v2998_v47  ;;  %v7283_v61 = vpop.eup %7282 }
 0x778   : > { %v2989_v1 = vmul.f32 %v7283_v61, %v2982_v63  ;;  %v7285_v3 = vpop.eup %7284  ;;  %v3670_v61 = vld [vmem:[%s9363_s12 + $0x18] sm:$0xff]  ;;  %v3672_v63 = vld [vmem:[%s9363_s12 + $0x28] sm:$0xff] }
 0x779   : > { %v3002_v60 = vsel %vm3001_vm10, %v2998_v47, %v3000_v57 }
 0x77a   : > { %v3005_v62 = vsel %vm3003_vm11, %v3004_v58, %v3002_v60  ;;  %v3012_v5 = vmul.f32 0.85, %v2989_v1  ;;  %v3667_v58 = vld [vmem:[%s9363_s12] sm:$0xff]  ;;  %v3669_v60 = vld [vmem:[%s9363_s12 + $0x10] sm:$0xff]  ;;  %v3674_v1 = vld [vmem:[%s9363_s12 + $0x38] sm:$0xff] }
 0x77b   : > { %v3006_v0 = vmul.f32 2.0, %v3005_v62  ;;  %v3671_v62 = vld [vmem:[%s9363_s12 + $0x20] sm:$0xff] }
 0x77d   : > { %v3007_v2 = vadd.f32 0.0009, %v3006_v0  ;;  %v3673_v0 = vld [vmem:[%s9363_s12 + $0x30] sm:$0xff] }
 0x77f   : > { %v3011_v4 = vmul.f32 %v7285_v3, %v3007_v2  ;;  %v3675_v2 = vld [vmem:[%s9363_s12 + $0x40] sm:$0xff] }
 0x781   : > { %v3013_v6 = vmul.f32 0.15, %v3011_v4 }
 0x783   : > { %v3014_v8 = vadd.f32 %v3013_v6, %v3012_v5 }
 0x785   : > { %6565 = vmatpush3.msra.mxu0 %v3014_v8 }
 0x786   : > { %6567 = vmatmul.mubr.msk.f32.vlgmr.msra.gmra.mxu0 %vm3016_vm12, %v3015_v9  ;;  %6569 = vmatprep.subr.mxu0 %v8170_v28 }
 0x787   : > { %6570 = vmatpush3.msra.mxu0 %v3092_v10  ;;  %6575 = vmatprep.mubr.msk.f32.mxu0 %vm8171_vm2, %v8170_v28 }
 0x788   : > { %6571 = vmatprep.subr.mxu0 %v8170_v28 }
 0x789   : > { %6572 = vmatpush3.msra.mxu0 %v3091_v11 }
 0x78a   : > { %6573 = vmatprep.subr.mxu0 %v8170_v28 }
 0x78b   : > { %6574 = vmatpush3.msra.mxu0 %v3090_v13 }
 0x78c   : > { %6578 = vmatprep.subr.mxu0 %v8170_v28 }
 0x846   : > { %v3086_v15 = vpop.f32.mrf.mxu0 }
 0x847   : > { %6576 = vmatmul.mubr.msk.f32.vlgmr.msra.gmra.mxu0 %vm2563_vm8, %v3086_v15 }
 0x848   : > { %6579 = vmatpush3.msra.mxu0 %v2381_v14  ;;  %6590 = vmatprep.mubr.msk.f32.mxu0 %vm8171_vm2, %v8170_v28  ;;  %v6568_v19 = vpop.f32.mrf.mxu0 }
 0x849   : > { %6580 = vmatprep.subr.mxu0 %v8170_v28 }
 0x84a   : > { %6581 = vmatpush3.msra.mxu0 %v2380_v16 }
 0x84b   : > { %6582 = vmatprep.subr.mxu0 %v8170_v28 }
 0x84c   : > { %6583 = vmatpush3.msra.mxu0 %v2379_v21 }
 0x84d   : > { %6584 = vmatprep.subr.mxu0 %v8170_v28 }
 0x84e   : > { %6585 = vmatpush3.msra.mxu0 %v2378_v22 }
 0x84f   : > { %6586 = vmatprep.subr.mxu0 %v8170_v28 }
 0x850   : > { %6587 = vmatpush3.msra.mxu0 %v2377_v23 }
 0x851   : > { %6588 = vmatprep.subr.mxu0 %v8170_v28 }
 0x852   : > { %6589 = vmatpush3.msra.mxu0 %v2376_v24 }
 0x853   : > { %6591 = vmatmul.mubr.msk.f32.vlgmr.msra.gmra.mxu0 %vm1642_vm0, %v8858_v31  ;;  %6602 = vmatprep.subr.mxu0 %v6601_v26  ;;  %v3511_v31 = vld [vmem:[#allocation18] sm:$0xff] }
 0x854   : > { %6603 = vmatpush3.msra.mxu0 %v6601_v26  ;;  %6606 = vmatprep.mubr.msk.f32.mxu0 %vm2006_vm1, %v3239_v27 }
 0x855   : > { %6604 = vmatprep.subr.mxu0 %v3310_v25 }
 0x856   : > { %6605 = vmatpush3.msra.mxu0 %v3310_v25 }
 0x857   : > { %6607 = vmatmul.mubr.msk.f32.vlgmr.msra.gmra.mxu0 %vm2006_vm1, %v3240_v20  ;;  %6630 = vmatprep.subr.mxu0 %v3513_v29 }
 0x858   : > { %6631 = vmatpush3.msra.mxu0 %v3513_v29 }
 0x859   : > { %6632 = vmatprep.subr.mxu0 %v3512_v7 }
 0x85a   : > { %6633 = vmatpush3.msra.mxu0 %v3512_v7 }
 0x85b   : > { %6634 = vmatprep.subr.mxu0 %v3511_v31 }
 0x85c   : > { %6635 = vmatpush3.msra.mxu0 %v3511_v31 }
 0x85d   : > { %6639 = vmatprep.subr.mxu0 %v3591_v34 }
 0x907   : > { %v3162_v35 = vpop.f32.mrf.mxu0 }
 0x909   : > { %v6577_v36 = vpop.f32.mrf.mxu0 }
 0x913   : > { %v3235_v12 = vpop.f32.mrf.mxu0 }
 0x914   : > { %v8979_v17 = vadd.f32 %v3235_v12, %v3162_v35 }
 0x915   : > { %v6592_v18 = vpop.f32.mrf.mxu0 }
 0x917   : > { %v8981_v37 = vpop.f32.mrf.mxu0 }
 0x918   : > { %v3401_v42 = vmul.f32 %v8981_v37, %v8981_v37 }
 0x919   : > { %v8983_v38 = vpop.f32.mrf.mxu0 }
 0x91a   : > { %6616 = vmatmul.mubr.msk.f32.vlgmr.msra.gmra.mxu1 %vm2563_vm8, %v8983_v38  ;;  %6636 = vmatprep.mubr.msk.f32.mxu0 %vm2563_vm8, %v8983_v38  ;;  %v3400_v41 = vmul.f32 %v8983_v38, %v8983_v38  ;;  %v3402_v43 = vmul.f32 %v8981_v37, %v8983_v38 }
 0x91b   : > { %6618 = vmatprep.mubr.msk.f32.mxu1 %vm8171_vm2, %v8170_v28  ;;  %6637 = vmatmul.mubr.msk.f32.vlgmr.msra.gmra.mxu0 %vm2563_vm8, %v8981_v37 }
 0x91c   : > { %6640 = vmatpush3.msra.mxu0 %v3591_v34  ;;  %6645 = vmatprep.mubr.msk.f32.mxu0 %vm2563_vm8, %v8983_v38 }
 0x91d   : > { %6641 = vmatprep.subr.mxu0 %v3590_v39 }
 0x91e   : > { %6619 = vmatmul.mubr.msk.f32.gmra.mxu1 %vm2563_vm8, %v8981_v37  ;;  %6642 = vmatpush3.msra.mxu0 %v3590_v39 }
 0x91f   : > { %6643 = vmatprep.subr.mxu0 %v3589_v40  ;;  %6621 = vmatprep.mubr.msk.f32.mxu1 %vm8171_vm2, %v8170_v28 }
 0x920   : > { %6644 = vmatpush3.msra.mxu0 %v3589_v40 }
 0x921   : > { %6646 = vmatmul.mubr.msk.f32.vlgmr.msra.gmra.mxu0 %vm2563_vm8, %v8981_v37  ;;  %6693 = vmatprep.subr.mxu0 %v8170_v28 }
 0x922   : > { %6622 = vmatmul.mubr.msk.f32.gmra.mxu1 %vm2563_vm8, %v3400_v41  ;;  %6695 = vmatprep.mubr.msk.f32.mxu0 %vm8171_vm2, %v8170_v28 }
 0x923   : > { %6624 = vmatprep.mubr.msk.f32.mxu1 %vm8171_vm2, %v8170_v28 }
 0x926   : > { %6625 = vmatmul.mubr.msk.f32.gmra.mxu1 %vm2563_vm8, %v3401_v42 }
 0x927   : > { %6627 = vmatprep.mubr.msk.f32.mxu1 %vm8171_vm2, %v8170_v28 }
 0x92a   : > { %6628 = vmatmul.mubr.msk.f32.gmra.mxu1 %vm2563_vm8, %v3402_v43 }
 0x92b   : > { %6666 = vmatprep.mubr.msk.f32.mxu1 %vm8171_vm2, %v8170_v28 }
 0x9da   : > { %v3487_v44 = vpop.f32.mrf.mxu1 }
 0x9db   : > { %v6638_v45 = vpop.f32.mrf.mxu0 }
 0x9dc   : > { %v6617_v46 = vpop.f32.mrf.mxu1 }
 0x9dd   : > { %v3580_v47 = vpop.f32.mrf.mxu0 }
 0x9de   : > { %v3492_v48 = vpop.f32.mrf.mxu1 }
 0x9e0   : > { %v6620_v49 = vpop.f32.mrf.mxu1 }
 0x9e1   : > { %v6647_v50 = vpop.f32.mrf.mxu0 }
 0x9e2   : > { %v3497_v51 = vpop.f32.mrf.mxu1  ;;  %6649 = vmatpush3.msra.mxu1 %v6647_v50 }
 0x9e3   : > { %v3658_v52 = vpop.f32.mrf.mxu0  ;;  %6650 = vmatprep.subr.mxu1 %v8170_v28 }
 0x9e4   : > { %v6623_v53 = vpop.f32.mrf.mxu1  ;;  %6651 = vmatpush3.msra.mxu1 %v3658_v52 }
 0x9e5   : > { %6652 = vmatprep.subr.mxu1 %v8170_v28 }
 0x9e6   : > { %v3502_v54 = vpop.f32.mrf.mxu1  ;;  %6653 = vmatpush3.msra.mxu1 %v6638_v45 }
 0x9e7   : > { %6654 = vmatprep.subr.mxu1 %v8170_v28 }
 0x9e8   : > { %v6626_v55 = vpop.f32.mrf.mxu1  ;;  %6655 = vmatpush3.msra.mxu1 %v3580_v47 }
 0x9e9   : > { %6656 = vmatprep.subr.mxu1 %v8170_v28 }
 0x9ea   : > { %v3507_v56 = vpop.f32.mrf.mxu1 }
 0x9eb   : > { %6657 = vmatpush3.msra.mxu1 %v3507_v56 }
 0x9ec   : > { %6658 = vmatprep.subr.mxu1 %v8170_v28  ;;  %v6629_v57 = vpop.f32.mrf.mxu1 }
 0x9ed   : > { %6659 = vmatpush3.msra.mxu1 %v3502_v54 }
 0x9ee   : > { %6660 = vmatprep.subr.mxu1 %v8170_v28 }
 0x9ef   : > { %6661 = vmatpush3.msra.mxu1 %v3497_v51 }
 0x9f0   : > { %6662 = vmatprep.subr.mxu1 %v8170_v28 }
 0x9f1   : > { %6663 = vmatpush3.msra.mxu1 %v3492_v48 }
 0x9f2   : > { %6664 = vmatprep.subr.mxu1 %v8170_v28 }
 0x9f3   : > { %6665 = vmatpush3.msra.mxu1 %v3487_v44 }
 0x9f4   : > { %6667 = vmatmul.mubr.msk.f32.vlgmr.msra.gmra.mxu1 %vm2834_vm9, %v3667_v58 }
 0x9f5   : > { %6669 = vmatprep.mubr.msk.f32.mxu1 %vm8171_vm2, %v8170_v28 }
 0x9f8   : > { %6670 = vmatmul.mubr.msk.f32.gmra.mxu1 %vm2834_vm9, %v3668_v59 }
 0x9f9   : > { %6672 = vmatprep.mubr.msk.f32.mxu1 %vm8171_vm2, %v8170_v28 }
 0x9fc   : > { %6673 = vmatmul.mubr.msk.f32.gmra.mxu1 %vm2834_vm9, %v3669_v60 }
 0x9fd   : > { %6675 = vmatprep.mubr.msk.f32.mxu1 %vm8171_vm2, %v8170_v28 }
 0xa00   : > { %6676 = vmatmul.mubr.msk.f32.gmra.mxu1 %vm2834_vm9, %v3670_v61 }
 0xa01   : > { %6678 = vmatprep.mubr.msk.f32.mxu1 %vm8171_vm2, %v8170_v28 }
 0xa04   : > { %6679 = vmatmul.mubr.msk.f32.gmra.mxu1 %vm2834_vm9, %v3671_v62 }
 0xa05   : > { %6681 = vmatprep.mubr.msk.f32.mxu1 %vm8171_vm2, %v8170_v28 }
 0xa08   : > { %6682 = vmatmul.mubr.msk.f32.gmra.mxu1 %vm2834_vm9, %v3672_v63 }
 0xa09   : > { %6684 = vmatprep.mubr.msk.f32.mxu1 %vm8171_vm2, %v8170_v28 }
 0xa0c   : > { %6685 = vmatmul.mubr.msk.f32.gmra.mxu1 %vm2834_vm9, %v3673_v0 }
 0xa0d   : > { %6687 = vmatprep.mubr.msk.f32.mxu1 %vm8171_vm2, %v8170_v28 }
 0xa10   : > { %6688 = vmatmul.mubr.msk.f32.gmra.mxu1 %vm2834_vm9, %v3674_v1 }
 0xa11   : > { %6690 = vmatprep.mubr.msk.f32.mxu1 %vm8171_vm2, %v8170_v28 }
 0xa14   : > { %6691 = vmatmul.mubr.msk.f32.gmra.mxu1 %vm2834_vm9, %v3675_v2  ;;  %v3856_v2 = vld [vmem:[#allocation21] sm:$0xff] }
 0xab4   : > { %v3769_v3 = vpop.f32.mrf.mxu1 }
 0xab5   : > { %v3813_v24 = vmul.f32 %v3769_v3, %v3769_v3 }
 0xab6   : > { %v6668_v4 = vpop.f32.mrf.mxu1 }
 0xab7   : > { %v3931_v4 = vld [vmem:[#allocation22 + $0x8] sm:$0xff] }
 0xab8   : > { %v3774_v5 = vpop.f32.mrf.mxu1 }
 0xab9   : > { %v3814_v22 = vmul.f32 %v3774_v5, %v3774_v5  ;;  %v3815_v44 = vmul.f32 %v3774_v5, %v3769_v3  ;;  %v3932_v3 = vld [vmem:[#allocation22 + $0x10] sm:$0xff]  ;;  %v3930_v5 = vld [vmem:[#allocation22] sm:$0xff] }
 0xaba   : > { %v6671_v6 = vpop.f32.mrf.mxu1 }
 0xabb   : > { %v3824_v35 = vadd.f32 %v3814_v22, %v3813_v24  ;;  %v3819_v48 = vmul.f32 2.0, %v3815_v44  ;;  %v4011_v6 = vld [vmem:[%s9364_s10 + $0x10] sm:$0xff] }
 0xabc   : > { %v3779_v8 = vpop.f32.mrf.mxu1 }
 0xabd   : > { %v3816_v20 = vsub.f32 %v3779_v8, %v3813_v24  ;;  %v3825_v40 = vadd.f32 0.0001, %v3824_v35  ;;  %v3820_v53 = vadd.f32 0.0001, %v3819_v48  ;;  %v4279_v24 = vld [vmem:[#allocation25] sm:$0xff]  ;;  %v4436_v48 = vld [vmem:[%s9365_s22 + $0x8] sm:$0xff] }
 0xabe   : > { %v6674_v9 = vpop.f32.mrf.mxu1 }
 0xabf   : > { %v4010_v9 = vld [vmem:[%s9364_s10 + $0x8] sm:$0xff] }
 0xac0   : > { %v3784_v10 = vpop.f32.mrf.mxu1 }
 0xac1   : > { %v3817_v26 = vsub.f32 %v3784_v10, %v3814_v22  ;;  %v4009_v10 = vld [vmem:[%s9364_s10] sm:$0xff]  ;;  %v4008_v22 = vld [vmem:[#allocation43 + $0x8] sm:$0xff] }
 0xac2   : > { %v6677_v11 = vpop.f32.mrf.mxu1 }
 0xac3   : > { %v3826_v7 = vadd.f32 %v3817_v26, %v3816_v20  ;;  %v4171_v26 = vld [vmem:[#allocation24] sm:$0xff] }
 0xac4   : > { %v3789_v13 = vpop.f32.mrf.mxu1 }
 0xac5   : > { %v3827_v12 = vadd.f32 0.0009, %v3826_v7  ;;  %v3818_v46 = vsub.f32 %v3789_v13, %v3815_v44  ;;  %v4007_v13 = vld [vmem:[#allocation43] sm:$0xff] }
 0xac6   : > { %v6680_v14 = vpop.f32.mrf.mxu1 }
 0xac7   : > { %v3828_v42 = vmul.f32 %v3827_v12, %v3825_v40  ;;  %v3821_v47 = vmul.f32 2.0, %v3818_v46  ;;  %v4281_v14 = vld [vmem:[#allocation25 + $0x10] sm:$0xff] }
 0xac8   : > { %v3794_v15 = vpop.f32.mrf.mxu1  ;;  %6744 = vmatprep.subr.mxu1 %v4281_v14 }
 0xac9   : > { %v3831_v29 = vmul.f32 %v3794_v15, %v3794_v15  ;;  %v3822_v50 = vadd.f32 0.0009, %v3821_v47  ;;  %6745 = vmatpush3.msra.mxu1 %v4281_v14  ;;  %v4435_v47 = vld [vmem:[%s9365_s22] sm:$0xff] }
 0xaca   : > { %v6683_v16 = vpop.f32.mrf.mxu1 }
 0xacb   : > { %v3823_v57 = vmul.f32 %v3822_v50, %v3820_v53  ;;  %v4438_v50 = vld [vmem:[%s9365_s22 + $0x18] sm:$0xff]  ;;  %v4441_v53 = vld [vmem:[%s9365_s22 + $0x30] sm:$0xff] }
 0xacc   : > { %v3799_v19 = vpop.f32.mrf.mxu1 }
 0xacd   : > { %v3835_v32 = vmul.f32 %v3799_v19, %v3799_v19 }
 0xace   : > { %v6686_v21 = vpop.f32.mrf.mxu1 }
 0xad0   : > { %v3804_v23 = vpop.f32.mrf.mxu1 }
 0xad1   : > { %v3832_v27 = vmul.f32 %v3804_v23, %v3804_v23  ;;  %v4173_v23 = vld [vmem:[#allocation24 + $0x10] sm:$0xff] }
 0xad2   : > { %v6689_v25 = vpop.f32.mrf.mxu1 }
 0xad3   : > { %v3833_v31 = vadd.f32 %v3832_v27, %v3831_v29  ;;  %v4359_v27 = vld [vmem:[#allocation27 + $0x10] sm:$0xff]  ;;  %v4358_v29 = vld [vmem:[#allocation27 + $0x8] sm:$0xff] }
 0xad4   : > { %v3809_v30 = vpop.f32.mrf.mxu1 }
 0xad5   : > { %v3836_v33 = vmul.f32 %v3809_v30, %v3809_v30  ;;  %v3834_v18 = vadd.f32 1e-08, %v3833_v31  ;;  %v4357_v30 = vld [vmem:[#allocation27] sm:$0xff] }
 0xad6   : > { %v6692_v34 = vpop.f32.mrf.mxu1 }
 0xad7   : > { %v3837_v36 = vadd.f32 %v3836_v33, %v3835_v32 }
 0xad9   : > { %v3838_v39 = vadd.f32 1e-08, %v3837_v36 }
 0xadb   : > { %v3839_v41 = vmul.f32 %v3838_v39, %v3834_v18  ;;  %v3849_v43 = vadd.f32 %v3838_v39, %v3834_v18 }
 0xadd   : > { %7286 = vrsqrt.f32 %v3839_v41  ;;  %v3850_v45 = vadd.f32 0.0009, %v3849_v43  ;;  %vm3842_vm13 = vcmp.eq.f32.partialorder %v3839_v41, inf  ;;  %v3845_v52 = vand.u32 2147483648, %v3839_v41 }
 0xade   : > { %7288 = vrcp.f32 %v3828_v42  ;;  %vm3844_vm14 = vcmp.eq.f32.partialorder %v3839_v41, 0.0 }
 0xadf   : > { %7290 = vrcp.f32 %v3850_v45 }
 0xaea   : > { %v7287_v49 = vpop.eup %7286 }
 0xaeb   : > { %v3841_v51 = vmul.f32 %v7287_v49, %v3839_v41  ;;  %v7289_v55 = vpop.eup %7288  ;;  %v4437_v49 = vld [vmem:[%s9365_s22 + $0x10] sm:$0xff] }
 0xaec   : > { %v3830_v59 = vmul.f32 %v7289_v55, %v3823_v57  ;;  %v7291_v61 = vpop.eup %7290  ;;  %v4443_v55 = vld [vmem:[%s9365_s22 + $0x40] sm:$0xff] }
 0xaed   : > { %v3843_v54 = vsel %vm3842_vm13, %v3839_v41, %v3841_v51  ;;  %v4439_v51 = vld [vmem:[%s9365_s22 + $0x20] sm:$0xff] }
 0xaee   : > { %v3846_v56 = vsel %vm3844_vm14, %v3845_v52, %v3843_v54  ;;  %v3853_v63 = vmul.f32 0.85, %v3830_v59  ;;  %v4440_v52 = vld [vmem:[%s9365_s22 + $0x28] sm:$0xff]  ;;  %v4442_v54 = vld [vmem:[%s9365_s22 + $0x38] sm:$0xff] }
 0xaef   : > { %v3847_v58 = vmul.f32 2.0, %v3846_v56 }
 0xaf1   : > { %v3848_v60 = vadd.f32 0.0009, %v3847_v58 }
 0xaf3   : > { %v3852_v62 = vmul.f32 %v7291_v61, %v3848_v60 }
 0xaf5   : > { %v3854_v0 = vmul.f32 0.15, %v3852_v62 }
 0xaf7   : > { %v3855_v1 = vadd.f32 %v3854_v0, %v3853_v63 }
 0xaf9   : > { %6694 = vmatpush3.msra.mxu0 %v3855_v1 }
 0xafa   : > { %6696 = vmatmul.mubr.msk.f32.vlgmr.msra.gmra.mxu0 %vm3016_vm12, %v3856_v2  ;;  %6698 = vmatprep.subr.mxu0 %v8170_v28 }
 0xafb   : > { %6699 = vmatpush3.msra.mxu0 %v3932_v3  ;;  %6704 = vmatprep.mubr.msk.f32.mxu0 %vm8171_vm2, %v8170_v28 }
 0xafc   : > { %6700 = vmatprep.subr.mxu0 %v8170_v28 }
 0xafd   : > { %6701 = vmatpush3.msra.mxu0 %v3931_v4 }
 0xafe   : > { %6702 = vmatprep.subr.mxu0 %v8170_v28 }
 0xaff   : > { %6703 = vmatpush3.msra.mxu0 %v3930_v5 }
 0xb00   : > { %6707 = vmatprep.subr.mxu0 %v4011_v6 }
 0xbba   : > { %v3926_v8 = vpop.f32.mrf.mxu0 }
 0xbbb   : > { %6705 = vmatmul.mubr.msk.f32.vlgmr.msra.gmra.mxu0 %vm2563_vm8, %v3926_v8 }
 0xbbc   : > { %6708 = vmatpush3.msra.mxu0 %v4011_v6  ;;  %6713 = vmatprep.mubr.msk.f32.mxu0 %vm2563_vm8, %v8983_v38  ;;  %v6697_v11 = vpop.f32.mrf.mxu0 }
 0xbbd   : > { %6709 = vmatprep.subr.mxu0 %v4010_v9 }
 0xbbe   : > { %6710 = vmatpush3.msra.mxu0 %v4010_v9 }
 0xbbf   : > { %6711 = vmatprep.subr.mxu0 %v4009_v10 }
 0xbc0   : > { %6712 = vmatpush3.msra.mxu0 %v4009_v10 }
 0xbc1   : > { %6714 = vmatmul.mubr.msk.f32.vlgmr.msra.gmra.mxu0 %vm2563_vm8, %v8981_v37  ;;  %v4172_v37 = vld [vmem:[#allocation24 + $0x8] sm:$0xff] }
 0xbc2   : > { %6720 = vmatprep.mubr.msk.f32.mxu0 %vm2006_vm1, %v4007_v13 }
 0xc7b   : > { %v4002_v15 = vpop.f32.mrf.mxu0 }
 0xc7c   : > { %v9077_v16 = vadd.f32 %v4002_v15, %v8979_v17  ;;  %v4280_v17 = vld [vmem:[#allocation25 + $0x8] sm:$0xff] }
 0xc7d   : > { %v6706_v38 = vpop.f32.mrf.mxu0  ;;  %6746 = vmatprep.subr.mxu1 %v4280_v17 }
 0xc7e   : > { %6747 = vmatpush3.msra.mxu1 %v4280_v17 }
 0xc7f   : > { %6748 = vmatprep.subr.mxu1 %v4279_v24 }
 0xc80   : > { %6749 = vmatpush3.msra.mxu1 %v4279_v24 }
 0xc81   : > { %v6715_v19 = vpop.f32.mrf.mxu0  ;;  %6753 = vmatprep.subr.mxu1 %v4359_v27 }
 0xc82   : > { %6716 = vmatprep.subr.mxu0 %v6715_v19 }
 0xc83   : > { %v4078_v21 = vpop.f32.mrf.mxu0  ;;  %6717 = vmatpush3.msra.mxu0 %v6715_v19 }
 0xc84   : > { %6718 = vmatprep.subr.mxu0 %v4078_v21 }
 0xc85   : > { %6719 = vmatpush3.msra.mxu0 %v4078_v21 }
 0xc86   : > { %6721 = vmatmul.mubr.msk.f32.vlgmr.msra.gmra.mxu0 %vm2006_vm1, %v4008_v22  ;;  %6723 = vmatprep.subr.mxu0 %v8170_v28 }
 0xc87   : > { %6724 = vmatpush3.msra.mxu0 %v4173_v23  ;;  %6729 = vmatprep.mubr.msk.f32.mxu0 %vm8171_vm2, %v8170_v28 }
 0xc88   : > { %6725 = vmatprep.subr.mxu0 %v8170_v28 }
 0xc89   : > { %6726 = vmatpush3.msra.mxu0 %v4172_v37 }
 0xc8a   : > { %6727 = vmatprep.subr.mxu0 %v8170_v28 }
 0xc8b   : > { %6728 = vmatpush3.msra.mxu0 %v4171_v26 }
 0xc8c   : > { %6762 = vmatprep.subr.mxu0 %v8170_v28 }
 0xd46   : > { %v9086_v25 = vpop.f32.mrf.mxu0 }
 0xd47   : > { %v4169_v32 = vmul.f32 %v9086_v25, %v9086_v25 }
 0xd48   : > { %v9088_v20 = vpop.f32.mrf.mxu0 }
 0xd49   : > { %6730 = vmatmul.mubr.msk.f32.vlgmr.msra.gmra.mxu0 %vm2563_vm8, %v9088_v20  ;;  %6750 = vmatprep.mubr.msk.f32.mxu1 %vm2563_vm8, %v9088_v20  ;;  %v4168_v7 = vmul.f32 %v9088_v20, %v9088_v20  ;;  %v4170_v31 = vmul.f32 %v9086_v25, %v9088_v20 }
 0xd4a   : > { %6732 = vmatprep.mubr.msk.f32.mxu0 %vm8171_vm2, %v8170_v28  ;;  %6751 = vmatmul.mubr.msk.f32.vlgmr.msra.gmra.mxu1 %vm2563_vm8, %v9086_v25 }
 0xd4b   : > { %6754 = vmatpush3.msra.mxu1 %v4359_v27  ;;  %6759 = vmatprep.mubr.msk.f32.mxu1 %vm2563_vm8, %v9088_v20 }
 0xd4c   : > { %6755 = vmatprep.subr.mxu1 %v4358_v29 }
 0xd4d   : > { %6733 = vmatmul.mubr.msk.f32.gmra.mxu0 %vm2563_vm8, %v9086_v25  ;;  %6756 = vmatpush3.msra.mxu1 %v4358_v29 }
 0xd4e   : > { %6757 = vmatprep.subr.mxu1 %v4357_v30  ;;  %6735 = vmatprep.mubr.msk.f32.mxu0 %vm8171_vm2, %v8170_v28 }
 0xd4f   : > { %6758 = vmatpush3.msra.mxu1 %v4357_v30 }
 0xd50   : > { %6760 = vmatmul.mubr.msk.f32.vlgmr.msra.gmra.mxu1 %vm2563_vm8, %v9086_v25  ;;  %6807 = vmatprep.subr.mxu1 %v8170_v28 }
 0xd51   : > { %6736 = vmatmul.mubr.msk.f32.gmra.mxu0 %vm2563_vm8, %v4168_v7  ;;  %6809 = vmatprep.mubr.msk.f32.mxu1 %vm8171_vm2, %v8170_v28 }
 0xd52   : > { %6738 = vmatprep.mubr.msk.f32.mxu0 %vm8171_vm2, %v8170_v28 }
 0xd55   : > { %6739 = vmatmul.mubr.msk.f32.gmra.mxu0 %vm2563_vm8, %v4169_v32 }
 0xd56   : > { %6741 = vmatprep.mubr.msk.f32.mxu0 %vm8171_vm2, %v8170_v28 }
 0xd59   : > { %6742 = vmatmul.mubr.msk.f32.gmra.mxu0 %vm2563_vm8, %v4170_v31 }
 0xd5a   : > { %6780 = vmatprep.mubr.msk.f32.mxu0 %vm8171_vm2, %v8170_v28 }
 0xe09   : > { %v4255_v33 = vpop.f32.mrf.mxu0 }
 0xe0a   : > { %v6752_v34 = vpop.f32.mrf.mxu1 }
 0xe0b   : > { %v6731_v35 = vpop.f32.mrf.mxu0 }
 0xe0c   : > { %v4348_v36 = vpop.f32.mrf.mxu1 }
 0xe0d   : > { %v4260_v12 = vpop.f32.mrf.mxu0 }
 0xe0f   : > { %v6734_v18 = vpop.f32.mrf.mxu0 }
 0xe10   : > { %v6761_v39 = vpop.f32.mrf.mxu1 }
 0xe11   : > { %v4265_v40 = vpop.f32.mrf.mxu0  ;;  %6763 = vmatpush3.msra.mxu0 %v6761_v39 }
 0xe12   : > { %v4426_v41 = vpop.f32.mrf.mxu1  ;;  %6764 = vmatprep.subr.mxu0 %v8170_v28 }
 0xe13   : > { %v6737_v42 = vpop.f32.mrf.mxu0  ;;  %6765 = vmatpush3.msra.mxu0 %v4426_v41 }
 0xe14   : > { %6766 = vmatprep.subr.mxu0 %v8170_v28 }
 0xe15   : > { %v4270_v43 = vpop.f32.mrf.mxu0  ;;  %6767 = vmatpush3.msra.mxu0 %v6752_v34 }
 0xe16   : > { %6768 = vmatprep.subr.mxu0 %v8170_v28 }
 0xe17   : > { %v6740_v44 = vpop.f32.mrf.mxu0  ;;  %6769 = vmatpush3.msra.mxu0 %v4348_v36 }
 0xe18   : > { %6770 = vmatprep.subr.mxu0 %v8170_v28 }
 0xe19   : > { %v4275_v45 = vpop.f32.mrf.mxu0 }
 0xe1a   : > { %6771 = vmatpush3.msra.mxu0 %v4275_v45 }
 0xe1b   : > { %6772 = vmatprep.subr.mxu0 %v8170_v28  ;;  %v6743_v46 = vpop.f32.mrf.mxu0 }
 0xe1c   : > { %6773 = vmatpush3.msra.mxu0 %v4270_v43 }
 0xe1d   : > { %6774 = vmatprep.subr.mxu0 %v8170_v28 }
 0xe1e   : > { %6775 = vmatpush3.msra.mxu0 %v4265_v40 }
 0xe1f   : > { %6776 = vmatprep.subr.mxu0 %v8170_v28 }
 0xe20   : > { %6777 = vmatpush3.msra.mxu0 %v4260_v12 }
 0xe21   : > { %6778 = vmatprep.subr.mxu0 %v8170_v28 }
 0xe22   : > { %6779 = vmatpush3.msra.mxu0 %v4255_v33 }
 0xe23   : > { %6781 = vmatmul.mubr.msk.f32.vlgmr.msra.gmra.mxu0 %vm2834_vm9, %v4435_v47  ;;  %6876 = vmatprep.subr.mxu0 %v8170_v28 }
 0xe24   : > { %6783 = vmatprep.mubr.msk.f32.mxu0 %vm8171_vm2, %v8170_v28 }
 0xe27   : > { %6784 = vmatmul.mubr.msk.f32.gmra.mxu0 %vm2834_vm9, %v4436_v48 }
 0xe28   : > { %6786 = vmatprep.mubr.msk.f32.mxu0 %vm8171_vm2, %v8170_v28 }
 0xe2b   : > { %6787 = vmatmul.mubr.msk.f32.gmra.mxu0 %vm2834_vm9, %v4437_v49 }
 0xe2c   : > { %6789 = vmatprep.mubr.msk.f32.mxu0 %vm8171_vm2, %v8170_v28 }
 0xe2f   : > { %6790 = vmatmul.mubr.msk.f32.gmra.mxu0 %vm2834_vm9, %v4438_v50 }
 0xe30   : > { %6792 = vmatprep.mubr.msk.f32.mxu0 %vm8171_vm2, %v8170_v28 }
 0xe33   : > { %6793 = vmatmul.mubr.msk.f32.gmra.mxu0 %vm2834_vm9, %v4439_v51 }
 0xe34   : > { %6795 = vmatprep.mubr.msk.f32.mxu0 %vm8171_vm2, %v8170_v28 }
 0xe37   : > { %6796 = vmatmul.mubr.msk.f32.gmra.mxu0 %vm2834_vm9, %v4440_v52 }
 0xe38   : > { %6798 = vmatprep.mubr.msk.f32.mxu0 %vm8171_vm2, %v8170_v28 }
 0xe3b   : > { %6799 = vmatmul.mubr.msk.f32.gmra.mxu0 %vm2834_vm9, %v4441_v53 }
 0xe3c   : > { %6801 = vmatprep.mubr.msk.f32.mxu0 %vm8171_vm2, %v8170_v28 }
 0xe3f   : > { %6802 = vmatmul.mubr.msk.f32.gmra.mxu0 %vm2834_vm9, %v4442_v54 }
 0xe40   : > { %6804 = vmatprep.mubr.msk.f32.mxu0 %vm8171_vm2, %v8170_v28 }
 0xe43   : > { %6805 = vmatmul.mubr.msk.f32.gmra.mxu0 %vm2834_vm9, %v4443_v55  ;;  %v4624_v55 = vld [vmem:[#allocation28] sm:$0xff] }
 0xe44   : > { %6894 = vmatprep.mubr.msk.f32.mxu0 %vm8171_vm2, %v8170_v28 }
 0xee3   : > { %v4537_v56 = vpop.f32.mrf.mxu0 }
 0xee4   : > { %v4581_v9 = vmul.f32 %v4537_v56, %v4537_v56 }
 0xee5   : > { %v6782_v57 = vpop.f32.mrf.mxu0 }
 0xee6   : > { %v4699_v57 = vld [vmem:[#allocation30 + $0x8] sm:$0xff] }
 0xee7   : > { %v4542_v58 = vpop.f32.mrf.mxu0 }
 0xee8   : > { %v4582_v6 = vmul.f32 %v4542_v58, %v4542_v58  ;;  %v4583_v33 = vmul.f32 %v4542_v58, %v4537_v56  ;;  %v4700_v56 = vld [vmem:[#allocation30 + $0x10] sm:$0xff]  ;;  %v4698_v58 = vld [vmem:[#allocation30] sm:$0xff] }
 0xee9   : > { %v6785_v59 = vpop.f32.mrf.mxu0 }
 0xeea   : > { %v4592_v37 = vadd.f32 %v4582_v6, %v4581_v9  ;;  %v4587_v12 = vmul.f32 2.0, %v4583_v33  ;;  %v4779_v59 = vld [vmem:[%s8370_s21 + $0x10] sm:$0xff] }
 0xeeb   : > { %v4547_v60 = vpop.f32.mrf.mxu0 }
 0xeec   : > { %v4584_v14 = vsub.f32 %v4547_v60, %v4581_v9  ;;  %v4593_v30 = vadd.f32 0.0001, %v4592_v37  ;;  %v4588_v42 = vadd.f32 0.0001, %v4587_v12  ;;  %v5204_v12 = vld [vmem:[%s9366_s23 + $0x8] sm:$0xff] }
 0xeed   : > { %v6788_v61 = vpop.f32.mrf.mxu0 }
 0xeee   : > { %v4778_v61 = vld [vmem:[%s8370_s21 + $0x8] sm:$0xff] }
 0xeef   : > { %v4552_v62 = vpop.f32.mrf.mxu0 }
 0xef0   : > { %v4585_v10 = vsub.f32 %v4552_v62, %v4582_v6  ;;  %v4777_v62 = vld [vmem:[%s8370_s21] sm:$0xff] }
 0xef1   : > { %v6791_v63 = vpop.f32.mrf.mxu0  ;;  %v4941_v6 = vld [vmem:[#allocation31 + $0x10] sm:$0xff] }
 0xef2   : > { %v4594_v19 = vadd.f32 %v4585_v10, %v4584_v14  ;;  %v5127_v14 = vld [vmem:[#allocation34 + $0x10] sm:$0xff] }
 0xef3   : > { %v4557_v0 = vpop.f32.mrf.mxu0 }
 0xef4   : > { %v4595_v26 = vadd.f32 0.0009, %v4594_v19  ;;  %v4586_v35 = vsub.f32 %v4557_v0, %v4583_v33  ;;  %v4775_v0 = vld [vmem:[%s8375_s8] sm:$0xff] }
 0xef5   : > { %v6794_v1 = vpop.f32.mrf.mxu0 }
 0xef6   : > { %v4596_v32 = vmul.f32 %v4595_v26, %v4593_v30  ;;  %v4589_v36 = vmul.f32 2.0, %v4586_v35 }
 0xef7   : > { %v4562_v2 = vpop.f32.mrf.mxu0 }
 0xef8   : > { %v4599_v15 = vmul.f32 %v4562_v2, %v4562_v2  ;;  %v4590_v39 = vadd.f32 0.0009, %v4589_v36  ;;  %v5203_v36 = vld [vmem:[%s9366_s23] sm:$0xff] }
 0xef9   : > { %v6797_v3 = vpop.f32.mrf.mxu0 }
 0xefa   : > { %v4591_v46 = vmul.f32 %v4590_v39, %v4588_v42  ;;  %v5206_v39 = vld [vmem:[%s9366_s23 + $0x18] sm:$0xff]  ;;  %v5209_v42 = vld [vmem:[%s9366_s23 + $0x30] sm:$0xff] }
 0xefb   : > { %v4567_v4 = vpop.f32.mrf.mxu0 }
 0xefc   : > { %v4603_v21 = vmul.f32 %v4567_v4, %v4567_v4 }
 0xefd   : > { %v6800_v5 = vpop.f32.mrf.mxu0 }
 0xefe   : > { %v4776_v5 = vld [vmem:[%s8375_s8 + $0x8] sm:$0xff] }
 0xeff   : > { %v4572_v8 = vpop.f32.mrf.mxu0 }
 0xf00   : > { %v4600_v11 = vmul.f32 %v4572_v8, %v4572_v8  ;;  %v5049_v8 = vld [vmem:[#allocation33 + $0x10] sm:$0xff] }
 0xf01   : > { %v6803_v13 = vpop.f32.mrf.mxu0 }
 0xf02   : > { %v4601_v22 = vadd.f32 %v4600_v11, %v4599_v15  ;;  %v5048_v11 = vld [vmem:[#allocation33 + $0x8] sm:$0xff]  ;;  %v5047_v13 = vld [vmem:[#allocation33] sm:$0xff] }
 0xf03   : > { %v4577_v38 = vpop.f32.mrf.mxu0 }
 0xf04   : > { %v4604_v23 = vmul.f32 %v4577_v38, %v4577_v38  ;;  %v4602_v27 = vadd.f32 1e-08, %v4601_v22  ;;  %v5125_v22 = vld [vmem:[#allocation34] sm:$0xff] }
 0xf05   : > { %v6806_v17 = vpop.f32.mrf.mxu0 }
 0xf06   : > { %v4605_v24 = vadd.f32 %v4604_v23, %v4603_v21  ;;  %v5126_v21 = vld [vmem:[#allocation34 + $0x8] sm:$0xff] }
 0xf08   : > { %v4606_v29 = vadd.f32 1e-08, %v4605_v24 }
 0xf0a   : > { %v4607_v7 = vmul.f32 %v4606_v29, %v4602_v27  ;;  %v4617_v31 = vadd.f32 %v4606_v29, %v4602_v27 }
 0xf0c   : > { %7292 = vrsqrt.f32 %v4607_v7  ;;  %v4618_v34 = vadd.f32 0.0009, %v4617_v31  ;;  %vm4610_vm15 = vcmp.eq.f32.partialorder %v4607_v7, inf  ;;  %v4613_v41 = vand.u32 2147483648, %v4607_v7 }
 0xf0d   : > { %7294 = vrcp.f32 %v4596_v32  ;;  %vm4612_vm0 = vcmp.eq.f32.partialorder %v4607_v7, 0.0 }
 0xf0e   : > { %7296 = vrcp.f32 %v4618_v34 }
 0xf19   : > { %v7293_v18 = vpop.eup %7292 }
 0xf1a   : > { %v4609_v40 = vmul.f32 %v7293_v18, %v4607_v7  ;;  %v7295_v44 = vpop.eup %7294  ;;  %v5205_v18 = vld [vmem:[%s9366_s23 + $0x10] sm:$0xff] }
 0xf1b   : > { %v4598_v48 = vmul.f32 %v7295_v44, %v4591_v46  ;;  %v7297_v50 = vpop.eup %7296  ;;  %v5211_v44 = vld [vmem:[%s9366_s23 + $0x40] sm:$0xff] }
 0xf1c   : > { %v4611_v43 = vsel %vm4610_vm15, %v4607_v7, %v4609_v40  ;;  %v5207_v40 = vld [vmem:[%s9366_s23 + $0x20] sm:$0xff] }
 0xf1d   : > { %v4614_v45 = vsel %vm4612_vm0, %v4613_v41, %v4611_v43  ;;  %v4621_v52 = vmul.f32 0.85, %v4598_v48  ;;  %v5208_v41 = vld [vmem:[%s9366_s23 + $0x28] sm:$0xff]  ;;  %v5210_v43 = vld [vmem:[%s9366_s23 + $0x38] sm:$0xff] }
 0xf1e   : > { %v4615_v47 = vmul.f32 2.0, %v4614_v45 }
 0xf20   : > { %v4616_v49 = vadd.f32 0.0009, %v4615_v47 }
 0xf22   : > { %v4620_v51 = vmul.f32 %v7297_v50, %v4616_v49 }
 0xf24   : > { %v4622_v53 = vmul.f32 0.15, %v4620_v51 }
 0xf26   : > { %v4623_v54 = vadd.f32 %v4622_v53, %v4621_v52 }
 0xf28   : > { %6808 = vmatpush3.msra.mxu1 %v4623_v54 }
 0xf29   : > { %6810 = vmatmul.mubr.msk.f32.vlgmr.msra.gmra.mxu1 %vm3016_vm12, %v4624_v55  ;;  %6812 = vmatprep.subr.mxu1 %v8170_v28 }
 0xf2a   : > { %6813 = vmatpush3.msra.mxu1 %v4700_v56  ;;  %6818 = vmatprep.mubr.msk.f32.mxu1 %vm8171_vm2, %v8170_v28 }
 0xf2b   : > { %6814 = vmatprep.subr.mxu1 %v8170_v28 }
 0xf2c   : > { %6815 = vmatpush3.msra.mxu1 %v4699_v57 }
 0xf2d   : > { %6816 = vmatprep.subr.mxu1 %v8170_v28 }
 0xf2e   : > { %6817 = vmatpush3.msra.mxu1 %v4698_v58 }
 0xf2f   : > { %6821 = vmatprep.subr.mxu1 %v4779_v59 }
 0xfe9   : > { %v4694_v60 = vpop.f32.mrf.mxu1 }
 0xfea   : > { %6819 = vmatmul.mubr.msk.f32.vlgmr.msra.gmra.mxu1 %vm2563_vm8, %v4694_v60 }
 0xfeb   : > { %6822 = vmatpush3.msra.mxu1 %v4779_v59  ;;  %6827 = vmatprep.mubr.msk.f32.mxu1 %vm2563_vm8, %v9088_v20  ;;  %v6811_v63 = vpop.f32.mrf.mxu1 }
 0xfec   : > { %6823 = vmatprep.subr.mxu1 %v4778_v61 }
 0xfed   : > { %6824 = vmatpush3.msra.mxu1 %v4778_v61 }
 0xfee   : > { %6825 = vmatprep.subr.mxu1 %v4777_v62 }
 0xfef   : > { %6826 = vmatpush3.msra.mxu1 %v4777_v62 }
 0xff0   : > { %6828 = vmatmul.mubr.msk.f32.vlgmr.msra.gmra.mxu1 %vm2563_vm8, %v9086_v25  ;;  %v4939_v25 = vld [vmem:[#allocation31] sm:$0xff] }
 0xff1   : > { %6834 = vmatprep.mubr.msk.f32.mxu1 %vm2006_vm1, %v4775_v0 }
0x10aa   : > { %v4770_v1 = vpop.f32.mrf.mxu1 }
0x10ab   : > { %v9186_v2 = vadd.f32 %v4770_v1, %v9077_v16  ;;  %v4940_v16 = vld [vmem:[#allocation31 + $0x8] sm:$0xff] }
0x10ac   : > { %v6820_v3 = vpop.f32.mrf.mxu1 }
0x10b0   : > { %v6829_v4 = vpop.f32.mrf.mxu1 }
0x10b1   : > { %6830 = vmatprep.subr.mxu1 %v6829_v4 }
0x10b2   : > { %v4846_v20 = vpop.f32.mrf.mxu1  ;;  %6831 = vmatpush3.msra.mxu1 %v6829_v4 }
0x10b3   : > { %6832 = vmatprep.subr.mxu1 %v4846_v20 }
0x10b4   : > { %6833 = vmatpush3.msra.mxu1 %v4846_v20 }
0x10b5   : > { %6835 = vmatmul.mubr.msk.f32.vlgmr.msra.gmra.mxu1 %vm2006_vm1, %v4776_v5  ;;  %6837 = vmatprep.subr.mxu1 %v8170_v28 }
0x10b6   : > { %6838 = vmatpush3.msra.mxu1 %v4941_v6  ;;  %6843 = vmatprep.mubr.msk.f32.mxu1 %vm8171_vm2, %v8170_v28 }
0x10b7   : > { %6839 = vmatprep.subr.mxu1 %v8170_v28 }
0x10b8   : > { %6840 = vmatpush3.msra.mxu1 %v4940_v16 }
0x10b9   : > { %6841 = vmatprep.subr.mxu1 %v8170_v28 }
0x10ba   : > { %6842 = vmatpush3.msra.mxu1 %v4939_v25 }
0x10bb   : > { %6858 = vmatprep.subr.mxu1 %v5049_v8 }
0x1175   : > { %v6836_v9 = vpop.f32.mrf.mxu1 }
0x1176   : > { %v4937_v38 = vmul.f32 %v6836_v9, %v6836_v9 }
0x1177   : > { %v4927_v10 = vpop.f32.mrf.mxu1 }
0x1178   : > { %6844 = vmatmul.mubr.msk.f32.vlgmr.msra.gmra.mxu1 %vm2563_vm8, %v4927_v10  ;;  %v4936_v15 = vmul.f32 %v4927_v10, %v4927_v10  ;;  %v4938_v19 = vmul.f32 %v6836_v9, %v4927_v10 }
0x1179   : > { %6846 = vmatprep.mubr.msk.f32.mxu1 %vm8171_vm2, %v8170_v28  ;;  %6859 = vmatpush3.msra.mxu1 %v5049_v8 }
0x117a   : > { %6860 = vmatprep.subr.mxu1 %v5048_v11 }
0x117b   : > { %6861 = vmatpush3.msra.mxu1 %v5048_v11 }
0x117c   : > { %6847 = vmatmul.mubr.msk.f32.gmra.mxu1 %vm2563_vm8, %v6836_v9  ;;  %6862 = vmatprep.subr.mxu1 %v5047_v13 }
0x117d   : > { %6849 = vmatprep.mubr.msk.f32.mxu1 %vm8171_vm2, %v8170_v28  ;;  %6863 = vmatpush3.msra.mxu1 %v5047_v13 }
0x117e   : > { %6867 = vmatprep.subr.mxu1 %v5127_v14 }
0x1180   : > { %6850 = vmatmul.mubr.msk.f32.gmra.mxu1 %vm2563_vm8, %v4936_v15 }
0x1181   : > { %6852 = vmatprep.mubr.msk.f32.mxu1 %vm8171_vm2, %v8170_v28 }
0x1184   : > { %6853 = vmatmul.mubr.msk.f32.gmra.mxu1 %vm2563_vm8, %v4937_v38 }
0x1185   : > { %6855 = vmatprep.mubr.msk.f32.mxu1 %vm8171_vm2, %v8170_v28 }
0x1188   : > { %6856 = vmatmul.mubr.msk.f32.gmra.mxu1 %vm2563_vm8, %v4938_v19 }
0x1189   : > { %6864 = vmatprep.mubr.msk.f32.mxu1 %vm2563_vm8, %v4927_v10 }
0x118c   : > { %6865 = vmatmul.mubr.msk.f32.vlgmr.msra.gmra.mxu1 %vm2563_vm8, %v6836_v9 }
0x118d   : > { %6868 = vmatpush3.msra.mxu1 %v5127_v14  ;;  %6873 = vmatprep.mubr.msk.f32.mxu1 %vm2563_vm8, %v4927_v10 }
0x118e   : > { %6869 = vmatprep.subr.mxu1 %v5126_v21 }
0x118f   : > { %6870 = vmatpush3.msra.mxu1 %v5126_v21 }
0x1190   : > { %6871 = vmatprep.subr.mxu1 %v5125_v22 }
0x1191   : > { %6872 = vmatpush3.msra.mxu1 %v5125_v22 }
0x1192   : > { %6874 = vmatmul.mubr.msk.f32.vlgmr.msra.gmra.mxu1 %vm2563_vm8, %v6836_v9  ;;  %6921 = vmatprep.subr.mxu1 %v8170_v28 }
0x1193   : > { %6923 = vmatprep.mubr.msk.f32.mxu1 %vm8171_vm2, %v8170_v28 }
0x1238   : > { %v5023_v23 = vpop.f32.mrf.mxu1 }
0x123a   : > { %v6845_v17 = vpop.f32.mrf.mxu1 }
0x123c   : > { %v5028_v37 = vpop.f32.mrf.mxu1 }
0x123e   : > { %v6848_v24 = vpop.f32.mrf.mxu1 }
0x1240   : > { %v5033_v26 = vpop.f32.mrf.mxu1 }
0x1242   : > { %v6851_v27 = vpop.f32.mrf.mxu1 }
0x1244   : > { %v5038_v29 = vpop.f32.mrf.mxu1 }
0x1246   : > { %v6854_v30 = vpop.f32.mrf.mxu1 }
0x1248   : > { %v5043_v7 = vpop.f32.mrf.mxu1 }
0x124a   : > { %v6857_v32 = vpop.f32.mrf.mxu1 }
0x124c   : > { %v6866_v31 = vpop.f32.mrf.mxu1 }
0x124e   : > { %v5116_v33 = vpop.f32.mrf.mxu1 }
0x1252   : > { %v6875_v34 = vpop.f32.mrf.mxu1 }
0x1253   : > { %6877 = vmatpush3.msra.mxu0 %v6875_v34 }
0x1254   : > { %v5194_v35 = vpop.f32.mrf.mxu1  ;;  %6878 = vmatprep.subr.mxu0 %v8170_v28 }
0x1255   : > { %6879 = vmatpush3.msra.mxu0 %v5194_v35 }
0x1256   : > { %6880 = vmatprep.subr.mxu0 %v8170_v28 }
0x1257   : > { %6881 = vmatpush3.msra.mxu0 %v6866_v31 }
0x1258   : > { %6882 = vmatprep.subr.mxu0 %v8170_v28 }
0x1259   : > { %6883 = vmatpush3.msra.mxu0 %v5116_v33 }
0x125a   : > { %6884 = vmatprep.subr.mxu0 %v8170_v28 }
0x125b   : > { %6885 = vmatpush3.msra.mxu0 %v5043_v7 }
0x125c   : > { %6886 = vmatprep.subr.mxu0 %v8170_v28 }
0x125d   : > { %6887 = vmatpush3.msra.mxu0 %v5038_v29 }
0x125e   : > { %6888 = vmatprep.subr.mxu0 %v8170_v28 }
0x125f   : > { %6889 = vmatpush3.msra.mxu0 %v5033_v26 }
0x1260   : > { %6890 = vmatprep.subr.mxu0 %v8170_v28 }
0x1261   : > { %6891 = vmatpush3.msra.mxu0 %v5028_v37 }
0x1262   : > { %6892 = vmatprep.subr.mxu0 %v8170_v28 }
0x1263   : > { %6893 = vmatpush3.msra.mxu0 %v5023_v23 }
0x1264   : > { %6895 = vmatmul.mubr.msk.f32.vlgmr.msra.gmra.mxu0 %vm2834_vm9, %v5203_v36 }
0x1265   : > { %6897 = vmatprep.mubr.msk.f32.mxu0 %vm8171_vm2, %v8170_v28 }
0x1268   : > { %6898 = vmatmul.mubr.msk.f32.gmra.mxu0 %vm2834_vm9, %v5204_v12 }
0x1269   : > { %6900 = vmatprep.mubr.msk.f32.mxu0 %vm8171_vm2, %v8170_v28 }
0x126c   : > { %6901 = vmatmul.mubr.msk.f32.gmra.mxu0 %vm2834_vm9, %v5205_v18 }
0x126d   : > { %6903 = vmatprep.mubr.msk.f32.mxu0 %vm8171_vm2, %v8170_v28 }
0x1270   : > { %6904 = vmatmul.mubr.msk.f32.gmra.mxu0 %vm2834_vm9, %v5206_v39 }
0x1271   : > { %6906 = vmatprep.mubr.msk.f32.mxu0 %vm8171_vm2, %v8170_v28 }
0x1274   : > { %6907 = vmatmul.mubr.msk.f32.gmra.mxu0 %vm2834_vm9, %v5207_v40 }
0x1275   : > { %6909 = vmatprep.mubr.msk.f32.mxu0 %vm8171_vm2, %v8170_v28 }
0x1278   : > { %6910 = vmatmul.mubr.msk.f32.gmra.mxu0 %vm2834_vm9, %v5208_v41 }
0x1279   : > { %6912 = vmatprep.mubr.msk.f32.mxu0 %vm8171_vm2, %v8170_v28 }
0x127c   : > { %6913 = vmatmul.mubr.msk.f32.gmra.mxu0 %vm2834_vm9, %v5209_v42  ;;  %v5392_v42 = vld [vmem:[#allocation36] sm:$0xff] }
0x127d   : > { %6915 = vmatprep.mubr.msk.f32.mxu0 %vm8171_vm2, %v8170_v28 }
0x1280   : > { %6916 = vmatmul.mubr.msk.f32.gmra.mxu0 %vm2834_vm9, %v5210_v43  ;;  %v5468_v43 = vld [vmem:[#allocation37 + $0x10] sm:$0xff] }
0x1281   : > { %6918 = vmatprep.mubr.msk.f32.mxu0 %vm8171_vm2, %v8170_v28 }
0x1284   : > { %6919 = vmatmul.mubr.msk.f32.gmra.mxu0 %vm2834_vm9, %v5211_v44  ;;  %v5467_v44 = vld [vmem:[#allocation37 + $0x8] sm:$0xff] }
0x1324   : > { %v5305_v45 = vpop.f32.mrf.mxu0 }
0x1325   : > { %v5349_v61 = vmul.f32 %v5305_v45, %v5305_v45 }
0x1326   : > { %v6896_v46 = vpop.f32.mrf.mxu0 }
0x1328   : > { %v5310_v47 = vpop.f32.mrf.mxu0 }
0x1329   : > { %v5350_v59 = vmul.f32 %v5310_v47, %v5310_v47  ;;  %v5351_v21 = vmul.f32 %v5310_v47, %v5305_v45  ;;  %v5466_v45 = vld [vmem:[#allocation37] sm:$0xff] }
0x132a   : > { %v6899_v48 = vpop.f32.mrf.mxu0 }
0x132b   : > { %v5360_v8 = vadd.f32 %v5350_v59, %v5349_v61  ;;  %v5355_v37 = vmul.f32 2.0, %v5351_v21 }
0x132c   : > { %v5315_v49 = vpop.f32.mrf.mxu0 }
0x132d   : > { %v5352_v1 = vsub.f32 %v5315_v49, %v5349_v61  ;;  %v5361_v14 = vadd.f32 0.0001, %v5360_v8  ;;  %v5356_v30 = vadd.f32 0.0001, %v5355_v37 }
0x132e   : > { %v6902_v50 = vpop.f32.mrf.mxu0 }
0x1330   : > { %v5320_v51 = vpop.f32.mrf.mxu0 }
0x1331   : > { %v5353_v62 = vsub.f32 %v5320_v51, %v5350_v59 }
0x1332   : > { %v6905_v52 = vpop.f32.mrf.mxu0 }
0x1333   : > { %v5362_v20 = vadd.f32 %v5353_v62, %v5352_v1 }
0x1334   : > { %v5325_v53 = vpop.f32.mrf.mxu0 }
0x1335   : > { %v5363_v10 = vadd.f32 0.0009, %v5362_v20  ;;  %v5354_v23 = vsub.f32 %v5325_v53, %v5351_v21 }
0x1336   : > { %v6908_v54 = vpop.f32.mrf.mxu0 }
0x1337   : > { %v5364_v38 = vmul.f32 %v5363_v10, %v5361_v14  ;;  %v5357_v17 = vmul.f32 2.0, %v5354_v23 }
0x1338   : > { %v5330_v55 = vpop.f32.mrf.mxu0 }
0x1339   : > { %v5367_v3 = vmul.f32 %v5330_v55, %v5330_v55  ;;  %v5358_v26 = vadd.f32 0.0009, %v5357_v17 }
0x133a   : > { %v6911_v56 = vpop.f32.mrf.mxu0 }
0x133b   : > { %v5359_v33 = vmul.f32 %v5358_v26, %v5356_v30 }
0x133c   : > { %v5335_v57 = vpop.f32.mrf.mxu0 }
0x133d   : > { %v5371_v5 = vmul.f32 %v5335_v57, %v5335_v57 }
0x133e   : > { %v6914_v58 = vpop.f32.mrf.mxu0 }
0x1340   : > { %v5340_v60 = vpop.f32.mrf.mxu0 }
0x1341   : > { %v5368_v63 = vmul.f32 %v5340_v60, %v5340_v60 }
0x1342   : > { %v6917_v0 = vpop.f32.mrf.mxu0 }
0x1343   : > { %v5369_v6 = vadd.f32 %v5368_v63, %v5367_v3 }
0x1344   : > { %v5345_v4 = vpop.f32.mrf.mxu0 }
0x1345   : > { %v5372_v16 = vmul.f32 %v5345_v4, %v5345_v4  ;;  %v5370_v11 = vadd.f32 1e-08, %v5369_v6 }
0x1346   : > { %v6920_v25 = vpop.f32.mrf.mxu0 }
0x1347   : > { %v5373_v9 = vadd.f32 %v5372_v16, %v5371_v5 }
0x1349   : > { %v5374_v13 = vadd.f32 1e-08, %v5373_v9 }
0x134b   : > { %v5375_v15 = vmul.f32 %v5374_v13, %v5370_v11  ;;  %v5385_v19 = vadd.f32 %v5374_v13, %v5370_v11 }
0x134d   : > { %7298 = vrsqrt.f32 %v5375_v15  ;;  %v5386_v22 = vadd.f32 0.0009, %v5385_v19  ;;  %vm5378_vm1 = vcmp.eq.f32.partialorder %v5375_v15, inf  ;;  %v5381_v29 = vand.u32 2147483648, %v5375_v15 }
0x134e   : > { %7300 = vrcp.f32 %v5364_v38  ;;  %vm5380_vm3 = vcmp.eq.f32.partialorder %v5375_v15, 0.0 }
0x134f   : > { %7302 = vrcp.f32 %v5386_v22 }
0x135a   : > { %v7299_v24 = vpop.eup %7298 }
0x135b   : > { %v5377_v27 = vmul.f32 %v7299_v24, %v5375_v15  ;;  %v7301_v32 = vpop.eup %7300 }
0x135c   : > { %v5366_v35 = vmul.f32 %v7301_v32, %v5359_v33  ;;  %v7303_v12 = vpop.eup %7302 }
0x135d   : > { %v5379_v7 = vsel %vm5378_vm1, %v5375_v15, %v5377_v27 }
0x135e   : > { %v5382_v31 = vsel %vm5380_vm3, %v5381_v29, %v5379_v7  ;;  %v5389_v39 = vmul.f32 0.85, %v5366_v35 }
0x135f   : > { %v5383_v34 = vmul.f32 2.0, %v5382_v31 }
0x1361   : > { %v5384_v36 = vadd.f32 0.0009, %v5383_v34 }
0x1363   : > { %v5388_v18 = vmul.f32 %v7303_v12, %v5384_v36 }
0x1365   : > { %v5390_v40 = vmul.f32 0.15, %v5388_v18 }
0x1367   : > { %v5391_v41 = vadd.f32 %v5390_v40, %v5389_v39 }
0x1369   : > { %6922 = vmatpush3.msra.mxu1 %v5391_v41 }
0x136a   : > { %6924 = vmatmul.mubr.msk.f32.vlgmr.msra.gmra.mxu1 %vm3016_vm12, %v5392_v42  ;;  %6926 = vmatprep.subr.mxu1 %v8170_v28 }
0x136b   : > { %6927 = vmatpush3.msra.mxu1 %v5468_v43  ;;  %6932 = vmatprep.mubr.msk.f32.mxu1 %vm8171_vm2, %v8170_v28 }
0x136c   : > { %6928 = vmatprep.subr.mxu1 %v8170_v28 }
0x136d   : > { %6929 = vmatpush3.msra.mxu1 %v5467_v44 }
0x136e   : > { %6930 = vmatprep.subr.mxu1 %v8170_v28 }
0x136f   : > { %6931 = vmatpush3.msra.mxu1 %v5466_v45 }
0x142a   : > { %v5462_v46 = vpop.f32.mrf.mxu1 }
0x142b   : > { %6933 = vmatmul.mubr.msk.f32.vlgmr.msra.gmra.mxu1 %vm2563_vm8, %v5462_v46 }
0x142c   : > { %v6925_v47 = vpop.f32.mrf.mxu1 }
0x14eb   : > { %v5538_v48 = vpop.f32.mrf.mxu1 }
0x14ec   : > { %v5542_v49 = vadd.f32 %v5538_v48, %v9186_v2 }
0x14ed   : > { %v6934_v50 = vpop.f32.mrf.mxu1 }
0x14ee   : > { %5543 = vst [vmem:[%s1625_s15] sm:$0xff] %v5542_v49 }
0x14ef PF: > { %s106_s28 = sadd.s32 1, %s8098_s28  }
0x14f0   : > { %p103_p2 = scmp.ge.s32.totalorder %s106_s28, 4  }
0x14f2   :  { %105 = sbr.rel (!%p103_p2) target bundleno = 83 (0x53), region = 366 }
0x14f7   :  { %5563 = vsyncpa [#allocation3], 1 }
0x14f8   :  { %5565 = vsyncpa [#allocation3 + $0x1], 1 }
0x14f9   :  { %5566 = vsyncpa [#allocation5], 1 }
0x14fa   :  { %5567 = vsyncpa [#allocation8], 1 }
0x14fb   :  { %5568 = vsyncpa [#allocation11], 1 }
0x14fc   :  { %5569 = vsyncpa [#allocation14], 1 }
0x14fd   :  { %5570 = vsyncpa [#allocation17], 1 }
0x14fe   :  { %5571 = vsyncpa [#allocation20], 1 }
0x14ff   :  { %5572 = vsyncpa [#allocation23], 1 }
0x1500   :  { %5573 = vsyncpa [#allocation26], 1 }
0x1501   :  { %5574 = vsyncpa [#allocation29], 1 }
0x1502   :  { %5575 = vsyncpa [#allocation32], 1 }
0x1503   :  { %5576 = vsyncpa [#allocation35], 1 }
0x1504   :  { %5577 = vsyncpa [#allocation38], 1 }
0x1505   :  { %5578 = vsyncpa [#allocation41], 1 }
0x1506   :  { %5579 = vsyncpa [#allocation44], 1 }

</bundles_post_ra>
